<compile_context>
chip_gen: v5e
topology: v5e:2x2
jax: 0.10.0
libtpu: 0.0.40
codegen_flags: <defaults>
</compile_context>

<pallas_src>
import functools

import jax
import jax.numpy as jnp
from jax.experimental import pallas as pl
from jax.experimental.pallas import tpu as pltpu

LN_EPS = 1e-5
_NEG_INF = -1e30  # bias for padded adapter logit lanes -> softmax weight exactly 0


def _round_up(x, m):
    return (x + m - 1) // m * m


def _adapter_mix_kernel(x_ref, w1_ref, colsum_ref, bd_ref, bc1_ref,
                        wu_ref, emb_ref, wc2_ref, bc2_ref,
                        out_ref, logits_ref, *, cb_pad, nb_pad, approx_recip):
    mm = w1_ref.dtype                                   # matmul operand dtype (bf16 or f32)
    x = x_ref[...].astype(jnp.float32)                  # (TM, D)

    # ---- stage 1: ONE wide matmul on raw x: [classifier-1 | all-adapter down-proj] ----
    y = jnp.dot(x.astype(mm), w1_ref[...], preferred_element_type=jnp.float32)  # (TM, CBp+NBp)
    y_c = y[:, :cb_pad]                                 # (TM, CBp)   classifier pre-act
    y_d = y[:, cb_pad:]                                 # (TM, NBp)   x @ Wd (LN not applied yet)

    # ---- mix-weight classifier: tanh -> Linear -> softmax over (padded) adapters ----
    h = jnp.tanh(y_c + bc1_ref[...])
    logits = jnp.dot(h.astype(mm), wc2_ref[...],
                     preferred_element_type=jnp.float32) + bc2_ref[...]          # (TM, Np)
    m = jnp.max(logits, axis=-1, keepdims=True)
    e = jnp.exp(logits - m)                             # padded lanes: exp(-1e30 - m) == 0
    s = jnp.sum(e, axis=-1, keepdims=True)
    if approx_recip:
        weights = e * pl.reciprocal(s, approx=True)     # EUP slot; plenty accurate for mixing
    else:
        weights = e / s                                 # exact-semantics (f32) path

    # ---- LayerNorm stats only (per-domain affine folded into Wd / bias in wrapper):
    #      x_hat @ Wd == r*(x @ Wd) - (r*mu)*colsum(Wd),  r = rsqrt(var + eps)
    mu = jnp.mean(x, axis=-1, keepdims=True)
    var = jnp.mean((x - mu) ** 2, axis=-1, keepdims=True)
    r = jax.lax.rsqrt(var + LN_EPS)
    hb = jnp.maximum(r * y_d - (r * mu) * colsum_ref[...] + bd_ref[...], 0.0)    # (TM, NBp)

    # ---- stage 2: ONE matmul for [weight expansion over bottleneck lanes | mixed up-bias] ----
    wb = jnp.dot(weights.astype(mm), emb_ref[...],
                 preferred_element_type=jnp.float32)    # (TM, NBp + D)
    w_exp = wb[:, :nb_pad]                              # per-lane mix weights
    bias_mix = wb[:, nb_pad:]                           # sum_n w_n * bu_n

    # fused up-projection of all adapters (mix weights applied on the cheap side)
    up = jnp.dot((hb * w_exp).astype(mm), wu_ref[...],
                 preferred_element_type=jnp.float32)    # (TM, D)

    # softmax sums to 1:  sum_n w_n * (x + a_n) == x + sum_n w_n * a_n
    out_ref[...] = (x + up + bias_mix).astype(out_ref.dtype)
    logits_ref[...] = logits.astype(logits_ref.dtype)


def _prepare_params(params, mm_dtype):
    """Fold LN affine into w_down, fuse + lane-pad all adapter / classifier weights."""
    gamma, beta = params["ln_gamma"], params["ln_beta"]   # (N, D)
    wd, bd = params["w_down"], params["b_down"]           # (N, D, ab), (N, ab)
    wu, bu = params["w_up"], params["b_up"]               # (N, ab, D), (N, D)
    N, D, ab = wd.shape
    NB = N * ab
    NB_pad = _round_up(NB, 128)
    N_pad = _round_up(max(N, 1), 128)
    cb = params["wc1"].shape[1]
    cb_pad = _round_up(cb, 128)

    # (x_hat*gamma_n + beta_n) @ Wd_n + bd_n == x_hat @ (gamma_n[:,None]*Wd_n) + beta_n@Wd_n + bd_n
    wd_f = gamma[:, :, None] * wd                                   # (N, D, ab)
    bd_f = jnp.einsum("nd,nda->na", beta, wd) + bd                  # (N, ab)

    wd_cat = jnp.transpose(wd_f, (1, 0, 2)).reshape(D, NB)          # (D, N*ab)
    colsum = jnp.sum(wd_cat, axis=0, keepdims=True)                 # (1, N*ab)  for LN mean term
    bd_cat = bd_f.reshape(1, NB)
    wu_cat = wu.reshape(NB, D)                                      # (N*ab, D)

    wd_cat = jnp.pad(wd_cat, ((0, 0), (0, NB_pad - NB)))
    colsum = jnp.pad(colsum, ((0, 0), (0, NB_pad - NB)))
    bd_cat = jnp.pad(bd_cat, ((0, 0), (0, NB_pad - NB)))
    wu_cat = jnp.pad(wu_cat, ((0, NB_pad - NB), (0, 0)))

    wc1 = jnp.pad(params["wc1"], ((0, 0), (0, cb_pad - cb)))        # (D, CBp)
    bc1 = jnp.pad(params["bc1"].reshape(1, cb), ((0, 0), (0, cb_pad - cb)))
    wc2 = jnp.pad(params["wc2"], ((0, cb_pad - cb), (0, N_pad - N)))
    bc2 = jnp.pad(params["bc2"].reshape(1, N), ((0, 0), (0, N_pad - N)),
                  constant_values=_NEG_INF)

    # stage-1 fused operand: [wc1 | wd_cat]  -> (D, CBp + NBp), 256-lane-dense
    w1 = jnp.concatenate([wc1, wd_cat], axis=1)

    # stage-2 fused operand: [emat | bu]     -> (Np, NBp + D)
    emat = jnp.repeat(jnp.eye(N, dtype=jnp.float32), ab, axis=1)    # (N, N*ab) selector
    emat = jnp.pad(emat, ((0, N_pad - N), (0, NB_pad - NB)))
    bu_pad = jnp.pad(bu, ((0, N_pad - N), (0, 0)))                  # (Np, D)
    emb = jnp.concatenate([emat, bu_pad], axis=1)                   # (Np, NBp + D)

    weight_args = [w1.astype(mm_dtype), colsum, bd_cat, bc1,
                   wu_cat.astype(mm_dtype), emb.astype(mm_dtype),
                   wc2.astype(mm_dtype), bc2]
    return weight_args, N_pad, NB_pad, cb_pad


def _const_spec(arr):
    """Full-array block, constant index map, single-buffered (fetched once)."""
    nd = arr.ndim
    idx = lambda i, _nd=nd: (0,) * _nd
    try:
        return pl.BlockSpec(arr.shape, idx, pipeline_mode=pl.Buffered(1))
    except TypeError:   # older API without pipeline_mode: fall back to default buffering
        return pl.BlockSpec(arr.shape, idx)


def adapter_mix_layer(x, params, *, tm=512, matmul_dtype=jnp.bfloat16):
    """x: (B, S, D) float32. Returns (mixed: (B, S, D), logits: (B, S, N))."""
    B, S, D = x.shape
    T = B * S
    N = params["w_down"].shape[0]

    weight_args, N_pad, NB_pad, cb_pad = _prepare_params(params, matmul_dtype)

    use_f32 = jnp.dtype(matmul_dtype) == jnp.dtype(jnp.float32)
    logits_dtype = x.dtype if use_f32 else jnp.bfloat16   # shrink padded-logits writeback

    # --- token tiling: big tiles, grid kept even (>1) for v7x 2-TC megacore balance ---
    tm = max(8, _round_up(min(tm, T), 8))
    grid_n = -(-T // tm)
    if grid_n > 1 and grid_n % 2 == 1:
        grid_n += 1
        tm = max(8, _round_up(-(-T // grid_n), 8))
    T_pad = grid_n * tm

    xf = x.reshape(T, D)
    if T_pad != T:
        xf = jnp.pad(xf, ((0, T_pad - T), (0, 0)))      # zero rows are LN/softmax-safe

    kernel = functools.partial(_adapter_mix_kernel, cb_pad=cb_pad, nb_pad=NB_pad,
                               approx_recip=not use_f32)

    in_specs = [pl.BlockSpec((tm, D), lambda i: (i, 0))] + [_const_spec(a) for a in weight_args]
    out_specs = (pl.BlockSpec((tm, D), lambda i: (i, 0)),
                 pl.BlockSpec((tm, N_pad), lambda i: (i, 0)))       # lane-dense logits block
    out_shape = (jax.ShapeDtypeStruct((T_pad, D), x.dtype),
                 jax.ShapeDtypeStruct((T_pad, N_pad), logits_dtype))

    weight_bytes = sum(int(a.size) * jnp.dtype(a.dtype).itemsize for a in weight_args)
    flops = 2 * T_pad * (D * (cb_pad + NB_pad) + cb_pad * N_pad
                         + N_pad * (NB_pad + D) + NB_pad * D)
    transcendentals = T_pad * (cb_pad + N_pad + 2)       # tanh + exp (+rsqrt/recip)
    bytes_accessed = (4 * T_pad * 2 * D
                      + T_pad * N_pad * jnp.dtype(logits_dtype).itemsize
                      + weight_bytes)
    cost = pl.CostEstimate(flops=int(flops), transcendentals=int(transcendentals),
                           bytes_accessed=int(bytes_accessed))

    # VMEM budget: double-buffered (tm,D)/(tm,Np) IO blocks + single-buffered weights.
    io_block_bytes = tm * (2 * D * 4 + N_pad * jnp.dtype(logits_dtype).itemsize)
    try:
        vmem_cap = int(getattr(pltpu.get_tpu_info(), "vmem_capacity_bytes", 0)) or (64 << 20)
    except Exception:
        vmem_cap = 64 << 20                              # conservative v7x-sized fallback
    if vmem_cap < (32 << 20):
        vmem_cap = 64 << 20
    vmem_limit = int(min(max(2 * io_block_bytes + weight_bytes + (4 << 20), 32 << 20),
                         int(vmem_cap * 0.9)))

    mixed, logits = pl.pallas_call(
        kernel,
        grid=(grid_n,),
        in_specs=in_specs,
        out_specs=out_specs,
        out_shape=out_shape,
        compiler_params=pltpu.CompilerParams(
            dimension_semantics=("parallel",),           # token tiles shard across v7x's 2 TCs
            vmem_limit_bytes=vmem_limit),
        cost_estimate=cost,
    )(xf, *weight_args)

    mixed = mixed[:T].reshape(B, S, D)
    logits = logits[:T, :N].astype(x.dtype).reshape(B, S, N)
    return mixed, logits


def _reference(x, params):
    """Pure-JAX reference mirroring the PyTorch forward (token classifier, eval)."""
    N = params["w_down"].shape[0]
    mu = jnp.mean(x, axis=-1, keepdims=True)
    var = jnp.mean((x - mu) ** 2, axis=-1, keepdims=True)
    x_hat = (x - mu) / jnp.sqrt(var + LN_EPS)

    outs = []
    for n in range(N):
        xn = x_hat * params["ln_gamma"][n] + params["ln_beta"][n]
        hb = jax.nn.relu(xn @ params["w_down"][n] + params["b_down"][n])
        outs.append(x + hb @ params["w_up"][n] + params["b_up"][n])
    stacked = jnp.stack(outs, axis=-1)                              # (B, S, D, N)

    h = jnp.tanh(x @ params["wc1"] + params["bc1"])
    logits = h @ params["wc2"] + params["bc2"]                      # (B, S, N)
    w = jax.nn.softmax(logits, axis=-1)[..., None]                  # (B, S, N, 1)
    mixed = jnp.squeeze(stacked @ w, axis=-1)                       # (B, S, D)
    return mixed, logits


def _init_params(key, *, n_adapters, d, adapter_bottleneck, classifier_bottleneck):
    ks = jax.random.split(key, 10)
    s = 0.05
    return {
        "ln_gamma": 1.0 + 0.1 * jax.random.normal(ks[8], (n_adapters, d), jnp.float32),
        "ln_beta": 0.1 * jax.random.normal(ks[9], (n_adapters, d), jnp.float32),
        "w_down": s * jax.random.normal(ks[0], (n_adapters, d, adapter_bottleneck), jnp.float32),
        "b_down": s * jax.random.normal(ks[1], (n_adapters, adapter_bottleneck), jnp.float32),
        "w_up": s * jax.random.normal(ks[2], (n_adapters, adapter_bottleneck, d), jnp.float32),
        "b_up": s * jax.random.normal(ks[3], (n_adapters, d), jnp.float32),
        "wc1": s * jax.random.normal(ks[4], (d, classifier_bottleneck), jnp.float32),
        "bc1": s * jax.random.normal(ks[5], (classifier_bottleneck,), jnp.float32),
        "wc2": s * jax.random.normal(ks[6], (classifier_bottleneck, n_adapters), jnp.float32),
        "bc2": s * jax.random.normal(ks[7], (n_adapters,), jnp.float32),
    }


if __name__ == "__main__":
    B, S, D = 2, 256, 128
    N_ADAPTERS = 3
    ADAPTER_BOTTLENECK = 32
    CLASSIFIER_BOTTLENECK = 64

    key = jax.random.PRNGKey(0)
    k_x, k_p = jax.random.split(key)
    x = jax.random.normal(k_x, (B, S, D), jnp.float32)
    params = _init_params(k_p, n_adapters=N_ADAPTERS, d=D,
                          adapter_bottleneck=ADAPTER_BOTTLENECK,
                          classifier_bottleneck=CLASSIFIER_BOTTLENECK)

    ref_mixed, ref_logits = _reference(x, params)

    # exact-semantics check: f32 matmul operands, f32 logits output
    mixed32, logits32 = adapter_mix_layer(x, params, tm=256, matmul_dtype=jnp.float32)
    jax.block_until_ready((mixed32, logits32))
    assert jnp.allclose(mixed32, ref_mixed, atol=2e-4, rtol=2e-4)
    assert jnp.allclose(logits32, ref_logits, atol=2e-4, rtol=2e-4)

    # fast path: bf16 MXU operands + bf16 logits writeback, f32 accumulation/LN/softmax
    mixed_bf, logits_bf = adapter_mix_layer(x, params, tm=512, matmul_dtype=jnp.bfloat16)
    jax.block_until_ready((mixed_bf, logits_bf))
    assert jnp.allclose(mixed_bf, ref_mixed, atol=3e-2, rtol=3e-2)
    assert jnp.allclose(logits_bf, ref_logits, atol=3e-2, rtol=3e-2)

    print("KERNEL_OK")
</pallas_src>

<mosaic_0001>
module attributes {stable_mosaic.version = 11 : i64} {
  func.func @_adapter_mix_kernel(%arg0: i32, %arg1: memref<256x128xf32, #tpu.memory_space<vmem>>, %arg2: memref<128x256xf32, #tpu.memory_space<vmem>>, %arg3: memref<1x128xf32, #tpu.memory_space<vmem>>, %arg4: memref<1x128xf32, #tpu.memory_space<vmem>>, %arg5: memref<1x128xf32, #tpu.memory_space<vmem>>, %arg6: memref<128x128xf32, #tpu.memory_space<vmem>>, %arg7: memref<128x256xf32, #tpu.memory_space<vmem>>, %arg8: memref<128x128xf32, #tpu.memory_space<vmem>>, %arg9: memref<1x128xf32, #tpu.memory_space<vmem>>, %arg10: memref<256x128xf32, #tpu.memory_space<vmem>>, %arg11: memref<256x128xf32, #tpu.memory_space<vmem>>) attributes {dimension_semantics = [#tpu.dimension_semantics<parallel>], iteration_bounds = array<i64: 2>, scalar_prefetch = 0 : i64, scratch_operands = 0 : i64, tpu.core_type = #tpu.core_type<tc>, window_params = [{transform_indices = @transform_0, window_bounds = array<i64: 256, 128>}, {pipeline_mode = #tpu.pipeline_mode<synchronous>, transform_indices = @transform_1, window_bounds = array<i64: 128, 256>}, {pipeline_mode = #tpu.pipeline_mode<synchronous>, transform_indices = @transform_2, window_bounds = array<i64: 1, 128>}, {pipeline_mode = #tpu.pipeline_mode<synchronous>, transform_indices = @transform_3, window_bounds = array<i64: 1, 128>}, {pipeline_mode = #tpu.pipeline_mode<synchronous>, transform_indices = @transform_4, window_bounds = array<i64: 1, 128>}, {pipeline_mode = #tpu.pipeline_mode<synchronous>, transform_indices = @transform_5, window_bounds = array<i64: 128, 128>}, {pipeline_mode = #tpu.pipeline_mode<synchronous>, transform_indices = @transform_6, window_bounds = array<i64: 128, 256>}, {pipeline_mode = #tpu.pipeline_mode<synchronous>, transform_indices = @transform_7, window_bounds = array<i64: 128, 128>}, {pipeline_mode = #tpu.pipeline_mode<synchronous>, transform_indices = @transform_8, window_bounds = array<i64: 1, 128>}, {transform_indices = @transform_9, window_bounds = array<i64: 256, 128>}, {transform_indices = @transform_10, window_bounds = array<i64: 256, 128>}]} {
    %c0 = arith.constant 0 : index
    %c0_0 = arith.constant 0 : index
    %0 = vector.load %arg1[%c0, %c0_0] : memref<256x128xf32, #tpu.memory_space<vmem>>, vector<256x128xf32>
    %c0_1 = arith.constant 0 : index
    %c0_2 = arith.constant 0 : index
    %1 = vector.load %arg2[%c0_1, %c0_2] : memref<128x256xf32, #tpu.memory_space<vmem>>, vector<128x256xf32>
    %cst = arith.constant dense<0.000000e+00> : vector<256x256xf32>
    %2 = tpu.matmul %0, %1, %cst {dimension_numbers = #tpu.dot_dimension_numbers<[1], [0], [0], [1], [0, 0, 1, 1], [], []>} : vector<256x128xf32>, vector<128x256xf32>, vector<256x256xf32> -> vector<256x256xf32>
    %3 = vector.extract_strided_slice %2 {offsets = [0, 0], sizes = [256, 128], strides = [1, 1]} : vector<256x256xf32> to vector<256x128xf32>
    %4 = vector.extract_strided_slice %2 {offsets = [0, 128], sizes = [256, 128], strides = [1, 1]} : vector<256x256xf32> to vector<256x128xf32>
    %c0_3 = arith.constant 0 : index
    %c0_4 = arith.constant 0 : index
    %5 = vector.load %arg5[%c0_3, %c0_4] : memref<1x128xf32, #tpu.memory_space<vmem>>, vector<1x128xf32>
    %6 = vector.broadcast %5 : vector<1x128xf32> to vector<256x128xf32>
    %7 = arith.addf %3, %6 : vector<256x128xf32>
    %8 = math.tanh %7 : vector<256x128xf32>
    %c0_5 = arith.constant 0 : index
    %c0_6 = arith.constant 0 : index
    %9 = vector.load %arg8[%c0_5, %c0_6] : memref<128x128xf32, #tpu.memory_space<vmem>>, vector<128x128xf32>
    %cst_7 = arith.constant dense<0.000000e+00> : vector<256x128xf32>
    %10 = tpu.matmul %8, %9, %cst_7 {dimension_numbers = #tpu.dot_dimension_numbers<[1], [0], [0], [1], [0, 0, 1, 1], [], []>} : vector<256x128xf32>, vector<128x128xf32>, vector<256x128xf32> -> vector<256x128xf32>
    %c0_8 = arith.constant 0 : index
    %c0_9 = arith.constant 0 : index
    %11 = vector.load %arg9[%c0_8, %c0_9] : memref<1x128xf32, #tpu.memory_space<vmem>>, vector<1x128xf32>
    %12 = vector.broadcast %11 : vector<1x128xf32> to vector<256x128xf32>
    %13 = arith.addf %10, %12 : vector<256x128xf32>
    %cst_10 = arith.constant dense<0xFF800000> : vector<256xf32>
    %14 = vector.multi_reduction <maximumf>, %13, %cst_10 [1] : vector<256x128xf32> to vector<256xf32>
    %15 = vector.shape_cast %14 : vector<256xf32> to vector<256x1xf32>
    %16 = vector.broadcast %15 : vector<256x1xf32> to vector<256x128xf32>
    %17 = arith.subf %13, %16 : vector<256x128xf32>
    %18 = math.exp %17 : vector<256x128xf32>
    %cst_11 = arith.constant dense<0.000000e+00> : vector<256xf32>
    %19 = vector.multi_reduction <add>, %18, %cst_11 [1] : vector<256x128xf32> to vector<256xf32>
    %20 = vector.shape_cast %19 : vector<256xf32> to vector<256x1xf32>
    %21 = vector.broadcast %20 : vector<256x1xf32> to vector<256x128xf32>
    %22 = arith.divf %18, %21 : vector<256x128xf32>
    %cst_12 = arith.constant dense<0.000000e+00> : vector<256xf32>
    %23 = vector.multi_reduction <add>, %0, %cst_12 [1] : vector<256x128xf32> to vector<256xf32>
    %24 = vector.shape_cast %23 : vector<256xf32> to vector<256x1xf32>
    %cst_13 = arith.constant 1.280000e+02 : f32
    %25 = vector.broadcast %cst_13 : f32 to vector<256x1xf32>
    %26 = arith.divf %24, %25 : vector<256x1xf32>
    %27 = vector.broadcast %26 : vector<256x1xf32> to vector<256x128xf32>
    %28 = arith.subf %0, %27 : vector<256x128xf32>
    %29 = arith.mulf %28, %28 : vector<256x128xf32>
    %cst_14 = arith.constant dense<0.000000e+00> : vector<256xf32>
    %30 = vector.multi_reduction <add>, %29, %cst_14 [1] : vector<256x128xf32> to vector<256xf32>
    %31 = vector.shape_cast %30 : vector<256xf32> to vector<256x1xf32>
    %cst_15 = arith.constant 1.280000e+02 : f32
    %32 = vector.broadcast %cst_15 : f32 to vector<256x1xf32>
    %33 = arith.divf %31, %32 : vector<256x1xf32>
    %cst_16 = arith.constant 9.99999974E-6 : f32
    %34 = vector.broadcast %cst_16 : f32 to vector<256x1xf32>
    %35 = arith.addf %33, %34 : vector<256x1xf32>
    %36 = math.rsqrt %35 : vector<256x1xf32>
    %37 = vector.broadcast %36 : vector<256x1xf32> to vector<256x128xf32>
    %38 = arith.mulf %37, %4 : vector<256x128xf32>
    %39 = arith.mulf %36, %26 : vector<256x1xf32>
    %c0_17 = arith.constant 0 : index
    %c0_18 = arith.constant 0 : index
    %40 = vector.load %arg3[%c0_17, %c0_18] : memref<1x128xf32, #tpu.memory_space<vmem>>, vector<1x128xf32>
    %41 = vector.broadcast %39 : vector<256x1xf32> to vector<256x128xf32>
    %42 = vector.broadcast %40 : vector<1x128xf32> to vector<256x128xf32>
    %43 = arith.mulf %41, %42 : vector<256x128xf32>
    %44 = arith.subf %38, %43 : vector<256x128xf32>
    %c0_19 = arith.constant 0 : index
    %c0_20 = arith.constant 0 : index
    %45 = vector.load %arg4[%c0_19, %c0_20] : memref<1x128xf32, #tpu.memory_space<vmem>>, vector<1x128xf32>
    %46 = vector.broadcast %45 : vector<1x128xf32> to vector<256x128xf32>
    %47 = arith.addf %44, %46 : vector<256x128xf32>
    %cst_21 = arith.constant 0.000000e+00 : f32
    %48 = vector.broadcast %cst_21 : f32 to vector<256x128xf32>
    %49 = arith.maximumf %47, %48 : vector<256x128xf32>
    %c0_22 = arith.constant 0 : index
    %c0_23 = arith.constant 0 : index
    %50 = vector.load %arg7[%c0_22, %c0_23] : memref<128x256xf32, #tpu.memory_space<vmem>>, vector<128x256xf32>
    %cst_24 = arith.constant dense<0.000000e+00> : vector<256x256xf32>
    %51 = tpu.matmul %22, %50, %cst_24 {dimension_numbers = #tpu.dot_dimension_numbers<[1], [0], [0], [1], [0, 0, 1, 1], [], []>} : vector<256x128xf32>, vector<128x256xf32>, vector<256x256xf32> -> vector<256x256xf32>
    %52 = vector.extract_strided_slice %51 {offsets = [0, 0], sizes = [256, 128], strides = [1, 1]} : vector<256x256xf32> to vector<256x128xf32>
    %53 = vector.extract_strided_slice %51 {offsets = [0, 128], sizes = [256, 128], strides = [1, 1]} : vector<256x256xf32> to vector<256x128xf32>
    %54 = arith.mulf %49, %52 : vector<256x128xf32>
    %c0_25 = arith.constant 0 : index
    %c0_26 = arith.constant 0 : index
    %55 = vector.load %arg6[%c0_25, %c0_26] : memref<128x128xf32, #tpu.memory_space<vmem>>, vector<128x128xf32>
    %cst_27 = arith.constant dense<0.000000e+00> : vector<256x128xf32>
    %56 = tpu.matmul %54, %55, %cst_27 {dimension_numbers = #tpu.dot_dimension_numbers<[1], [0], [0], [1], [0, 0, 1, 1], [], []>} : vector<256x128xf32>, vector<128x128xf32>, vector<256x128xf32> -> vector<256x128xf32>
    %57 = arith.addf %0, %56 : vector<256x128xf32>
    %58 = arith.addf %57, %53 : vector<256x128xf32>
    %c0_28 = arith.constant 0 : index
    %c0_29 = arith.constant 0 : index
    %59 = vector.load %arg10[%c0_28, %c0_29] : memref<256x128xf32, #tpu.memory_space<vmem>>, vector<256x128xf32>
    tpu.vector_store %arg10[%c0_28, %c0_29], %58 {strides = array<i32>} : memref<256x128xf32, #tpu.memory_space<vmem>>, vector<256x128xf32>,
    %c0_30 = arith.constant 0 : index
    %c0_31 = arith.constant 0 : index
    %60 = vector.load %arg11[%c0_30, %c0_31] : memref<256x128xf32, #tpu.memory_space<vmem>>, vector<256x128xf32>
    tpu.vector_store %arg11[%c0_30, %c0_31], %13 {strides = array<i32>} : memref<256x128xf32, #tpu.memory_space<vmem>>, vector<256x128xf32>,
    return
  }
  func.func @transform_0(%arg0: i32) -> (i32, i32) {
    %c0_i32 = arith.constant 0 : i32
    %c0_i32_0 = arith.constant 0 : i32
    return %arg0, %c0_i32 : i32, i32
  }
  func.func @transform_1(%arg0: i32) -> (i32, i32) {
    %c0_i32 = arith.constant 0 : i32
    %c0_i32_0 = arith.constant 0 : i32
    %c0_i32_1 = arith.constant 0 : i32
    return %c0_i32, %c0_i32_0 : i32, i32
  }
  func.func @transform_2(%arg0: i32) -> (i32, i32) {
    %c0_i32 = arith.constant 0 : i32
    %c0_i32_0 = arith.constant 0 : i32
    %c0_i32_1 = arith.constant 0 : i32
    return %c0_i32, %c0_i32_0 : i32, i32
  }
  func.func @transform_3(%arg0: i32) -> (i32, i32) {
    %c0_i32 = arith.constant 0 : i32
    %c0_i32_0 = arith.constant 0 : i32
    %c0_i32_1 = arith.constant 0 : i32
    return %c0_i32, %c0_i32_0 : i32, i32
  }
  func.func @transform_4(%arg0: i32) -> (i32, i32) {
    %c0_i32 = arith.constant 0 : i32
    %c0_i32_0 = arith.constant 0 : i32
    %c0_i32_1 = arith.constant 0 : i32
    return %c0_i32, %c0_i32_0 : i32, i32
  }
  func.func @transform_5(%arg0: i32) -> (i32, i32) {
    %c0_i32 = arith.constant 0 : i32
    %c0_i32_0 = arith.constant 0 : i32
    %c0_i32_1 = arith.constant 0 : i32
    return %c0_i32, %c0_i32_0 : i32, i32
  }
  func.func @transform_6(%arg0: i32) -> (i32, i32) {
    %c0_i32 = arith.constant 0 : i32
    %c0_i32_0 = arith.constant 0 : i32
    %c0_i32_1 = arith.constant 0 : i32
    return %c0_i32, %c0_i32_0 : i32, i32
  }
  func.func @transform_7(%arg0: i32) -> (i32, i32) {
    %c0_i32 = arith.constant 0 : i32
    %c0_i32_0 = arith.constant 0 : i32
    %c0_i32_1 = arith.constant 0 : i32
    return %c0_i32, %c0_i32_0 : i32, i32
  }
  func.func @transform_8(%arg0: i32) -> (i32, i32) {
    %c0_i32 = arith.constant 0 : i32
    %c0_i32_0 = arith.constant 0 : i32
    %c0_i32_1 = arith.constant 0 : i32
    return %c0_i32, %c0_i32_0 : i32, i32
  }
  func.func @transform_9(%arg0: i32) -> (i32, i32) {
    %c0_i32 = arith.constant 0 : i32
    %c0_i32_0 = arith.constant 0 : i32
    return %arg0, %c0_i32 : i32, i32
  }
  func.func @transform_10(%arg0: i32) -> (i32, i32) {
    %c0_i32 = arith.constant 0 : i32
    %c0_i32_0 = arith.constant 0 : i32
    return %arg0, %c0_i32 : i32, i32
  }
}

</mosaic_0001>

<bundles_post_ra>
// kernel: tpu_custom_call.1
= control target key start
LH: loop header
LB: loop body
LE: loop exit
PB: predicated region body
PF: predicated region fallthrough
CT: control target
= control target key end

     0   :  { %s5841_s0 = inlined_call_operand.hbm [shape: f32[512,128], index: 0, kind: input, shape index: {}]   ;;  %s5842_s1 = inlined_call_operand.hbm [shape: f32[128,256], index: 1, kind: input, shape index: {}]   ;;  %s5843_s2 = inlined_call_operand.vmem [shape: f32[1,128], index: 2, kind: input, shape index: {}]   ;;  %s5844_s3 = inlined_call_operand.vmem [shape: f32[1,128], index: 3, kind: input, shape index: {}]   ;;  %s5845_s4 = inlined_call_operand.vmem [shape: f32[1,128], index: 4, kind: input, shape index: {}]   ;;  %s5846_s5 = inlined_call_operand.hbm [shape: f32[128,128], index: 5, kind: input, shape index: {}]   ;;  %s5847_s6 = inlined_call_operand.hbm [shape: f32[128,256], index: 6, kind: input, shape index: {}]   ;;  %s5848_s7 = inlined_call_operand.hbm [shape: f32[128,128], index: 7, kind: input, shape index: {}]   ;;  %s5849_s8 = inlined_call_operand.vmem [shape: f32[1,128], index: 8, kind: input, shape index: {}]   ;;  %s5850_s9 = inlined_call_operand.hbm [shape: f32[512,128], index: 9, kind: output, shape index: {0}]   ;;  %s5851_s10 = inlined_call_operand.hbm [shape: f32[512,128], index: 10, kind: output, shape index: {1}]  }
   0x1   :  { %5857 = sst [smem:[#allocation43_spill]] %s5841_s0 }
   0x2   :  { %5858 = sst [smem:[#allocation44_spill]] %s5842_s1 }
   0x3   :  { %5859 = sst [smem:[#allocation45_spill]] %s5846_s5 }
   0x4   :  { %5860 = sst [smem:[#allocation46_spill]] %s5847_s6 }
   0x5   :  { %5861 = sst [smem:[#allocation47_spill]] %s5848_s7 }
   0x6   :  { %16 = vsyncpa [#allocation3], 0 }
   0x7   :  { %18 = vsyncpa [#allocation3 + $0x1], 0 }
   0x8   :  { %19 = vsyncpa [#allocation6], 0 }
   0x9   :  { %20 = vsyncpa [#allocation9], 0 }
   0xa   :  { %21 = vsyncpa [#allocation4], 0 }
   0xb   :  { %23 = vsyncpa [#allocation4 + $0x1], 0 }
   0xc   :  { %24 = vsyncpa [#allocation13], 0 }
   0xd   :  { %26 = vsyncpa [#allocation13 + $0x1], 0  ;;  %s4022_s13 = smov 0   ;;  %s4024_s14 = smov 0  }
   0xe   :  { %s4026_s15 = smov 0   ;;  %s4028_s16 = smov 0  }
   0xf LB: > { %s4043_s17 = sadd.s32 4294967295, %s3954_s16   ;;  %s3199_s18 = sadd.s32 4294967294, %s3954_s16   ;;  %s3954_s16 = sphi %s4028_s16, %s5935_s16   ;;  %s3950_s15 = sphi %s4026_s15, %s5934_s15   ;;  %s3946_s14 = sphi %s4024_s14, %s5933_s14   ;;  %s3942_s13 = sphi %s4022_s13, %s5932_s13  }
  0x10   : > { %p52_p0 = scmp.ne.s32.totalorder %s3946_s14, %s3942_s13  ;;  %p53_p1 = scmp.eq.s32.totalorder %s4043_s17, 0 }
  0x11   : > { %p244_p2 = scmp.eq.s32.totalorder %s4043_s17, 1  ;;  %p250_p3 = scmp.eq.s32.totalorder %s3199_s18, 1 }
  0x12   : > { %p4052_p4 = por %p53_p1, %p52_p0  ;;  %p3200_p5 = scmp.ge.s32.totalorder %s3954_s16, 1 }
  0x13   : > { %p4057_p6 = por %p250_p3, %p52_p0  ;;  %p283_p7 = scmp.lt.s32.totalorder %s3954_s16, 3 }
  0x14   : > { %s5864_s1 = sld [smem:[#allocation44_spill]]  ;;  %s3956_s25 = smov [#allocation5]  }
  0x15   : > { %p4065_p8 = pnand %p3200_p5, %p283_p7  ;;  %s296_s26 = sshll.u32 %s3956_s25, 4  ;;  %s297_s26 = int_to_ptr.vmem [resolvable:$true] %s296_s26 }
  0x16   : > { %s5867_s6 = sld [smem:[#allocation46_spill]]  ;;  %s3957_s11 = smov 256  }
  0x17   : > { %p3282_p9 = pneg %p4065_p8  ;;  %s3958_s12 = smov 16  }
  0x18   : > { %s3959_s18 = smov [#allocation8]   ;;  %s5868_s5 = sld [smem:[#allocation45_spill]] }
  0x19   : > { %p4073_p10 = pnand %p3282_p9, %p53_p1  ;;  %s333_s21 = sshll.u32 %s3959_s18, 4  ;;  %s334_s21 = int_to_ptr.vmem [resolvable:$true] %s333_s21 }
  0x1a   : > { %s294_s23 = sshll.u32 %s5864_s1, 4  ;;  %s3960_s28 = smov [#allocation7]   ;;  %s295_s23 = int_to_ptr.hbm [resolvable:$true] %s294_s23 }
  0x1b   : > { %3285 = dma.hbm_to_vmem [thread:$0]  (!%p4073_p10), %s295_s23, 4096, %s297_s26, [#allocation6], %s3957_s11, %s3957_s11, %s3958_s12  }
  0x1c   : > { %s331_s30 = sshll.u32 %s5867_s6, 4  ;;  %s319_s29 = sshll.u32 %s3960_s28, 4  ;;  %s332_s30 = int_to_ptr.hbm [resolvable:$true] %s331_s30  ;;  %s320_s29 = int_to_ptr.vmem [resolvable:$true] %s319_s29 }
  0x1d   : > { %3291 = dma.hbm_to_vmem [thread:$0]  (!%p4073_p10), %s332_s30, 4096, %s334_s21, [#allocation9], %s3957_s11, %s3957_s11, %s3958_s12  }
  0x1e   : > { %s317_s1 = sshll.u32 %s5868_s5, 4  ;;  %s5869_s7 = sld [smem:[#allocation47_spill]]  ;;  %s318_s1 = int_to_ptr.hbm [resolvable:$true] %s317_s1 }
  0x1f   : > { %s5852_s22 = smov 128   ;;  %s5853_s25 = smov 8  }
  0x20   : > { %3288 = dma.hbm_to_vmem [thread:$0]  (!%p4073_p10), %s318_s1, 2048, %s320_s29, [#allocation6], %s5852_s22, %s5852_s22, %s5853_s25  }
  0x21   : > { %s3963_s30 = smov [#allocation10]   ;;  %s4102_s12 = sadd.s32 1, %s3954_s16  }
  0x22   : > { %s347_s11 = sshll.u32 %s3963_s30, 4  ;;  %s39_s21 = sadd.s32 1, %s3950_s15  ;;  %s348_s11 = int_to_ptr.vmem [resolvable:$true] %s347_s11 }
  0x23   : > { %s36_s28 = ssub.s32 %s3954_s16, %s4102_s12  ;;  %p46_p12 = scmp.ne.s32.totalorder %s3950_s15, %s3946_s14 }
  0x24   : > { %s345_s18 = sshll.u32 %s5869_s7, 4  ;;  %p37_p13 = scmp.eq.s32.totalorder %s36_s28, 0  ;;  %s346_s18 = int_to_ptr.hbm [resolvable:$true] %s345_s18 }
  0x25   : > { %3294 = dma.hbm_to_vmem [thread:$0]  (!%p4073_p10), %s346_s18, 2048, %s348_s11, [#allocation9], %s5852_s22, %s5852_s22, %s5853_s25  }
  0x26   : > { %p47_p0 = scmp.eq.s32.totalorder %s3954_s16, 0  ;;  %p4112_p3 = por %p244_p2, %p46_p12 }
  0x27   : > { %p3310_p5 = scmp.lt.s32.totalorder %s3954_s16, 2  ;;  %s364_s27 = sand.u32 1, %s3950_s15  }
  0x28   : > { %s4118_s29 = scalar_select %p37_p13, %s3950_s15, %s39_s21  }
  0x29   : > { %p48_p7 = por %p47_p0, %p46_p12  ;;  %s3206_s23 = sshll.u32 %s364_s27, 8 }
  0x2a   : > { %s3225_s26 = sshll.u32 %s3954_s16, 8  ;;  %s5871_s0 = sld [smem:[#allocation43_spill]] }
  0x2b   : > { %s368_s22 = scalar_lea.vmem [#allocation2], %s3206_s23  ;;  %p4125_p2 = pnand %p3310_p5, %p48_p7 }
  0x2c   : > { %s376_s25 = sshll.u32 %s368_s22, 4  ;;  %s365_s21 = scalar_lea.sflag [#allocation3], %s364_s27  ;;  %s377_s25 = int_to_ptr.vmem [resolvable:$true] %s376_s25 }
  0x2d   : > { %p3822_p10 = pneg %p4125_p2 }
  0x30   : > { %s373_s11 = scalar_lea.hbm %s5871_s0, %s3225_s26  ;;  %s3825_s22 = scalar_lea.hbm %s5871_s0, 512 }
  0x31   : > { %s374_s28 = sshll.u32 %s373_s11, 4  ;;  %s375_s28 = int_to_ptr.hbm [resolvable:$true] %s374_s28 }
  0x32   : > { %s3818_s6 = sshra.s32 %s375_s28, 4  ;;  %s3819_s6 = int_to_ptr.hbm [resolvable:$true] %s3818_s6 }
  0x33   : > { %s3820_s7 = scalar_lea.hbm %s3819_s6, 256  ;;  %p3826_p0 = scmp.lt.s32.totalorder %s3819_s6, %s5871_s0 }
  0x34   : > { %p3821_p9 = scmp.ne.s32.totalorder %s3819_s6, %s3820_s7  ;;  %p3827_p5 = scmp.lt.s32.totalorder %s3825_s22, %s3820_s7 }
  0x36   : > { %p3823_p12 = pnand %p3822_p10, %p3821_p9  ;;  %p3828_p7 = por %p3827_p5, %p3826_p0 }
  0x38   : > { %p3824_p13 = pneg %p3823_p12 }
  0x3a   : > { %p3829_p11 = pnand %p3828_p7, %p3824_p13 }
  0x3c   : > { %3832 = shalt.err (!%p3829_p11)
}
  0x3d   : > { %s5873_s27 = smov 8   ;;  %s5874_s11 = smov 128  }
  0x3e   : > { %3298 = dma.hbm_to_vmem [thread:$0]  (!%p4125_p2), %s375_s28, 4096, %s377_s25, %s365_s21, %s5874_s11, %s5874_s11, %s5873_s27  }
  0x3f   : > { %388 = sbr.rel (%p4065_p8) target bundleno = 1533 (0x5fd), region = 56 }
  0x44   : > { %s4145_s26 = sand.u32 1, %s3946_s14  }
  0x45   : > { %s4148_s6 = sshll.u32 %s4145_s26, 8  ;;  %s391_s7 = scalar_lea.sflag [#allocation3], %s4145_s26 }
  0x46   : > { %s4152_s23 = scalar_lea.vmem [#allocation2], %s4148_s6 }
  0x47   : > { %3921 = dma.done.wait (%p4052_p4), %s391_s7, 4096  }
  0x48   : > { %3923 = vsyncadd (%p4052_p4), %s391_s7, 4294963200 }
  0x49   : > { %3925 = dma.done.wait (%p53_p1), [#allocation6], 6144  }
  0x4a   : > { %3927 = vsyncadd (%p53_p1), [#allocation6], 4294961152 }
  0x4b   : > { %3929 = dma.done.wait (%p53_p1), [#allocation9], 6144  }
  0x4c   : > { %3931 = vsyncadd (%p53_p1), [#allocation9], 4294961152  ;;  %v522_v0 = vld [vmem:[#allocation5 + $0xf0] sm:$0xff]  ;;  %v520_v1 = vld [vmem:[#allocation5 + $0xe0] sm:$0xff]  ;;  %s4362_s28 = scalar_lea.vmem [#allocation12], %s4148_s6  ;;  %s5245_s27 = scalar_lea.vmem [#allocation11], %s4148_s6 }
  0x4d   : > { %524 = vmatpush.msra.mxu0 %v522_v0  ;;  %3228 = vmatpush.msra.mxu2 %v522_v0  ;;  %v518_v2 = vld [vmem:[#allocation5 + $0xd0] sm:$0xff]  ;;  %v516_v3 = vld [vmem:[#allocation5 + $0xc0] sm:$0xff]  ;;  %v833_v18 = vld [vmem:[#allocation10 + $0x78] sm:$0xff]  ;;  %s3226_s22 = sshll.u32 %s4043_s17, 8  ;;  %s3052_s6 = sshll.u32 %s4362_s28, 4  ;;  %s3053_s6 = int_to_ptr.vmem [resolvable:$true] %s3052_s6 }
  0x4e   : > { %v514_v4 = vld [vmem:[#allocation5 + $0xb0] sm:$0xff]  ;;  %v512_v5 = vld [vmem:[#allocation5 + $0xa0] sm:$0xff]  ;;  %v831_v20 = vld [vmem:[#allocation10 + $0x68] sm:$0xff]  ;;  %s3051_s11 = scalar_lea.hbm %s5851_s10, %s3226_s22  ;;  %s3023_s5 = scalar_lea.sflag [#allocation13], %s4145_s26 }
  0x4f   : > { %525 = vmatpush.msra.mxu0 %v520_v1  ;;  %3229 = vmatpush.msra.mxu2 %v520_v1  ;;  %v510_v6 = vld [vmem:[#allocation5 + $0x90] sm:$0xff]  ;;  %v508_v7 = vld [vmem:[#allocation5 + $0x80] sm:$0xff]  ;;  %v4175_v22 = vld [vmem:[%s4152_s23 + $0x8] sm:$0xff]  ;;  %s3054_s7 = sshll.u32 %s3051_s11, 4  ;;  %s3868_s0 = scalar_lea.hbm %s5851_s10, 512  ;;  %s3055_s7 = int_to_ptr.hbm [resolvable:$true] %s3054_s7 }
  0x50   : > { %v506_v8 = vld [vmem:[#allocation5 + $0x70] sm:$0xff]  ;;  %v504_v9 = vld [vmem:[#allocation5 + $0x60] sm:$0xff]  ;;  %v4178_v23 = vld [vmem:[%s4152_s23 + $0x88] sm:$0xff]  ;;  %s3862_s19 = sshra.s32 %s3055_s7, 4  ;;  %s3863_s19 = int_to_ptr.hbm [resolvable:$true] %s3862_s19 }
  0x51   : > { %526 = vmatpush.msra.mxu0 %v518_v2  ;;  %3230 = vmatpush.msra.mxu2 %v518_v2  ;;  %v502_v10 = vld [vmem:[#allocation5 + $0x50] sm:$0xff]  ;;  %v500_v11 = vld [vmem:[#allocation5 + $0x40] sm:$0xff]  ;;  %v829_v24 = vld [vmem:[#allocation10 + $0x58] sm:$0xff]  ;;  %s3864_s24 = scalar_lea.hbm %s3863_s19, 256  ;;  %p3869_p11 = scmp.lt.s32.totalorder %s3863_s19, %s5851_s10 }
  0x52   : > { %v498_v12 = vld [vmem:[#allocation5 + $0x30] sm:$0xff]  ;;  %v496_v13 = vld [vmem:[#allocation5 + $0x20] sm:$0xff]  ;;  %v827_v28 = vld [vmem:[#allocation10 + $0x48] sm:$0xff]  ;;  %p3865_p1 = scmp.ne.s32.totalorder %s3863_s19, %s3864_s24  ;;  %p3870_p2 = scmp.lt.s32.totalorder %s3868_s0, %s3864_s24 }
  0x53   : > { %527 = vmatpush.msra.mxu0 %v516_v3  ;;  %3231 = vmatpush.msra.mxu2 %v516_v3  ;;  %v494_v14 = vld [vmem:[#allocation5 + $0x10] sm:$0xff]  ;;  %v492_v15 = vld [vmem:[#allocation5] sm:$0xff]  ;;  %v4191_v29 = vld [vmem:[%s4152_s23 + $0x18] sm:$0xff] }
  0x54   : > { %v4167_v16 = vld [vmem:[%s4152_s23] sm:$0xff]  ;;  %v832_v19 = vld [vmem:[#allocation10 + $0x70] sm:$0xff]  ;;  %v4194_v30 = vld [vmem:[%s4152_s23 + $0x98] sm:$0xff]  ;;  %p3866_p4 = pnand %p3865_p1, %p4112_p3  ;;  %p3871_p9 = por %p3870_p2, %p3869_p11 }
  0x55   : > { %528 = vmatpush.msra.mxu0 %v514_v4  ;;  %3232 = vmatpush.msra.mxu2 %v514_v4  ;;  %v4170_v17 = vld [vmem:[%s4152_s23 + $0x80] sm:$0xff]  ;;  %v828_v25 = vld [vmem:[#allocation10 + $0x50] sm:$0xff]  ;;  %v825_v34 = vld [vmem:[#allocation10 + $0x38] sm:$0xff] }
  0x56   : > { %v830_v21 = vld [vmem:[#allocation10 + $0x60] sm:$0xff]  ;;  %v4183_v26 = vld [vmem:[%s4152_s23 + $0x10] sm:$0xff]  ;;  %v4207_v35 = vld [vmem:[%s4152_s23 + $0x28] sm:$0xff]  ;;  %p3867_p8 = pneg %p3866_p4 }
  0x57   : > { %529 = vmatpush.msra.mxu0 %v512_v5  ;;  %3233 = vmatpush.msra.mxu2 %v512_v5  ;;  %v4186_v27 = vld [vmem:[%s4152_s23 + $0x90] sm:$0xff]  ;;  %v826_v31 = vld [vmem:[#allocation10 + $0x40] sm:$0xff]  ;;  %v4210_v36 = vld [vmem:[%s4152_s23 + $0xa8] sm:$0xff] }
  0x58   : > { %v4199_v32 = vld [vmem:[%s4152_s23 + $0x20] sm:$0xff]  ;;  %v824_v37 = vld [vmem:[#allocation10 + $0x30] sm:$0xff]  ;;  %v823_v40 = vld [vmem:[#allocation10 + $0x28] sm:$0xff]  ;;  %p3872_p10 = pnand %p3871_p9, %p3867_p8 }
  0x59   : > { %530 = vmatpush.msra.mxu0 %v510_v6  ;;  %3234 = vmatpush.msra.mxu2 %v510_v6  ;;  %v4202_v33 = vld [vmem:[%s4152_s23 + $0xa0] sm:$0xff]  ;;  %v4215_v38 = vld [vmem:[%s4152_s23 + $0x30] sm:$0xff]  ;;  %v4223_v41 = vld [vmem:[%s4152_s23 + $0x38] sm:$0xff] }
  0x5a   : > { %v4218_v39 = vld [vmem:[%s4152_s23 + $0xb0] sm:$0xff]  ;;  %v4226_v42 = vld [vmem:[%s4152_s23 + $0xb8] sm:$0xff]  ;;  %v822_v43 = vld [vmem:[#allocation10 + $0x20] sm:$0xff] }
  0x5b   : > { %531 = vmatpush.msra.mxu0 %v508_v7  ;;  %3235 = vmatpush.msra.mxu2 %v508_v7  ;;  %v4231_v44 = vld [vmem:[%s4152_s23 + $0x40] sm:$0xff]  ;;  %v821_v46 = vld [vmem:[#allocation10 + $0x18] sm:$0xff]  ;;  %v4239_v47 = vld [vmem:[%s4152_s23 + $0x48] sm:$0xff] }
  0x5c   : > { %v4234_v45 = vld [vmem:[%s4152_s23 + $0xc0] sm:$0xff]  ;;  %v4242_v48 = vld [vmem:[%s4152_s23 + $0xc8] sm:$0xff]  ;;  %v820_v49 = vld [vmem:[#allocation10 + $0x10] sm:$0xff] }
  0x5d   : > { %532 = vmatpush.msra.mxu0 %v506_v8  ;;  %3236 = vmatpush.msra.mxu2 %v506_v8  ;;  %v4247_v50 = vld [vmem:[%s4152_s23 + $0x50] sm:$0xff]  ;;  %v819_v52 = vld [vmem:[#allocation10 + $0x8] sm:$0xff]  ;;  %v4255_v53 = vld [vmem:[%s4152_s23 + $0x58] sm:$0xff] }
  0x5e   : > { %v4250_v51 = vld [vmem:[%s4152_s23 + $0xd0] sm:$0xff]  ;;  %v4258_v54 = vld [vmem:[%s4152_s23 + $0xd8] sm:$0xff]  ;;  %v4263_v55 = vld [vmem:[%s4152_s23 + $0x60] sm:$0xff] }
  0x5f   : > { %533 = vmatpush.msra.mxu0 %v504_v9  ;;  %3237 = vmatpush.msra.mxu2 %v504_v9  ;;  %v4266_v56 = vld [vmem:[%s4152_s23 + $0xe0] sm:$0xff]  ;;  %v4271_v58 = vld [vmem:[%s4152_s23 + $0x68] sm:$0xff]  ;;  %v4279_v60 = vld [vmem:[%s4152_s23 + $0x70] sm:$0xff] }
  0x60   : > { %v818_v57 = vld [vmem:[#allocation10] sm:$0xff]  ;;  %v4274_v59 = vld [vmem:[%s4152_s23 + $0xe8] sm:$0xff]  ;;  %v4282_v61 = vld [vmem:[%s4152_s23 + $0xf0] sm:$0xff] }
  0x61   : > { %534 = vmatpush.msra.mxu0 %v502_v10  ;;  %3238 = vmatpush.msra.mxu2 %v502_v10  ;;  %v4287_v62 = vld [vmem:[%s4152_s23 + $0x78] sm:$0xff]  ;;  %v4297_v0 = vld [vmem:[%s5845_s4] ss:$0 sm:$0xff] }
  0x62   : > { %v4290_v63 = vld [vmem:[%s4152_s23 + $0xf8] sm:$0xff] }
  0x63   : > { %535 = vmatpush.msra.mxu0 %v500_v11  ;;  %3239 = vmatpush.msra.mxu2 %v500_v11 }
  0x65   : > { %536 = vmatpush.msra.mxu0 %v498_v12  ;;  %3240 = vmatpush.msra.mxu2 %v498_v12 }
  0x67   : > { %537 = vmatpush.msra.mxu0 %v496_v13  ;;  %3241 = vmatpush.msra.mxu2 %v496_v13 }
  0x69   : > { %538 = vmatpush.msra.mxu0 %v494_v14  ;;  %3242 = vmatpush.msra.mxu2 %v494_v14 }
  0x6b   : > { %539 = vmatpush.msra.mxu0 %v492_v15  ;;  %3243 = vmatpush.msra.mxu2 %v492_v15 }
  0x6c   : > { %540 = vmatmul.f32.vlgmr.msra.gmra.mxu0 %v4167_v16  ;;  %588 = vmatmul.f32.vlgmr.msra.gmra.mxu2 %v4170_v17 }
  0x6d   : > { %838 = vmatpush.msrb.mxu2 %v833_v18 }
  0x6f   : > { %839 = vmatpush.msrb.mxu2 %v832_v19 }
  0x71   : > { %840 = vmatpush.msrb.mxu2 %v831_v20 }
  0x73   : > { %841 = vmatpush.msrb.mxu2 %v830_v21 }
  0x74   : > { %543 = vmatmul.f32.gmra.mxu0 %v4175_v22  ;;  %591 = vmatmul.f32.gmra.mxu2 %v4178_v23 }
  0x75   : > { %842 = vmatpush.msrb.mxu2 %v829_v24 }
  0x77   : > { %843 = vmatpush.msrb.mxu2 %v828_v25 }
  0x79   : > { %844 = vmatpush.msrb.mxu2 %v827_v28 }
  0x7b   : > { %845 = vmatpush.msrb.mxu2 %v826_v31 }
  0x7c   : > { %546 = vmatmul.f32.gmra.mxu0 %v4183_v26  ;;  %594 = vmatmul.f32.gmra.mxu2 %v4186_v27 }
  0x7d   : > { %846 = vmatpush.msrb.mxu2 %v825_v34 }
  0x7f   : > { %847 = vmatpush.msrb.mxu2 %v824_v37 }
  0x81   : > { %848 = vmatpush.msrb.mxu2 %v823_v40 }
  0x83   : > { %849 = vmatpush.msrb.mxu2 %v822_v43 }
  0x84   : > { %549 = vmatmul.f32.gmra.mxu0 %v4191_v29  ;;  %597 = vmatmul.f32.gmra.mxu2 %v4194_v30 }
  0x85   : > { %850 = vmatpush.msrb.mxu2 %v821_v46 }
  0x87   : > { %851 = vmatpush.msrb.mxu2 %v820_v49 }
  0x89   : > { %852 = vmatpush.msrb.mxu2 %v819_v52 }
  0x8b   : > { %853 = vmatpush.msrb.mxu2 %v818_v57 }
  0x8c   : > { %552 = vmatmul.f32.gmra.mxu0 %v4199_v32  ;;  %600 = vmatmul.f32.gmra.mxu2 %v4202_v33 }
  0x94   : > { %555 = vmatmul.f32.gmra.mxu0 %v4207_v35  ;;  %603 = vmatmul.f32.gmra.mxu2 %v4210_v36 }
  0x9c   : > { %558 = vmatmul.f32.gmra.mxu0 %v4215_v38  ;;  %606 = vmatmul.f32.gmra.mxu2 %v4218_v39 }
  0xa4   : > { %561 = vmatmul.f32.gmra.mxu0 %v4223_v41  ;;  %609 = vmatmul.f32.gmra.mxu2 %v4226_v42 }
  0xac   : > { %564 = vmatmul.f32.gmra.mxu0 %v4231_v44  ;;  %612 = vmatmul.f32.gmra.mxu2 %v4234_v45 }
  0xb4   : > { %567 = vmatmul.f32.gmra.mxu0 %v4239_v47  ;;  %615 = vmatmul.f32.gmra.mxu2 %v4242_v48 }
  0xbc   : > { %570 = vmatmul.f32.gmra.mxu0 %v4247_v50  ;;  %618 = vmatmul.f32.gmra.mxu2 %v4250_v51 }
  0xc4   : > { %573 = vmatmul.f32.gmra.mxu0 %v4255_v53  ;;  %621 = vmatmul.f32.gmra.mxu2 %v4258_v54 }
  0xcc   : > { %576 = vmatmul.f32.gmra.mxu0 %v4263_v55  ;;  %624 = vmatmul.f32.gmra.mxu2 %v4266_v56 }
  0xd4   : > { %579 = vmatmul.f32.gmra.mxu0 %v4271_v58  ;;  %627 = vmatmul.f32.gmra.mxu2 %v4274_v59 }
  0xdc   : > { %582 = vmatmul.f32.gmra.mxu0 %v4279_v60  ;;  %630 = vmatmul.f32.gmra.mxu2 %v4282_v61 }
  0xe4   : > { %585 = vmatmul.f32.gmra.mxu0 %v4287_v62  ;;  %633 = vmatmul.f32.gmra.mxu2 %v4290_v63 }
  0xe9   : > { %v541_v1 = vpop.f32.mrf.mxu0 }
  0xea   : > { %v754_v2 = vadd.f32 %v4297_v0, %v541_v1 }
  0xec   : > { %3363 = vtanh.f32 %v754_v2 }
  0xef   : > { %v4300_v3 = vpop.f32.mrf.mxu2 }
  0xf1   : > { %v544_v4 = vpop.f32.mrf.mxu0 }
  0xf2   : > { %v3364_v5 = vpop.eup %3363  ;;  %v755_v6 = vadd.f32 %v4297_v0, %v544_v4 }
  0xf3   : > { %854 = vmatmul.f32.vlgmr.msrb.gmra.mxu2 %v3364_v5 }
  0xf4   : > { %3365 = vtanh.f32 %v755_v6 }
  0xf7   : > { %v4303_v7 = vpop.f32.mrf.mxu2 }
  0xf9   : > { %v547_v8 = vpop.f32.mrf.mxu0 }
  0xfa   : > { %v3366_v9 = vpop.eup %3365  ;;  %v756_v10 = vadd.f32 %v4297_v0, %v547_v8 }
  0xfb   : > { %857 = vmatmul.f32.gmra.mxu2 %v3366_v9 }
  0xfc   : > { %3367 = vtanh.f32 %v756_v10 }
  0xff   : > { %v4306_v11 = vpop.f32.mrf.mxu2 }
 0x101   : > { %v550_v12 = vpop.f32.mrf.mxu0 }
 0x102   : > { %v3368_v13 = vpop.eup %3367  ;;  %v757_v14 = vadd.f32 %v4297_v0, %v550_v12 }
 0x103   : > { %860 = vmatmul.f32.gmra.mxu2 %v3368_v13 }
 0x104   : > { %3369 = vtanh.f32 %v757_v14 }
 0x107   : > { %v4309_v15 = vpop.f32.mrf.mxu2 }
 0x109   : > { %v553_v18 = vpop.f32.mrf.mxu0 }
 0x10a   : > { %v3370_v19 = vpop.eup %3369  ;;  %v758_v20 = vadd.f32 %v4297_v0, %v553_v18 }
 0x10b   : > { %863 = vmatmul.f32.gmra.mxu2 %v3370_v19 }
 0x10c   : > { %3371 = vtanh.f32 %v758_v20 }
 0x10f   : > { %v4312_v21 = vpop.f32.mrf.mxu2 }
 0x111   : > { %v556_v24 = vpop.f32.mrf.mxu0 }
 0x112   : > { %v3372_v25 = vpop.eup %3371  ;;  %v759_v28 = vadd.f32 %v4297_v0, %v556_v24 }
 0x113   : > { %866 = vmatmul.f32.gmra.mxu2 %v3372_v25 }
 0x114   : > { %3373 = vtanh.f32 %v759_v28 }
 0x117   : > { %v4315_v31 = vpop.f32.mrf.mxu2 }
 0x119   : > { %v559_v34 = vpop.f32.mrf.mxu0 }
 0x11a   : > { %v3374_v37 = vpop.eup %3373  ;;  %v760_v40 = vadd.f32 %v4297_v0, %v559_v34 }
 0x11b   : > { %869 = vmatmul.f32.gmra.mxu2 %v3374_v37 }
 0x11c   : > { %3375 = vtanh.f32 %v760_v40 }
 0x11f   : > { %v4318_v43 = vpop.f32.mrf.mxu2 }
 0x121   : > { %v562_v46 = vpop.f32.mrf.mxu0 }
 0x122   : > { %v3376_v49 = vpop.eup %3375  ;;  %v761_v52 = vadd.f32 %v4297_v0, %v562_v46 }
 0x123   : > { %872 = vmatmul.f32.gmra.mxu2 %v3376_v49 }
 0x124   : > { %3377 = vtanh.f32 %v761_v52 }
 0x127   : > { %v4321_v57 = vpop.f32.mrf.mxu2 }
 0x129   : > { %v565_v1 = vpop.f32.mrf.mxu0 }
 0x12a   : > { %v3378_v2 = vpop.eup %3377  ;;  %v762_v4 = vadd.f32 %v4297_v0, %v565_v1 }
 0x12b   : > { %875 = vmatmul.f32.gmra.mxu2 %v3378_v2 }
 0x12c   : > { %3379 = vtanh.f32 %v762_v4 }
 0x12f   : > { %v4324_v5 = vpop.f32.mrf.mxu2 }
 0x131   : > { %v568_v6 = vpop.f32.mrf.mxu0 }
 0x132   : > { %v3380_v8 = vpop.eup %3379  ;;  %v763_v9 = vadd.f32 %v4297_v0, %v568_v6 }
 0x133   : > { %878 = vmatmul.f32.gmra.mxu2 %v3380_v8 }
 0x134   : > { %3381 = vtanh.f32 %v763_v9 }
 0x137   : > { %v4327_v10 = vpop.f32.mrf.mxu2 }
 0x139   : > { %v571_v12 = vpop.f32.mrf.mxu0 }
 0x13a   : > { %v3382_v13 = vpop.eup %3381  ;;  %v764_v14 = vadd.f32 %v4297_v0, %v571_v12 }
 0x13b   : > { %881 = vmatmul.f32.gmra.mxu2 %v3382_v13 }
 0x13c   : > { %3383 = vtanh.f32 %v764_v14  ;;  %v770_v14 = vadd.f32 %v4297_v0, %v4300_v3  ;;  %v772_v3 = vadd.f32 %v4297_v0, %v4306_v11 }
 0x13f   : > { %v4330_v18 = vpop.f32.mrf.mxu2 }
 0x141   : > { %v574_v19 = vpop.f32.mrf.mxu0 }
 0x142   : > { %v3384_v20 = vpop.eup %3383  ;;  %v765_v24 = vadd.f32 %v4297_v0, %v574_v19 }
 0x143   : > { %884 = vmatmul.f32.gmra.mxu2 %v3384_v20 }
 0x144   : > { %3385 = vtanh.f32 %v765_v24  ;;  %v771_v24 = vadd.f32 %v4297_v0, %v4303_v7 }
 0x147   : > { %v4333_v25 = vpop.f32.mrf.mxu2 }
 0x149   : > { %v577_v28 = vpop.f32.mrf.mxu0 }
 0x14a   : > { %v3386_v34 = vpop.eup %3385  ;;  %v766_v37 = vadd.f32 %v4297_v0, %v577_v28 }
 0x14b   : > { %887 = vmatmul.f32.gmra.mxu2 %v3386_v34  ;;  %v4354_v34 = vld [vmem:[%s5849_s8] ss:$0 sm:$0xff] }
 0x14c   : > { %3387 = vtanh.f32 %v766_v37 }
 0x14f   : > { %v4336_v40 = vpop.f32.mrf.mxu2 }
 0x151   : > { %v580_v46 = vpop.f32.mrf.mxu0 }
 0x152   : > { %v3388_v49 = vpop.eup %3387  ;;  %v767_v52 = vadd.f32 %v4297_v0, %v580_v46 }
 0x153   : > { %890 = vmatmul.f32.gmra.mxu2 %v3388_v49 }
 0x154   : > { %3389 = vtanh.f32 %v767_v52 }
 0x157   : > { %v4339_v1 = vpop.f32.mrf.mxu2 }
 0x159   : > { %v583_v2 = vpop.f32.mrf.mxu0 }
 0x15a   : > { %v3390_v4 = vpop.eup %3389  ;;  %v768_v6 = vadd.f32 %v4297_v0, %v583_v2  ;;  %v773_v2 = vadd.f32 %v4297_v0, %v4309_v15 }
 0x15b   : > { %893 = vmatmul.f32.gmra.mxu2 %v3390_v4 }
 0x15c   : > { %3391 = vtanh.f32 %v768_v6 }
 0x15f   : > { %v4343_v13 = vpop.f32.mrf.mxu2 }
 0x161   : > { %v586_v8 = vpop.f32.mrf.mxu0 }
 0x162   : > { %v3392_v9 = vpop.eup %3391  ;;  %v769_v12 = vadd.f32 %v4297_v0, %v586_v8  ;;  %v774_v8 = vadd.f32 %v4297_v0, %v4312_v21 }
 0x163   : > { %896 = vmatmul.f32.gmra.mxu2 %v3392_v9 }
 0x164   : > { %3393 = vtanh.f32 %v769_v12 }
 0x165   : > { %3395 = vtanh.f32 %v770_v14  ;;  %v775_v14 = vadd.f32 %v4297_v0, %v4315_v31 }
 0x166   : > { %3397 = vtanh.f32 %v771_v24 }
 0x167   : > { %v4347_v20 = vpop.f32.mrf.mxu2  ;;  %3399 = vtanh.f32 %v772_v3 }
 0x168   : > { %3401 = vtanh.f32 %v773_v2 }
 0x169   : > { %3403 = vtanh.f32 %v774_v8 }
 0x16a   : > { %v3394_v19 = vpop.eup %3393  ;;  %3405 = vtanh.f32 %v775_v14 }
 0x16b   : > { %899 = vmatmul.f32.gmra.mxu2 %v3394_v19  ;;  %v3396_v28 = vpop.eup %3395 }
 0x16c   : > { %v3398_v7 = vpop.eup %3397 }
 0x16d   : > { %v3400_v11 = vpop.eup %3399 }
 0x16e   : > { %v3402_v15 = vpop.eup %3401 }
 0x16f   : > { %v3404_v21 = vpop.eup %3403 }
 0x170   : > { %v3406_v31 = vpop.eup %3405 }
 0x173   : > { %902 = vmatmul.f32.gmra.mxu2 %v3396_v28  ;;  %v776_v28 = vadd.f32 %v4297_v0, %v4318_v43 }
 0x175   : > { %3407 = vtanh.f32 %v776_v28 }
 0x176   : > { %v855_v37 = vpop.f32.mrf.mxu2 }
 0x177   : > { %v4357_v46 = vadd.f32 %v4354_v34, %v855_v37 }
 0x179   : > { %2985 = vst [vmem:[%s4362_s28] sm:$0xff] %v4357_v46  ;;  %951 = vmax.xlane.f32.xlu0 %v4357_v46 }
 0x17b   : > { %905 = vmatmul.f32.gmra.mxu2 %v3398_v7  ;;  %v777_v7 = vadd.f32 %v4297_v0, %v4321_v57  ;;  %v3408_v43 = vpop.eup %3407 }
 0x17d   : > { %3409 = vtanh.f32 %v777_v7 }
 0x17e   : > { %v858_v49 = vpop.f32.mrf.mxu2 }
 0x17f   : > { %v4368_v52 = vadd.f32 %v4354_v34, %v858_v49 }
 0x181   : > { %2986 = vst [vmem:[%s4362_s28 + $0x8] sm:$0xff] %v4368_v52  ;;  %953 = vmax.xlane.f32.xlu0 %v4368_v52 }
 0x183   : > { %908 = vmatmul.f32.gmra.mxu2 %v3400_v11  ;;  %v778_v11 = vadd.f32 %v4297_v0, %v4324_v5  ;;  %v3410_v57 = vpop.eup %3409 }
 0x185   : > { %3411 = vtanh.f32 %v778_v11 }
 0x186   : > { %v861_v4 = vpop.f32.mrf.mxu2 }
 0x187   : > { %v4376_v6 = vadd.f32 %v4354_v34, %v861_v4 }
 0x189   : > { %2987 = vst [vmem:[%s4362_s28 + $0x10] sm:$0xff] %v4376_v6  ;;  %955 = vmax.xlane.f32.xlu1 %v4376_v6 }
 0x18b   : > { %911 = vmatmul.f32.gmra.mxu2 %v3402_v15  ;;  %v779_v15 = vadd.f32 %v4297_v0, %v4327_v10  ;;  %v3412_v5 = vpop.eup %3411 }
 0x18d   : > { %3413 = vtanh.f32 %v779_v15  ;;  %v513_v15 = vld [vmem:[#allocation5 + $0xa8] sm:$0xff] }
 0x18e   : > { %v864_v9 = vpop.f32.mrf.mxu2 }
 0x18f   : > { %v4384_v12 = vadd.f32 %v4354_v34, %v864_v9 }
 0x191   : > { %2988 = vst [vmem:[%s4362_s28 + $0x18] sm:$0xff] %v4384_v12  ;;  %957 = vmax.xlane.f32.xlu1 %v4384_v12 }
 0x193   : > { %914 = vmatmul.f32.gmra.mxu2 %v3404_v21  ;;  %v780_v21 = vadd.f32 %v4297_v0, %v4330_v18  ;;  %v521_v18 = vld [vmem:[#allocation5 + $0xe8] sm:$0xff] }
 0x195   : > { %3415 = vtanh.f32 %v780_v21  ;;  %v509_v21 = vld [vmem:[#allocation5 + $0x88] sm:$0xff] }
 0x196   : > { %v867_v19 = vpop.f32.mrf.mxu2 }
 0x197   : > { %v4392_v24 = vadd.f32 %v4354_v34, %v867_v19  ;;  %v3414_v19 = vpop.eup %3413 }
 0x199   : > { %2989 = vst [vmem:[%s4362_s28 + $0x20] sm:$0xff] %v4392_v24  ;;  %959 = vmax.xlane.f32.xlu2 %v4392_v24 }
 0x19b   : > { %917 = vmatmul.f32.gmra.mxu2 %v3406_v31  ;;  %v523_v31 = vld [vmem:[#allocation5 + $0xf8] sm:$0xff]  ;;  %v3416_v7 = vpop.eup %3415 }
 0x19c   : > { %3244 = vmatpush.msra.mxu3 %v523_v31  ;;  %637 = vmatpush.msra.mxu1 %v523_v31  ;;  %v783_v31 = vadd.f32 %v4297_v0, %v4339_v1 }
 0x19e   : > { %v870_v37 = vpop.f32.mrf.mxu2  ;;  %3245 = vmatpush.msra.mxu3 %v521_v18  ;;  %638 = vmatpush.msra.mxu1 %v521_v18  ;;  %v503_v18 = vld [vmem:[#allocation5 + $0x58] sm:$0xff] }
 0x19f   : > { %v4400_v3 = vadd.f32 %v4354_v34, %v870_v37  ;;  %v781_v37 = vadd.f32 %v4297_v0, %v4333_v25 }
 0x1a1   : > { %2990 = vst [vmem:[%s4362_s28 + $0x28] sm:$0xff] %v4400_v3  ;;  %961 = vmax.xlane.f32.xlu2 %v4400_v3  ;;  %3417 = vtanh.f32 %v781_v37  ;;  %v505_v37 = vld [vmem:[#allocation5 + $0x68] sm:$0xff] }
 0x1a3   : > { %920 = vmatmul.f32.gmra.mxu2 %v3408_v43  ;;  %v519_v43 = vld [vmem:[#allocation5 + $0xd8] sm:$0xff] }
 0x1a4   : > { %3246 = vmatpush.msra.mxu3 %v519_v43  ;;  %639 = vmatpush.msra.mxu1 %v519_v43  ;;  %v501_v43 = vld [vmem:[#allocation5 + $0x48] sm:$0xff] }
 0x1a6   : > { %v873_v49 = vpop.f32.mrf.mxu2 }
 0x1a7   : > { %v4408_v2 = vadd.f32 %v4354_v34, %v873_v49  ;;  %v517_v49 = vld [vmem:[#allocation5 + $0xc8] sm:$0xff] }
 0x1a8   : > { %3247 = vmatpush.msra.mxu3 %v517_v49  ;;  %640 = vmatpush.msra.mxu1 %v517_v49 }
 0x1a9   : > { %2991 = vst [vmem:[%s4362_s28 + $0x30] sm:$0xff] %v4408_v2  ;;  %963 = vmax.xlane.f32.xlu0 %v4408_v2 }
 0x1ab   : > { %923 = vmatmul.f32.gmra.mxu2 %v3410_v57  ;;  %v515_v57 = vld [vmem:[#allocation5 + $0xb8] sm:$0xff] }
 0x1ac   : > { %3248 = vmatpush.msra.mxu3 %v515_v57  ;;  %641 = vmatpush.msra.mxu1 %v515_v57  ;;  %v784_v57 = vadd.f32 %v4297_v0, %v4343_v13 }
 0x1ae   : > { %v876_v4 = vpop.f32.mrf.mxu2  ;;  %3249 = vmatpush.msra.mxu3 %v513_v15  ;;  %642 = vmatpush.msra.mxu1 %v513_v15  ;;  %v495_v15 = vld [vmem:[#allocation5 + $0x18] sm:$0xff] }
 0x1af   : > { %v4416_v8 = vadd.f32 %v4354_v34, %v876_v4  ;;  %v782_v4 = vadd.f32 %v4297_v0, %v4336_v40 }
 0x1b1   : > { %2992 = vst [vmem:[%s4362_s28 + $0x38] sm:$0xff] %v4416_v8  ;;  %965 = vmax.xlane.f32.xlu2 %v4416_v8  ;;  %3419 = vtanh.f32 %v782_v4  ;;  %v497_v4 = vld [vmem:[#allocation5 + $0x28] sm:$0xff] }
 0x1b2   : > { %3421 = vtanh.f32 %v783_v31 }
 0x1b3   : > { %926 = vmatmul.f32.gmra.mxu2 %v3412_v5  ;;  %v3418_v5 = vpop.eup %3417  ;;  %3423 = vtanh.f32 %v784_v57 }
 0x1b6   : > { %v879_v9 = vpop.f32.mrf.mxu2 }
 0x1b7   : > { %v4424_v14 = vadd.f32 %v4354_v34, %v879_v9  ;;  %v511_v9 = vld [vmem:[#allocation5 + $0x98] sm:$0xff] }
 0x1b8   : > { %3250 = vmatpush.msra.mxu3 %v511_v9  ;;  %643 = vmatpush.msra.mxu1 %v511_v9  ;;  %v493_v9 = vld [vmem:[#allocation5 + $0x8] sm:$0xff] }
 0x1b9   : > { %2993 = vst [vmem:[%s4362_s28 + $0x40] sm:$0xff] %v4424_v14 }
 0x1ba   : > { %3251 = vmatpush.msra.mxu3 %v509_v21  ;;  %644 = vmatpush.msra.mxu1 %v509_v21 }
 0x1bb   : > { %929 = vmatmul.f32.gmra.mxu2 %v3414_v19 }
 0x1be   : > { %v882_v10 = vpop.f32.mrf.mxu2 }
 0x1bf   : > { %v4431_v28 = vadd.f32 %v4354_v34, %v882_v10  ;;  %v507_v10 = vld [vmem:[#allocation5 + $0x78] sm:$0xff] }
 0x1c0   : > { %3252 = vmatpush.msra.mxu3 %v507_v10  ;;  %645 = vmatpush.msra.mxu1 %v507_v10 }
 0x1c1   : > { %2994 = vst [vmem:[%s4362_s28 + $0x48] sm:$0xff] %v4431_v28  ;;  %969 = vmax.xlane.f32.xlu0 %v4431_v28 }
 0x1c2   : > { %3253 = vmatpush.msra.mxu3 %v505_v37  ;;  %646 = vmatpush.msra.mxu1 %v505_v37 }
 0x1c3   : > { %932 = vmatmul.f32.gmra.mxu2 %v3416_v7  ;;  %v3420_v7 = vpop.eup %3419 }
 0x1c4   : > { %3254 = vmatpush.msra.mxu3 %v503_v18  ;;  %647 = vmatpush.msra.mxu1 %v503_v18 }
 0x1c6   : > { %v885_v11 = vpop.f32.mrf.mxu2  ;;  %3255 = vmatpush.msra.mxu3 %v501_v43  ;;  %648 = vmatpush.msra.mxu1 %v501_v43 }
 0x1c7   : > { %v4439_v25 = vadd.f32 %v4354_v34, %v885_v11  ;;  %v499_v11 = vld [vmem:[#allocation5 + $0x38] sm:$0xff] }
 0x1c8   : > { %3256 = vmatpush.msra.mxu3 %v499_v11  ;;  %649 = vmatpush.msra.mxu1 %v499_v11 }
 0x1c9   : > { %2995 = vst [vmem:[%s4362_s28 + $0x50] sm:$0xff] %v4439_v25  ;;  %971 = vmax.xlane.f32.xlu2 %v4439_v25 }
 0x1ca   : > { %3257 = vmatpush.msra.mxu3 %v497_v4  ;;  %650 = vmatpush.msra.mxu1 %v497_v4 }
 0x1cb   : > { %935 = vmatmul.f32.gmra.mxu2 %v3418_v5  ;;  %v3422_v5 = vpop.eup %3421 }
 0x1cc   : > { %3258 = vmatpush.msra.mxu3 %v495_v15  ;;  %651 = vmatpush.msra.mxu1 %v495_v15  ;;  %v3424_v10 = vpop.eup %3423 }
 0x1ce   : > { %v888_v19 = vpop.f32.mrf.mxu2  ;;  %3259 = vmatpush.msra.mxu3 %v493_v9  ;;  %652 = vmatpush.msra.mxu1 %v493_v9 }
 0x1cf   : > { %v4447_v40 = vadd.f32 %v4354_v34, %v888_v19  ;;  %701 = vmatmul.f32.vlgmr.msra.gmra.mxu3 %v4170_v17  ;;  %653 = vmatmul.f32.vlgmr.msra.gmra.mxu1 %v4167_v16  ;;  %v785_v19 = vadd.f32 %v4297_v0, %v4347_v20 }
 0x1d1   : > { %2996 = vst [vmem:[%s4362_s28 + $0x58] sm:$0xff] %v4447_v40  ;;  %3425 = vtanh.f32 %v785_v19 }
 0x1d3   : > { %938 = vmatmul.f32.gmra.mxu2 %v3420_v7 }
 0x1d6   : > { %v891_v49 = vpop.f32.mrf.mxu2 }
 0x1d7   : > { %v4454_v1 = vadd.f32 %v4354_v34, %v891_v49  ;;  %704 = vmatmul.f32.gmra.mxu3 %v4178_v23  ;;  %656 = vmatmul.f32.gmra.mxu1 %v4175_v22  ;;  %v3426_v17 = vpop.eup %3425 }
 0x1d9   : > { %2997 = vst [vmem:[%s4362_s28 + $0x60] sm:$0xff] %v4454_v1 }
 0x1db   : > { %941 = vmatmul.f32.gmra.mxu2 %v3422_v5 }
 0x1de   : > { %v894_v21 = vpop.f32.mrf.mxu2 }
 0x1df   : > { %v4461_v13 = vadd.f32 %v4354_v34, %v894_v21  ;;  %707 = vmatmul.f32.gmra.mxu3 %v4186_v27  ;;  %659 = vmatmul.f32.gmra.mxu1 %v4183_v26 }
 0x1e1   : > { %2998 = vst [vmem:[%s4362_s28 + $0x68] sm:$0xff] %v4461_v13 }
 0x1e3   : > { %944 = vmatmul.f32.gmra.mxu2 %v3424_v10 }
 0x1e6   : > { %v897_v31 = vpop.f32.mrf.mxu2 }
 0x1e7   : > { %v4470_v37 = vadd.f32 %v4354_v34, %v897_v31  ;;  %710 = vmatmul.f32.gmra.mxu3 %v4194_v30  ;;  %662 = vmatmul.f32.gmra.mxu1 %v4191_v29 }
 0x1e9   : > { %2999 = vst [vmem:[%s4362_s28 + $0x70] sm:$0xff] %v4470_v37 }
 0x1eb   : > { %947 = vmatmul.f32.gmra.mxu2 %v3426_v17 }
 0x1ec   : > { %v952_v18 = vpop.xlane.xlu0 %951 }
 0x1ed   : > { %v1015_v0 = vsub.f32 %v4357_v46, %v952_v18 }
 0x1ee   : > { %v900_v20 = vpop.f32.mrf.mxu2 }
 0x1ef   : > { %v1047_v7 = vmul.f32 1.442695, %v1015_v0  ;;  %v4478_v43 = vadd.f32 %v4354_v34, %v900_v20  ;;  %713 = vmatmul.f32.gmra.mxu3 %v4202_v33  ;;  %665 = vmatmul.f32.gmra.mxu1 %v4199_v32 }
 0x1f1   : > { %3427 = vpow2.f32 %v1047_v7  ;;  %3000 = vst [vmem:[%s4362_s28 + $0x78] sm:$0xff] %v4478_v43 }
 0x1f4   : > { %v954_v23 = vpop.xlane.xlu0 %953 }
 0x1f5   : > { %v1016_v49 = vsub.f32 %v4368_v52, %v954_v23 }
 0x1f6   : > { %v903_v11 = vpop.f32.mrf.mxu2 }
 0x1f7   : > { %v4485_v57 = vpop.eup %3427  ;;  %v1049_v46 = vmul.f32 1.442695, %v1016_v49  ;;  %v4488_v4 = vadd.f32 %v4354_v34, %v903_v11  ;;  %716 = vmatmul.f32.gmra.mxu3 %v4210_v36  ;;  %668 = vmatmul.f32.gmra.mxu1 %v4207_v35 }
 0x1f8   : > { %1111 = vadd.xlane.f32.xlu1 %v4485_v57 }
 0x1f9   : > { %3429 = vpow2.f32 %v1049_v46  ;;  %3001 = vst [vmem:[%s4362_s28 + $0x80] sm:$0xff] %v4488_v4 }
 0x1fc   : > { %v956_v27 = vpop.xlane.xlu1 %955 }
 0x1fd   : > { %v1017_v52 = vsub.f32 %v4376_v6, %v956_v27 }
 0x1fe   : > { %v906_v15 = vpop.f32.mrf.mxu2 }
 0x1ff   : > { %v4496_v5 = vpop.eup %3429  ;;  %v1051_v9 = vmul.f32 1.442695, %v1017_v52  ;;  %v4499_v21 = vadd.f32 %v4354_v34, %v906_v15  ;;  %719 = vmatmul.f32.gmra.mxu3 %v4218_v39  ;;  %671 = vmatmul.f32.gmra.mxu1 %v4215_v38 }
 0x200   : > { %967 = vmax.xlane.f32.xlu1 %v4424_v14  ;;  %1113 = vadd.xlane.f32.xlu0 %v4496_v5 }
 0x201   : > { %3431 = vpow2.f32 %v1051_v9  ;;  %3002 = vst [vmem:[%s4362_s28 + $0x88] sm:$0xff] %v4499_v21  ;;  %v2496_v9 = vld [vmem:[#allocation8 + $0xd0] sm:$0xff] }
 0x204   : > { %v958_v29 = vpop.xlane.xlu1 %957 }
 0x205   : > { %v1018_v30 = vsub.f32 %v4384_v12, %v958_v29  ;;  %v2497_v29 = vld [vmem:[#allocation8 + $0xd8] sm:$0xff] }
 0x206   : > { %v909_v6 = vpop.f32.mrf.mxu2 }
 0x207   : > { %v4508_v19 = vpop.eup %3431  ;;  %v1053_v10 = vmul.f32 1.442695, %v1018_v30  ;;  %v4511_v31 = vadd.f32 %v4354_v34, %v909_v6  ;;  %722 = vmatmul.f32.gmra.mxu3 %v4226_v42  ;;  %674 = vmatmul.f32.gmra.mxu1 %v4223_v41 }
 0x208   : > { %1115 = vadd.xlane.f32.xlu2 %v4508_v19  ;;  %973 = vmax.xlane.f32.xlu1 %v4447_v40 }
 0x209   : > { %3433 = vpow2.f32 %v1053_v10  ;;  %3003 = vst [vmem:[%s4362_s28 + $0x90] sm:$0xff] %v4511_v31  ;;  %975 = vmax.xlane.f32.xlu0 %v4454_v1  ;;  %v2492_v10 = vld [vmem:[#allocation8 + $0xb0] sm:$0xff] }
 0x20c   : > { %v960_v32 = vpop.xlane.xlu2 %959 }
 0x20d   : > { %v1019_v33 = vsub.f32 %v4392_v24, %v960_v32  ;;  %v2493_v32 = vld [vmem:[#allocation8 + $0xb8] sm:$0xff] }
 0x20e   : > { %v912_v12 = vpop.f32.mrf.mxu2 }
 0x20f   : > { %v4521_v17 = vpop.eup %3433  ;;  %v1055_v18 = vmul.f32 1.442695, %v1019_v33  ;;  %v4524_v36 = vadd.f32 %v4354_v34, %v912_v12  ;;  %725 = vmatmul.f32.gmra.mxu3 %v4234_v45  ;;  %677 = vmatmul.f32.gmra.mxu1 %v4231_v44  ;;  %v2490_v33 = vld [vmem:[#allocation8 + $0xa0] sm:$0xff]  ;;  %v2491_v12 = vld [vmem:[#allocation8 + $0xa8] sm:$0xff] }
 0x210   : > { %1117 = vadd.xlane.f32.xlu1 %v4521_v17  ;;  %977 = vmax.xlane.f32.xlu2 %v4461_v13 }
 0x211   : > { %3435 = vpow2.f32 %v1055_v18  ;;  %3004 = vst [vmem:[%s4362_s28 + $0x98] sm:$0xff] %v4524_v36  ;;  %981 = vmax.xlane.f32.xlu0 %v4478_v43  ;;  %v2488_v18 = vld [vmem:[#allocation8 + $0x90] sm:$0xff] }
 0x214   : > { %v962_v35 = vpop.xlane.xlu2 %961 }
 0x215   : > { %v1020_v24 = vsub.f32 %v4400_v3, %v962_v35  ;;  %v2489_v35 = vld [vmem:[#allocation8 + $0x98] sm:$0xff] }
 0x216   : > { %v915_v0 = vpop.f32.mrf.mxu2 }
 0x217   : > { %v4534_v20 = vpop.eup %3435  ;;  %v1057_v7 = vmul.f32 1.442695, %v1020_v24  ;;  %v4537_v39 = vadd.f32 %v4354_v34, %v915_v0  ;;  %728 = vmatmul.f32.gmra.mxu3 %v4242_v48  ;;  %680 = vmatmul.f32.gmra.mxu1 %v4239_v47  ;;  %v2486_v24 = vld [vmem:[#allocation8 + $0x80] sm:$0xff] }
 0x218   : > { %1655 = vadd.xlane.f32.xlu2 %v4167_v16  ;;  %979 = vmax.xlane.f32.xlu1 %v4470_v37 }
 0x219   : > { %3437 = vpow2.f32 %v1057_v7  ;;  %3005 = vst [vmem:[%s4362_s28 + $0xa0] sm:$0xff] %v4537_v39  ;;  %1119 = vadd.xlane.f32.xlu0 %v4534_v20  ;;  %v2484_v7 = vld [vmem:[#allocation8 + $0x70] sm:$0xff] }
 0x21c   : > { %v964_v3 = vpop.xlane.xlu0 %963 }
 0x21d   : > { %v1021_v23 = vsub.f32 %v4408_v2, %v964_v3  ;;  %v2485_v3 = vld [vmem:[#allocation8 + $0x78] sm:$0xff] }
 0x21e   : > { %v918_v49 = vpop.f32.mrf.mxu2 }
 0x21f   : > { %v4547_v11 = vpop.eup %3437  ;;  %v1059_v46 = vmul.f32 1.442695, %v1021_v23  ;;  %v4550_v42 = vadd.f32 %v4354_v34, %v918_v49  ;;  %731 = vmatmul.f32.gmra.mxu3 %v4250_v51  ;;  %683 = vmatmul.f32.gmra.mxu1 %v4247_v50  ;;  %v2501_v51 = vld [vmem:[#allocation8 + $0xf8] sm:$0xff]  ;;  %v2482_v23 = vld [vmem:[#allocation8 + $0x60] sm:$0xff]  ;;  %v2483_v49 = vld [vmem:[#allocation8 + $0x68] sm:$0xff] }
 0x220   : > { %1121 = vadd.xlane.f32.xlu2 %v4547_v11  ;;  %2615 = vmatpush.msrb.mxu0 %v2501_v51  ;;  %v2471_v51 = vld [vmem:[#allocation8 + $0x8] sm:$0xff] }
 0x221   : > { %3439 = vpow2.f32 %v1059_v46  ;;  %3006 = vst [vmem:[%s4362_s28 + $0xa8] sm:$0xff] %v4550_v42  ;;  %983 = vmax.xlane.f32.xlu0 %v4488_v4  ;;  %v2480_v46 = vld [vmem:[#allocation8 + $0x50] sm:$0xff] }
 0x224   : > { %v966_v16 = vpop.xlane.xlu2 %965 }
 0x225   : > { %v1022_v41 = vsub.f32 %v4416_v8, %v966_v16  ;;  %v2481_v16 = vld [vmem:[#allocation8 + $0x58] sm:$0xff] }
 0x226   : > { %v921_v2 = vpop.f32.mrf.mxu2 }
 0x227   : > { %v4559_v27 = vpop.eup %3439  ;;  %v1061_v52 = vmul.f32 1.442695, %v1022_v41  ;;  %v4562_v45 = vadd.f32 %v4354_v34, %v921_v2  ;;  %734 = vmatmul.f32.gmra.mxu3 %v4258_v54  ;;  %686 = vmatmul.f32.gmra.mxu1 %v4255_v53  ;;  %v2498_v53 = vld [vmem:[#allocation8 + $0xe0] sm:$0xff]  ;;  %v2499_v54 = vld [vmem:[#allocation8 + $0xe8] sm:$0xff] }
 0x228   : > { %1657 = vadd.xlane.f32.xlu2 %v4175_v22  ;;  %1123 = vadd.xlane.f32.xlu1 %v4559_v27  ;;  %v2478_v41 = vld [vmem:[#allocation8 + $0x40] sm:$0xff] }
 0x229   : > { %3441 = vpow2.f32 %v1061_v52  ;;  %3007 = vst [vmem:[%s4362_s28 + $0xb0] sm:$0xff] %v4562_v45  ;;  %985 = vmax.xlane.f32.xlu0 %v4499_v21  ;;  %2616 = vmatpush.msrb.mxu0 %v2499_v54  ;;  %v2477_v52 = vld [vmem:[#allocation8 + $0x38] sm:$0xff] }
 0x22b   : > { %2617 = vmatpush.msrb.mxu0 %v2497_v29 }
 0x22e   : > { %v924_v44 = vpop.f32.mrf.mxu2 }
 0x22f   : > { %v4571_v8 = vpop.eup %3441  ;;  %v4574_v15 = vadd.f32 %v4354_v34, %v924_v44  ;;  %737 = vmatmul.f32.gmra.mxu3 %v4266_v56  ;;  %689 = vmatmul.f32.gmra.mxu1 %v4263_v55  ;;  %v2494_v56 = vld [vmem:[#allocation8 + $0xc0] sm:$0xff]  ;;  %v2495_v55 = vld [vmem:[#allocation8 + $0xc8] sm:$0xff] }
 0x230   : > { %1659 = vadd.xlane.f32.xlu2 %v4183_v26  ;;  %v2500_v26 = vld [vmem:[#allocation8 + $0xf0] sm:$0xff]  ;;  %2618 = vmatpush.msrb.mxu0 %v2495_v55  ;;  %v2474_v44 = vld [vmem:[#allocation8 + $0x20] sm:$0xff]  ;;  %v3964_v55 = vmov 128.0  }
 0x231   : > { %3008 = vst [vmem:[%s4362_s28 + $0xb8] sm:$0xff] %v4574_v15  ;;  %1125 = vadd.xlane.f32.xlu0 %v4571_v8  ;;  %2502 = vmatpush.msrb.mxu3 %v2500_v26  ;;  %v2473_v26 = vld [vmem:[#allocation8 + $0x18] sm:$0xff] }
 0x232   : > { %2619 = vmatpush.msrb.mxu0 %v2493_v32 }
 0x233   : > { %2503 = vmatpush.msrb.mxu3 %v2498_v53 }
 0x234   : > { %2620 = vmatpush.msrb.mxu0 %v2491_v12 }
 0x235   : > { %2504 = vmatpush.msrb.mxu3 %v2496_v9  ;;  %v4629_v9 = vpop.xlane.xlu0 %969 }
 0x236   : > { %v927_v22 = vpop.f32.mrf.mxu2  ;;  %2621 = vmatpush.msrb.mxu0 %v2489_v35 }
 0x237   : > { %v4583_v47 = vadd.f32 %v4354_v34, %v927_v22  ;;  %2505 = vmatpush.msrb.mxu3 %v2494_v56  ;;  %692 = vmatmul.f32.gmra.mxu1 %v4271_v58  ;;  %v2475_v22 = vld [vmem:[#allocation8 + $0x28] sm:$0xff] }
 0x238   : > { %740 = vmatmul.f32.gmra.mxu3 %v4274_v59  ;;  %v2487_v59 = vld [vmem:[#allocation8 + $0x88] sm:$0xff] }
 0x239   : > { %3009 = vst [vmem:[%s4362_s28 + $0xc0] sm:$0xff] %v4583_v47  ;;  %987 = vmax.xlane.f32.xlu0 %v4511_v31  ;;  %2506 = vmatpush.msrb.mxu3 %v2492_v10 }
 0x23a   : > { %2622 = vmatpush.msrb.mxu0 %v2487_v59 }
 0x23b   : > { %2507 = vmatpush.msrb.mxu3 %v2490_v33 }
 0x23c   : > { %2623 = vmatpush.msrb.mxu0 %v2485_v3  ;;  %v4633_v32 = vpop.xlane.xlu2 %971 }
 0x23d   : > { %2508 = vmatpush.msrb.mxu3 %v2488_v18 }
 0x23e   : > { %v930_v48 = vpop.f32.mrf.mxu2  ;;  %2624 = vmatpush.msrb.mxu0 %v2483_v49 }
 0x23f   : > { %v4591_v50 = vadd.f32 %v4354_v34, %v930_v48  ;;  %2509 = vmatpush.msrb.mxu3 %v2486_v24  ;;  %695 = vmatmul.f32.gmra.mxu1 %v4279_v60  ;;  %v2472_v48 = vld [vmem:[#allocation8 + $0x10] sm:$0xff] }
 0x240   : > { %743 = vmatmul.f32.gmra.mxu3 %v4282_v61  ;;  %2625 = vmatpush.msrb.mxu0 %v2481_v16  ;;  %v2479_v61 = vld [vmem:[#allocation8 + $0x48] sm:$0xff] }
 0x241   : > { %3010 = vst [vmem:[%s4362_s28 + $0xc8] sm:$0xff] %v4591_v50  ;;  %989 = vmax.xlane.f32.xlu0 %v4524_v36  ;;  %2510 = vmatpush.msrb.mxu3 %v2484_v7 }
 0x242   : > { %2626 = vmatpush.msrb.mxu0 %v2479_v61 }
 0x243   : > { %2511 = vmatpush.msrb.mxu3 %v2482_v23 }
 0x244   : > { %2627 = vmatpush.msrb.mxu0 %v2477_v52 }
 0x245   : > { %2512 = vmatpush.msrb.mxu3 %v2480_v46 }
 0x246   : > { %v933_v30 = vpop.f32.mrf.mxu2  ;;  %2628 = vmatpush.msrb.mxu0 %v2475_v22 }
 0x247   : > { %v4599_v6 = vadd.f32 %v4354_v34, %v933_v30  ;;  %2513 = vmatpush.msrb.mxu3 %v2478_v41  ;;  %698 = vmatmul.f32.gmra.mxu1 %v4287_v62 }
 0x248   : > { %746 = vmatmul.f32.gmra.mxu3 %v4290_v63  ;;  %2629 = vmatpush.msrb.mxu0 %v2473_v26  ;;  %v2470_v63 = vld [vmem:[#allocation8] sm:$0xff] }
 0x249   : > { %3011 = vst [vmem:[%s4362_s28 + $0xd0] sm:$0xff] %v4599_v6  ;;  %991 = vmax.xlane.f32.xlu0 %v4537_v39 }
 0x24a   : > { %2630 = vmatpush.msrb.mxu0 %v2471_v51 }
 0x24e   : > { %v936_v58 = vpop.f32.mrf.mxu2 }
 0x24f   : > { %v4607_v0 = vadd.f32 %v4354_v34, %v936_v58 }
 0x251   : > { %3012 = vst [vmem:[%s4362_s28 + $0xd8] sm:$0xff] %v4607_v0  ;;  %993 = vmax.xlane.f32.xlu0 %v4550_v42  ;;  %v2476_v42 = vld [vmem:[#allocation8 + $0x30] sm:$0xff] }
 0x252   : > { %2514 = vmatpush.msrb.mxu3 %v2476_v42 }
 0x254   : > { %2515 = vmatpush.msrb.mxu3 %v2474_v44 }
 0x256   : > { %v939_v60 = vpop.f32.mrf.mxu2  ;;  %2516 = vmatpush.msrb.mxu3 %v2472_v48 }
 0x257   : > { %v4615_v2 = vadd.f32 %v4354_v34, %v939_v60 }
 0x258   : > { %2517 = vmatpush.msrb.mxu3 %v2470_v63 }
 0x259   : > { %3013 = vst [vmem:[%s4362_s28 + $0xe0] sm:$0xff] %v4615_v2  ;;  %1667 = vadd.xlane.f32.xlu0 %v4215_v38 }
 0x25e   : > { %v942_v62 = vpop.f32.mrf.mxu2 }
 0x25f   : > { %v4623_v53 = vadd.f32 %v4354_v34, %v942_v62 }
 0x261   : > { %3014 = vst [vmem:[%s4362_s28 + $0xe8] sm:$0xff] %v4623_v53 }
 0x266   : > { %v945_v38 = vpop.f32.mrf.mxu2 }
 0x267   : > { %v946_v54 = vadd.f32 %v4354_v34, %v945_v38 }
 0x269   : > { %3015 = vst [vmem:[%s4362_s28 + $0xf0] sm:$0xff] %v946_v54 }
 0x26b   : > { %v1112_v29 = vpop.xlane.xlu1 %1111 }
 0x26c   : > { %3443 = vrcp.f32 %v1112_v29  ;;  %v1186_v59 = vand.u32 2147483648, %v1112_v29  ;;  %v1184_v23 = vand.u32 2147483647, %v1112_v29  ;;  %vm1180_vm1 = vweird.f32 %v1112_v29 }
 0x26d   : > { %3445 = vrcp.f32 %v3964_v55 }
 0x26e   : > { %v948_v30 = vpop.f32.mrf.mxu2  ;;  %v1187_v16 = vor.u32 1.1754944e-38, %v1186_v59  ;;  %vm1185_vm3 = vcmp.eq.f32.partialorder %v1184_v23, 8.507059e+37 }
 0x26f   : > { %v949_v56 = vadd.f32 %v4354_v34, %v948_v30 }
 0x271   : > { %3016 = vst [vmem:[%s4362_s28 + $0xf8] sm:$0xff] %v949_v56 }
 0x272   : > { %v3444_v10 = vpop.eup %3443 }
 0x273   : > { %v1176_v33 = vmul.f32 %v3444_v10, %v1112_v29  ;;  %v968_v12 = vpop.xlane.xlu1 %967  ;;  %v1114_v18 = vpop.xlane.xlu0 %1113  ;;  %vm1181_vm0 = vweird.f32 %v3444_v10 }
 0x274   : > { %v1023_v35 = vsub.f32 %v4424_v14, %v968_v12  ;;  %3447 = vrcp.f32 %v1114_v18  ;;  %v3446_v24 = vpop.eup %3445  ;;  %vm1182_vm2 = vmor %vm1180_vm1, %vm1181_vm0  ;;  %v1201_v62 = vand.u32 2147483648, %v1114_v18  ;;  %v1199_v51 = vand.u32 2147483647, %v1114_v18 }
 0x275   : > { %v1177_v58 = vsub.f32 1.0, %v1176_v33  ;;  %v1720_v49 = vmul.f32 128.0, %v3446_v24  ;;  %vm1195_vm5 = vweird.f32 %v1114_v18  ;;  %vm1724_vm8 = vweird.f32 %v3446_v24 }
 0x276   : > { %v1063_v7 = vmul.f32 1.442695, %v1023_v35  ;;  %v1202_v30 = vor.u32 1.1754944e-38, %v1201_v62  ;;  %vm1200_vm7 = vcmp.eq.f32.partialorder %v1199_v51, 8.507059e+37 }
 0x277   : > { %v1178_v3 = vmul.f32 %v3444_v10, %v1177_v58  ;;  %v1721_v48 = vsub.f32 1.0, %v1720_v49  ;;  %v4648_v58 = vpop.f32.mrf.mxu3 }
 0x278   : > { %3449 = vpow2.f32 %v1063_v7  ;;  %5875 = vst [vmem:[#allocation19_spill] sm:$0xff] %v4648_v58 }
 0x279   : > { %v1179_v34 = vadd.f32 %v3444_v10, %v1178_v3  ;;  %v1722_v54 = vmul.f32 %v3446_v24, %v1721_v48 }
 0x27a   : > { %v3448_v46 = vpop.eup %3447 }
 0x27b   : > { %v1191_v60 = vmul.f32 %v3448_v46, %v1114_v18  ;;  %v1116_v41 = vpop.xlane.xlu2 %1115  ;;  %v4636_v61 = vpop.xlane.xlu1 %973  ;;  %v1183_v14 = vsel %vm1182_vm2, %v3444_v10, %v1179_v34  ;;  %vm1196_vm4 = vweird.f32 %v3448_v46  ;;  %v1723_v59 = vadd.f32 %v3446_v24, %v1722_v54  ;;  %v4652_v34 = vld [vmem:[%s4152_s23 + $0x18] sm:$0xff] }
 0x27c   : > { %3451 = vrcp.f32 %v1116_v41  ;;  %v4638_v42 = vpop.xlane.xlu0 %975  ;;  %v1188_v52 = vsel %vm1185_vm3, %v1187_v16, %v1183_v14  ;;  %vm1197_vm6 = vmor %vm1195_vm5, %vm1196_vm4  ;;  %v1216_v7 = vand.u32 2147483648, %v1116_v41  ;;  %v1214_v23 = vand.u32 2147483647, %v1116_v41 }
 0x27d   : > { %v1192_v44 = vsub.f32 1.0, %v1191_v60  ;;  %v1189_v22 = vmul.f32 %v4485_v57, %v1188_v52  ;;  %v4655_v49 = vsel %vm1724_vm8, %v3446_v24, %v1723_v59  ;;  %vm1210_vm10 = vweird.f32 %v1116_v41 }
 0x27e   : > { %v4641_v26 = vpop.eup %3449  ;;  %vm1215_vm12 = vcmp.eq.f32.partialorder %v1214_v23, 8.507059e+37 }
 0x27f   : > { %v1193_v63 = vmul.f32 %v3448_v46, %v1192_v44  ;;  %2518 = vmatmul.f32.vlgmr.msrb.gmra.mxu3 %v1189_v22  ;;  %2631 = vmatmul.f32.vlgmr.msrb.gmra.mxu0 %v1189_v22  ;;  %v4663_v54 = vpop.f32.mrf.mxu3 }
 0x280   : > { %1127 = vadd.xlane.f32.xlu2 %v4641_v26  ;;  %5876 = vst [vmem:[#allocation20_spill] sm:$0xff] %v4663_v54 }
 0x281   : > { %v1194_v38 = vadd.f32 %v3448_v46, %v1193_v63  ;;  %v3622_v63 = vld [vmem:[%s4152_s23] sm:$0xff] }
 0x282   : > { %v3452_v29 = vpop.eup %3451 }
 0x283   : > { %v1206_v56 = vmul.f32 %v3452_v29, %v1116_v41  ;;  %v1118_v55 = vpop.xlane.xlu1 %1117  ;;  %v4644_v57 = vpop.xlane.xlu2 %977  ;;  %v1198_v10 = vsel %vm1197_vm6, %v3448_v46, %v1194_v38  ;;  %vm1211_vm9 = vweird.f32 %v3452_v29 }
 0x284   : > { %3453 = vrcp.f32 %v1118_v55  ;;  %v4646_v33 = vpop.xlane.xlu0 %981  ;;  %v1203_v12 = vsel %vm1200_vm7, %v1202_v30, %v1198_v10  ;;  %vm1212_vm11 = vmor %vm1210_vm10, %vm1211_vm9  ;;  %v1231_v51 = vand.u32 2147483648, %v1118_v55  ;;  %v4666_v30 = vld [vmem:[%s4152_s23 + $0x20] sm:$0xff]  ;;  %vm1225_vm14 = vweird.f32 %v1118_v55 }
 0x285   : > { %v1207_v35 = vsub.f32 1.0, %v1206_v56  ;;  %v1204_v18 = vmul.f32 %v4496_v5, %v1203_v12  ;;  %v1217_v5 = vor.u32 1.1754944e-38, %v1216_v7 }
 0x287   : > { %v1208_v3 = vmul.f32 %v3452_v29, %v1207_v35  ;;  %2521 = vmatmul.f32.gmra.mxu3 %v1204_v18  ;;  %2634 = vmatmul.f32.gmra.mxu0 %v1204_v18 }
 0x288   : > { %1661 = vadd.xlane.f32.xlu2 %v4652_v34 }
 0x289   : > { %v1209_v46 = vadd.f32 %v3452_v29, %v1208_v3 }
 0x28a   : > { %v3454_v16 = vpop.eup %3453 }
 0x28b   : > { %v1221_v60 = vmul.f32 %v3454_v16, %v1118_v55  ;;  %v1656_v14 = vpop.xlane.xlu2 %1655  ;;  %v1213_v52 = vsel %vm1212_vm11, %v3452_v29, %v1209_v46  ;;  %vm1226_vm13 = vweird.f32 %v3454_v16  ;;  %v1229_v29 = vand.u32 2147483647, %v1118_v55  ;;  %v4669_v35 = vpop.xlane.xlu1 %979 }
 0x28c   : > { %v4658_v44 = vmul.f32 %v4655_v49, %v1656_v14  ;;  %v1120_v22 = vpop.xlane.xlu0 %1119  ;;  %v1218_v48 = vsel %vm1215_vm12, %v1217_v5, %v1213_v52  ;;  %vm1227_vm15 = vmor %vm1225_vm14, %vm1226_vm13  ;;  %v4675_v14 = vld [vmem:[%s4152_s23 + $0x28] sm:$0xff] }
 0x28d   : > { %v1222_v62 = vsub.f32 1.0, %v1221_v60  ;;  %3455 = vrcp.f32 %v1120_v22  ;;  %v1219_v24 = vmul.f32 %v4508_v19, %v1218_v48  ;;  %v1232_v19 = vor.u32 1.1754944e-38, %v1231_v51 }
 0x28e   : > { %v1758_v41 = vsub.f32 %v3622_v63, %v4658_v44  ;;  %vm1230_vm0 = vcmp.eq.f32.partialorder %v1229_v29, 8.507059e+37  ;;  %v1246_v55 = vand.u32 2147483648, %v1120_v22  ;;  %v1244_v52 = vand.u32 2147483647, %v1120_v22 }
 0x28f   : > { %v1223_v38 = vmul.f32 %v3454_v16, %v1222_v62  ;;  %2524 = vmatmul.f32.gmra.mxu3 %v1219_v24  ;;  %2637 = vmatmul.f32.gmra.mxu0 %v1219_v24  ;;  %v1024_v62 = vsub.f32 %v4431_v28, %v4629_v9  ;;  %vm1240_vm2 = vweird.f32 %v1120_v22 }
 0x290   : > { %1663 = vadd.xlane.f32.xlu2 %v4666_v30  ;;  %v1790_v56 = vmul.f32 %v1758_v41, %v1758_v41  ;;  %v1247_v51 = vor.u32 1.1754944e-38, %v1246_v55  ;;  %vm1245_vm4 = vcmp.eq.f32.partialorder %v1244_v52, 8.507059e+37  ;;  %v4695_v55 = vld [vmem:[%s4152_s23 + $0x38] sm:$0xff] }
 0x291   : > { %v1224_v10 = vadd.f32 %v3454_v16, %v1223_v38  ;;  %v1065_v9 = vmul.f32 1.442695, %v1024_v62 }
 0x292   : > { %1822 = vadd.xlane.f32.xlu1 %v1790_v56 }
 0x293   : > { %v3456_v12 = vpop.eup %3455  ;;  %v1122_v18 = vpop.xlane.xlu2 %1121  ;;  %v1228_v59 = vsel %vm1227_vm15, %v3454_v16, %v1224_v10  ;;  %v3625_v10 = vld [vmem:[%s4152_s23 + $0x8] sm:$0xff] }
 0x294   : > { %v1236_v7 = vmul.f32 %v3456_v12, %v1120_v22  ;;  %3457 = vrcp.f32 %v1122_v18  ;;  %v4671_v3 = vpop.xlane.xlu0 %983  ;;  %v1233_v23 = vsel %vm1230_vm0, %v1232_v19, %v1228_v59  ;;  %vm1241_vm1 = vweird.f32 %v3456_v12  ;;  %v4678_v16 = vpop.f32.mrf.mxu3 }
 0x295   : > { %v1234_v46 = vmul.f32 %v4521_v17, %v1233_v23  ;;  %5877 = vst [vmem:[#allocation21_spill] sm:$0xff] %v4678_v16  ;;  %vm1242_vm3 = vmor %vm1240_vm2, %vm1241_vm1  ;;  %v1261_v59 = vand.u32 2147483648, %v1122_v18  ;;  %v1259_v23 = vand.u32 2147483647, %v1122_v18  ;;  %vm1255_vm6 = vweird.f32 %v1122_v18 }
 0x296   : > { %v1237_v5 = vsub.f32 1.0, %v1236_v7 }
 0x297   : > { %2527 = vmatmul.f32.gmra.mxu3 %v1234_v46  ;;  %2640 = vmatmul.f32.gmra.mxu0 %v1234_v46  ;;  %vm1260_vm8 = vcmp.eq.f32.partialorder %v1259_v23, 8.507059e+37 }
 0x298   : > { %v1238_v60 = vmul.f32 %v3456_v12, %v1237_v5  ;;  %1665 = vadd.xlane.f32.xlu2 %v4675_v14 }
 0x29a   : > { %v3458_v48 = vpop.eup %3457  ;;  %995 = vmax.xlane.f32.xlu1 %v4562_v45  ;;  %v1239_v17 = vadd.f32 %v3456_v12, %v1238_v60  ;;  %v1025_v60 = vsub.f32 %v4439_v25, %v4633_v32 }
 0x29b   : > { %v1251_v24 = vmul.f32 %v3458_v48, %v1122_v18  ;;  %v1658_v63 = vpop.xlane.xlu2 %1657  ;;  %v4683_v41 = vpop.xlane.xlu1 %1123  ;;  %vm1256_vm5 = vweird.f32 %v3458_v48 }
 0x29c   : > { %v4686_v38 = vmul.f32 %v4655_v49, %v1658_v63  ;;  %3459 = vrcp.f32 %v4683_v41  ;;  %v4689_v29 = vpop.xlane.xlu0 %985  ;;  %v1243_v56 = vsel %vm1242_vm3, %v3456_v12, %v1239_v17  ;;  %vm1257_vm7 = vmor %vm1255_vm6, %vm1256_vm5  ;;  %v4700_v52 = vpop.f32.mrf.mxu3  ;;  %v1276_v25 = vand.u32 2147483648, %v4683_v41 }
 0x29d   : > { %v1252_v28 = vsub.f32 1.0, %v1251_v24  ;;  %v1248_v45 = vsel %vm1245_vm4, %v1247_v51, %v1243_v56  ;;  %3461 = vpow2.f32 %v1065_v9  ;;  %5878 = vst [vmem:[#allocation22_spill] sm:$0xff] %v4700_v52  ;;  %v1067_v32 = vmul.f32 1.442695, %v1025_v60 }
 0x29e   : > { %v1249_v22 = vmul.f32 %v4534_v20, %v1248_v45  ;;  %v1759_v19 = vsub.f32 %v3625_v10, %v4686_v38  ;;  %v1262_v20 = vor.u32 1.1754944e-38, %v1261_v59  ;;  %v3627_v45 = vld [vmem:[%s4152_s23 + $0x10] sm:$0xff]  ;;  %vm1270_vm10 = vweird.f32 %v4683_v41 }
 0x29f   : > { %v1253_v7 = vmul.f32 %v3458_v48, %v1252_v28 }
 0x2a0   : > { %2530 = vmatmul.f32.gmra.mxu3 %v1249_v22  ;;  %2643 = vmatmul.f32.gmra.mxu0 %v1249_v22  ;;  %v1791_v46 = vmul.f32 %v1759_v19, %v1759_v19 }
 0x2a1   : > { %v1254_v5 = vadd.f32 %v3458_v48, %v1253_v7  ;;  %v1277_v7 = vor.u32 1.1754944e-38, %v1276_v25 }
 0x2a2   : > { %v3460_v12 = vpop.eup %3459  ;;  %1824 = vadd.xlane.f32.xlu2 %v1791_v46  ;;  %1669 = vadd.xlane.f32.xlu1 %v4695_v55  ;;  %v1030_v46 = vsub.f32 %v4478_v43, %v4646_v33  ;;  %v4726_v33 = vld [vmem:[%s4152_s23 + $0x40] sm:$0xff] }
 0x2a3   : > { %v1266_v62 = vmul.f32 %v3460_v12, %v4683_v41  ;;  %v1660_v17 = vpop.xlane.xlu2 %1659  ;;  %v1258_v24 = vsel %vm1257_vm7, %v3458_v48, %v1254_v5  ;;  %vm1271_vm9 = vweird.f32 %v3460_v12  ;;  %v1274_v48 = vand.u32 2147483647, %v4683_v41  ;;  %v4711_v10 = vpop.eup %3461 }
 0x2a4   : > { %v4704_v18 = vmul.f32 %v4655_v49, %v1660_v17  ;;  %v1126_v63 = vpop.xlane.xlu0 %1125  ;;  %v1263_v51 = vsel %vm1260_vm8, %v1262_v20, %v1258_v24  ;;  %vm1272_vm11 = vmor %vm1270_vm10, %vm1271_vm9  ;;  %v4720_v60 = vpop.f32.mrf.mxu3 }
 0x2a5   : > { %v1267_v56 = vsub.f32 1.0, %v1266_v62  ;;  %3463 = vrcp.f32 %v1126_v63  ;;  %v1264_v28 = vmul.f32 %v4547_v11, %v1263_v51  ;;  %v1026_v11 = vsub.f32 %v4447_v40, %v4636_v61  ;;  %5879 = vst [vmem:[#allocation23_spill] sm:$0xff] %v4720_v60 }
 0x2a6   : > { %v1760_v9 = vsub.f32 %v3627_v45, %v4704_v18  ;;  %3465 = vpow2.f32 %v1067_v32  ;;  %vm1275_vm12 = vcmp.eq.f32.partialorder %v1274_v48, 8.507059e+37  ;;  %v1077_v62 = vmul.f32 1.442695, %v1030_v46 }
 0x2a7   : > { %v1268_v22 = vmul.f32 %v3460_v12, %v1267_v56  ;;  %v1291_v17 = vand.u32 2147483648, %v1126_v63  ;;  %v1289_v51 = vand.u32 2147483647, %v1126_v63  ;;  %vm1285_vm14 = vweird.f32 %v1126_v63 }
 0x2a8   : > { %2533 = vmatmul.f32.gmra.mxu3 %v1264_v28  ;;  %2646 = vmatmul.f32.gmra.mxu0 %v1264_v28  ;;  %v1792_v19 = vmul.f32 %v1760_v9, %v1760_v9  ;;  %v1031_v28 = vsub.f32 %v4488_v4, %v4671_v3  ;;  %v1028_v4 = vsub.f32 %v4461_v13, %v4644_v57 }
 0x2a9   : > { %v1269_v59 = vadd.f32 %v3460_v12, %v1268_v22  ;;  %v1292_v56 = vor.u32 1.1754944e-38, %v1291_v17  ;;  %vm1290_vm0 = vcmp.eq.f32.partialorder %v1289_v51, 8.507059e+37  ;;  %v2770_v17 = vld [vmem:[#allocation7 + $0x50] sm:$0xff] }
 0x2aa   : > { %997 = vmax.xlane.f32.xlu2 %v4574_v15  ;;  %1129 = vadd.xlane.f32.xlu1 %v4711_v10  ;;  %v1069_v15 = vmul.f32 1.442695, %v1026_v11 }
 0x2ab   : > { %v3464_v23 = vpop.eup %3463  ;;  %1826 = vadd.xlane.f32.xlu0 %v1792_v19  ;;  %v1273_v5 = vsel %vm1272_vm11, %v3460_v12, %v1269_v59  ;;  %v1029_v59 = vsub.f32 %v4470_v37, %v4669_v35  ;;  %v2775_v37 = vld [vmem:[#allocation7 + $0x78] sm:$0xff]  ;;  %v2774_v35 = vld [vmem:[#allocation7 + $0x70] sm:$0xff] }
 0x2ac   : > { %v1281_v20 = vmul.f32 %v3464_v23, %v1126_v63  ;;  %v1278_v41 = vsel %vm1275_vm12, %v1277_v7, %v1273_v5  ;;  %vm1286_vm13 = vweird.f32 %v3464_v23  ;;  %v4723_v43 = vpop.eup %3465  ;;  %3467 = vpow2.f32 %v1069_v15  ;;  %v4736_v22 = vpop.f32.mrf.mxu3  ;;  %2776 = vmatpush.msrb.mxu1 %v2775_v37  ;;  %v2771_v15 = vld [vmem:[#allocation7 + $0x58] sm:$0xff] }
 0x2ad   : > { %v1279_v40 = vmul.f32 %v4559_v27, %v1278_v41  ;;  %v1027_v27 = vsub.f32 %v4454_v1, %v4638_v42  ;;  %3469 = vpow2.f32 %v1077_v62  ;;  %vm1287_vm15 = vmor %vm1285_vm14, %vm1286_vm13  ;;  %5880 = vst [vmem:[#allocation24_spill] sm:$0xff] %v4736_v22  ;;  %v1079_v1 = vmul.f32 1.442695, %v1031_v28  ;;  %v4747_v42 = vld [vmem:[%s4152_s23 + $0x48] sm:$0xff] }
 0x2ae   : > { %v1282_v61 = vsub.f32 1.0, %v1281_v20  ;;  %v1075_v13 = vmul.f32 1.442695, %v1029_v59  ;;  %2777 = vmatpush.msrb.mxu1 %v2774_v35  ;;  %v4774_v20 = vpop.xlane.xlu0 %987  ;;  %v2773_v41 = vld [vmem:[#allocation7 + $0x68] sm:$0xff] }
 0x2af   : > { %v1071_v32 = vmul.f32 1.442695, %v1027_v27  ;;  %v2765_v59 = vld [vmem:[#allocation7 + $0x28] sm:$0xff] }
 0x2b0   : > { %v1283_v24 = vmul.f32 %v3464_v23, %v1282_v61  ;;  %2536 = vmatmul.f32.gmra.mxu3 %v1279_v40  ;;  %2649 = vmatmul.f32.gmra.mxu0 %v1279_v40  ;;  %v2772_v40 = vld [vmem:[#allocation7 + $0x60] sm:$0xff] }
 0x2b1   : > { %3471 = vpow2.f32 %v1071_v32  ;;  %2778 = vmatpush.msrb.mxu1 %v2773_v41  ;;  %v2764_v41 = vld [vmem:[#allocation7 + $0x20] sm:$0xff] }
 0x2b2   : > { %1671 = vadd.xlane.f32.xlu2 %v4726_v33  ;;  %1131 = vadd.xlane.f32.xlu1 %v4723_v43  ;;  %v1284_v12 = vadd.f32 %v3464_v23, %v1283_v24  ;;  %v4738_v63 = vpop.eup %3467  ;;  %3473 = vpow2.f32 %v1079_v1  ;;  %v2769_v24 = vld [vmem:[#allocation7 + $0x48] sm:$0xff] }
 0x2b3   : > { %999 = vmax.xlane.f32.xlu0 %v4583_v47  ;;  %v4740_v47 = vpop.eup %3469  ;;  %2779 = vmatpush.msrb.mxu1 %v2772_v40 }
 0x2b4   : > { %v1288_v45 = vsel %vm1287_vm15, %v3464_v23, %v1284_v12  ;;  %v4752_v48 = vpop.f32.mrf.mxu3  ;;  %v2768_v12 = vld [vmem:[#allocation7 + $0x40] sm:$0xff] }
 0x2b5   : > { %v1293_v9 = vsel %vm1290_vm0, %v1292_v56, %v1288_v45  ;;  %5881 = vst [vmem:[#allocation25_spill] sm:$0xff] %v4752_v48  ;;  %2780 = vmatpush.msrb.mxu1 %v2771_v15  ;;  %v2767_v56 = vld [vmem:[#allocation7 + $0x38] sm:$0xff] }
 0x2b6   : > { %v1294_v25 = vmul.f32 %v4571_v8, %v1293_v9  ;;  %v1073_v8 = vmul.f32 1.442695, %v1028_v4  ;;  %v4778_v51 = vpop.xlane.xlu0 %989 }
 0x2b7   : > { %v4750_v3 = vpop.eup %3471  ;;  %2781 = vmatpush.msrb.mxu1 %v2770_v17 }
 0x2b8   : > { %2539 = vmatmul.f32.gmra.mxu3 %v1294_v25  ;;  %2652 = vmatmul.f32.gmra.mxu0 %v1294_v25  ;;  %v4754_v19 = vpop.eup %3473  ;;  %3475 = vpow2.f32 %v1073_v8  ;;  %v2766_v25 = vld [vmem:[#allocation7 + $0x30] sm:$0xff] }
 0x2b9   : > { %3477 = vpow2.f32 %v1075_v13  ;;  %2782 = vmatpush.msrb.mxu1 %v2769_v24  ;;  %v2763_v24 = vld [vmem:[#allocation7 + $0x18] sm:$0xff] }
 0x2ba   : > { %1133 = vadd.xlane.f32.xlu1 %v4738_v63  ;;  %1141 = vadd.xlane.f32.xlu2 %v4740_v47 }
 0x2bb   : > { %1673 = vadd.xlane.f32.xlu0 %v4747_v42  ;;  %2783 = vmatpush.msrb.mxu1 %v2768_v12 }
 0x2bc   : > { %v4763_v11 = vpop.f32.mrf.mxu3 }
 0x2bd   : > { %5882 = vst [vmem:[#allocation26_spill] sm:$0xff] %v4763_v11  ;;  %2784 = vmatpush.msrb.mxu1 %v2767_v56  ;;  %v5030_v11 = vld [vmem:[%s4362_s28 + $0xf8] sm:$0xff] }
 0x2be   : > { %v4760_v57 = vpop.eup %3475  ;;  %v4787_v15 = vpop.xlane.xlu0 %991 }
 0x2bf   : > { %v4765_v7 = vpop.eup %3477  ;;  %2785 = vmatpush.msrb.mxu1 %v2766_v25 }
 0x2c1   : > { %2786 = vmatpush.msrb.mxu1 %v2765_v59 }
 0x2c2   : > { %1135 = vadd.xlane.f32.xlu1 %v4750_v3 }
 0x2c3   : > { %1143 = vadd.xlane.f32.xlu0 %v4754_v19  ;;  %2787 = vmatpush.msrb.mxu1 %v2764_v41 }
 0x2c4   : > { %v4768_v23 = vpop.f32.mrf.mxu3 }
 0x2c5   : > { %5883 = vst [vmem:[#allocation27_spill] sm:$0xff] %v4768_v23  ;;  %2788 = vmatpush.msrb.mxu1 %v2763_v24 }
 0x2ca   : > { %1137 = vadd.xlane.f32.xlu1 %v4760_v57 }
 0x2cc   : > { %v4770_v46 = vpop.f32.mrf.mxu3 }
 0x2cd   : > { %5884 = vst [vmem:[#allocation28_spill] sm:$0xff] %v4770_v46 }
 0x2d2   : > { %1139 = vadd.xlane.f32.xlu1 %v4765_v7 }
 0x2d4   : > { %v4772_v5 = vpop.f32.mrf.mxu3 }
 0x2d5   : > { %5885 = vst [vmem:[#allocation29_spill] sm:$0xff] %v4772_v5 }
 0x2dc   : > { %v4776_v61 = vpop.f32.mrf.mxu3 }
 0x2dd   : > { %5886 = vst [vmem:[#allocation30_spill] sm:$0xff] %v4776_v61 }
 0x2e4   : > { %v4783_v32 = vpop.f32.mrf.mxu3 }
 0x2e5   : > { %5887 = vst [vmem:[#allocation31_spill] sm:$0xff] %v4783_v32 }
 0x2ec   : > { %v4798_v59 = vpop.f32.mrf.mxu3 }
 0x2ed   : > { %5888 = vst [vmem:[#allocation32_spill] sm:$0xff] %v4798_v59 }
 0x2f3   : > { %v1128_v62 = vpop.xlane.xlu2 %1127 }
 0x2f4   : > { %3479 = vrcp.f32 %v1128_v62  ;;  %v1306_v4 = vand.u32 2147483648, %v1128_v62  ;;  %v1304_v37 = vand.u32 2147483647, %v1128_v62  ;;  %vm1300_vm2 = vweird.f32 %v1128_v62 }
 0x2f6   : > { %v1307_v17 = vor.u32 1.1754944e-38, %v1306_v4  ;;  %vm1305_vm4 = vcmp.eq.f32.partialorder %v1304_v37, 8.507059e+37  ;;  %v2760_v37 = vld [vmem:[#allocation7] sm:$0xff] }
 0x2fa   : > { %v3480_v27 = vpop.eup %3479 }
 0x2fb   : > { %v1296_v28 = vmul.f32 %v3480_v27, %v1128_v62  ;;  %v1662_v45 = vpop.xlane.xlu2 %1661  ;;  %vm1301_vm1 = vweird.f32 %v3480_v27  ;;  %v2762_v62 = vld [vmem:[#allocation7 + $0x10] sm:$0xff] }
 0x2fc   : > { %v4781_v9 = vmul.f32 %v4655_v49, %v1662_v45  ;;  %vm1302_vm3 = vmor %vm1300_vm2, %vm1301_vm1  ;;  %2789 = vmatpush.msrb.mxu1 %v2762_v62 }
 0x2fd   : > { %v1297_v1 = vsub.f32 1.0, %v1296_v28 }
 0x2fe   : > { %v1761_v8 = vsub.f32 %v4652_v34, %v4781_v9  ;;  %v1032_v34 = vsub.f32 %v4499_v21, %v4689_v29 }
 0x2ff   : > { %v1298_v13 = vmul.f32 %v3480_v27, %v1297_v1 }
 0x300   : > { %v1793_v35 = vmul.f32 %v1761_v8, %v1761_v8  ;;  %v1081_v21 = vmul.f32 1.442695, %v1032_v34  ;;  %v4812_v34 = vpop.f32.mrf.mxu3 }
 0x301   : > { %v1299_v40 = vadd.f32 %v3480_v27, %v1298_v13  ;;  %5889 = vst [vmem:[#allocation33_spill] sm:$0xff] %v4812_v34  ;;  %v4875_v34 = vld [vmem:[%s4152_s23 + $0x58] sm:$0xff] }
 0x302   : > { %1828 = vadd.xlane.f32.xlu1 %v1793_v35  ;;  %v1033_v35 = vsub.f32 %v4511_v31, %v4774_v20  ;;  %v1034_v20 = vsub.f32 %v4524_v36, %v4778_v51 }
 0x303   : > { %v1664_v12 = vpop.xlane.xlu2 %1663  ;;  %v1303_v56 = vsel %vm1302_vm3, %v3480_v27, %v1299_v40  ;;  %v2761_v27 = vld [vmem:[#allocation7 + $0x8] sm:$0xff] }
 0x304   : > { %v4792_v28 = vmul.f32 %v4655_v49, %v1664_v12  ;;  %v1308_v45 = vsel %vm1305_vm4, %v1307_v17, %v1303_v56  ;;  %2790 = vmatpush.msrb.mxu1 %v2761_v27  ;;  %v1083_v12 = vmul.f32 1.442695, %v1033_v35  ;;  %v1085_v27 = vmul.f32 1.442695, %v1034_v20 }
 0x305   : > { %v1823_v25 = vpop.xlane.xlu1 %1822  ;;  %v1309_v1 = vmul.f32 %v4641_v26, %v1308_v45  ;;  %v654_v26 = vpop.f32.mrf.mxu1 }
 0x306   : > { %v1886_v4 = vmul.f32 %v1823_v25, %v4655_v49  ;;  %v1762_v8 = vsub.f32 %v4666_v30, %v4792_v28  ;;  %2791 = vmatpush.msrb.mxu1 %v2760_v37  ;;  %v4803_v30 = vpop.xlane.xlu0 %993 }
 0x307   : > { %2542 = vmatmul.f32.gmra.mxu3 %v1309_v1  ;;  %2655 = vmatmul.f32.gmra.mxu0 %v1309_v1 }
 0x308   : > { %v1918_v29 = vadd.f32 1e-05, %v1886_v4  ;;  %v1794_v13 = vmul.f32 %v1762_v8, %v1762_v8 }
 0x30a   : > { %3481 = vrsqrt.f32 %v1918_v29  ;;  %1001 = vmax.xlane.f32.xlu1 %v4591_v50  ;;  %1830 = vadd.xlane.f32.xlu2 %v1794_v13  ;;  %vm1956_vm5 = vweird.f32 %v1918_v29 }
 0x30b   : > { %v1666_v41 = vpop.xlane.xlu2 %1665  ;;  %3483 = vpow2.f32 %v1081_v21 }
 0x30c   : > { %v4806_v40 = vmul.f32 %v4655_v49, %v1666_v41  ;;  %3485 = vpow2.f32 %v1083_v12  ;;  %v4840_v41 = vpop.f32.mrf.mxu3 }
 0x30d   : > { %v4808_v17 = vpop.xlane.xlu1 %995  ;;  %v4819_v62 = vpop.f32.mrf.mxu1  ;;  %5890 = vst [vmem:[#allocation34_spill] sm:$0xff] %v4840_v41 }
 0x30e   : > { %v1763_v24 = vsub.f32 %v4675_v14, %v4806_v40  ;;  %v1668_v14 = vpop.xlane.xlu0 %1667 }
 0x30f   : > { %v4824_v36 = vmul.f32 %v4655_v49, %v1668_v14 }
 0x310   : > { %v3482_v50 = vpop.eup %3481  ;;  %v1795_v56 = vmul.f32 %v1763_v24, %v1763_v24  ;;  %v4843_v24 = vld [vmem:[%s4152_s23 + $0x50] sm:$0xff] }
 0x311   : > { %v1951_v45 = vmul.f32 %v3482_v50, %v1918_v29  ;;  %v4814_v31 = vpop.eup %3483  ;;  %vm1957_vm6 = vweird.f32 %v3482_v50  ;;  %v4836_v29 = vld [vmem:[%s5843_s2] ss:$0 sm:$0xff] }
 0x312   : > { %1003 = vmax.xlane.f32.xlu2 %v4599_v6  ;;  %1832 = vadd.xlane.f32.xlu0 %v1795_v56  ;;  %v4828_v51 = vpop.eup %3485  ;;  %vm1958_vm7 = vmor %vm1956_vm5, %vm1957_vm6  ;;  %v3631_v56 = vld [vmem:[%s4152_s23 + $0x30] sm:$0xff] }
 0x313   : > { %v1952_v25 = vmul.f32 %v3482_v50, %v1951_v45  ;;  %1145 = vadd.xlane.f32.xlu1 %v4814_v31  ;;  %v1035_v45 = vsub.f32 %v4537_v39, %v4787_v15 }
 0x315   : > { %v1953_v1 = vmul.f32 0.5, %v1952_v25  ;;  %v1825_v4 = vpop.xlane.xlu2 %1824  ;;  %v1670_v8 = vpop.xlane.xlu1 %1669 }
 0x316   : > { %v1887_v21 = vmul.f32 %v1825_v4, %v4655_v49  ;;  %v4838_v35 = vpop.f32.mrf.mxu1  ;;  %v4854_v14 = vmul.f32 %v4655_v49, %v1670_v8  ;;  %v1087_v8 = vmul.f32 1.442695, %v1035_v45 }
 0x317   : > { %v1954_v13 = vsub.f32 1.5, %v1953_v1 }
 0x318   : > { %v4826_v6 = vadd.f32 1e-05, %v1887_v21 }
 0x319   : > { %v1955_v37 = vmul.f32 %v3482_v50, %v1954_v13 }
 0x31a   : > { %3487 = vrsqrt.f32 %v4826_v6  ;;  %1005 = vmax.xlane.f32.xlu0 %v4607_v0  ;;  %1147 = vadd.xlane.f32.xlu2 %v4828_v51  ;;  %v1764_v0 = vsub.f32 %v3631_v56, %v4824_v36  ;;  %vm1966_vm8 = vweird.f32 %v4826_v6 }
 0x31b   : > { %3489 = vpow2.f32 %v1085_v27  ;;  %1675 = vadd.xlane.f32.xlu1 %v4843_v24  ;;  %v1959_v12 = vsel %vm1958_vm7, %v3482_v50, %v1955_v37  ;;  %v4860_v50 = vld [vmem:[%s5844_s3] ss:$0 sm:$0xff]  ;;  %v3632_v37 = vld [vmem:[%s4362_s28 + $0xa8] sm:$0xff] }
 0x31c   : > { %v2302_v20 = vmul.f32 %v1959_v12, %v4658_v44  ;;  %v2270_v1 = vmul.f32 %v1959_v12, %v654_v26  ;;  %v1796_v15 = vmul.f32 %v1764_v0, %v1764_v0  ;;  %v1036_v12 = vsub.f32 %v3632_v37, %v4803_v30 }
 0x31d   : > { %v4851_v25 = vpop.xlane.xlu2 %997  ;;  %v4862_v27 = vpop.xlane.xlu1 %1129  ;;  %v1765_v0 = vsub.f32 %v4695_v55, %v4854_v14 }
 0x31e   : > { %v2338_v4 = vmul.f32 %v4836_v29, %v2302_v20  ;;  %v1827_v39 = vpop.xlane.xlu0 %1826  ;;  %3491 = vrcp.f32 %v4862_v27  ;;  %vm1315_vm14 = vweird.f32 %v4862_v27 }
 0x31f   : > { %v1888_v44 = vmul.f32 %v1827_v39, %v4655_v49  ;;  %v1089_v39 = vmul.f32 1.442695, %v1036_v12 }
 0x320   : > { %v3488_v21 = vpop.eup %3487  ;;  %v2370_v13 = vsub.f32 %v2270_v1, %v2338_v4  ;;  %v4882_v1 = vpop.f32.mrf.mxu1 }
 0x321   : > { %v4866_v26 = vpop.eup %3489  ;;  %v1961_v56 = vmul.f32 %v3488_v21, %v4826_v6  ;;  %v4871_v20 = vadd.f32 1e-05, %v1888_v44  ;;  %v2519_v44 = vpop.f32.mrf.mxu3  ;;  %vm1967_vm9 = vweird.f32 %v3488_v21 }
 0x322   : > { %v2406_v41 = vadd.f32 %v4860_v50, %v2370_v13  ;;  %1677 = vadd.xlane.f32.xlu2 %v4875_v34  ;;  %1149 = vadd.xlane.f32.xlu0 %v4866_v26  ;;  %v3634_v13 = vld [vmem:[%s4362_s28 + $0xb0] sm:$0xff]  ;;  %vm1968_vm10 = vmor %vm1966_vm8, %vm1967_vm9 }
 0x323   : > { %v1962_v45 = vmul.f32 %v3488_v21, %v1961_v56  ;;  %3493 = vrsqrt.f32 %v4871_v20  ;;  %1834 = vadd.xlane.f32.xlu1 %v1796_v15  ;;  %v1037_v37 = vsub.f32 %v3634_v13, %v4808_v17  ;;  %vm1976_vm11 = vweird.f32 %v4871_v20 }
 0x324   : > { %3495 = vpow2.f32 %v1087_v8  ;;  %v2438_v30 = vmax.f32 %v2406_v41, 0.0  ;;  %v4884_v4 = vpop.eup %3491  ;;  %v1797_v8 = vmul.f32 %v1765_v0, %v1765_v0  ;;  %v1321_v0 = vand.u32 2147483648, %v4862_v27 }
 0x325   : > { %v1963_v59 = vmul.f32 0.5, %v1962_v45  ;;  %v1672_v32 = vpop.xlane.xlu2 %1671  ;;  %v1311_v55 = vmul.f32 %v4884_v4, %v4862_v27  ;;  %v4893_v15 = vpop.xlane.xlu1 %1131  ;;  %v1091_v6 = vmul.f32 1.442695, %v1037_v37  ;;  %vm1316_vm12 = vweird.f32 %v4884_v4 }
 0x326   : > { %v4891_v56 = vmul.f32 %v4655_v49, %v1672_v32  ;;  %v2728_v41 = vmul.f32 %v2519_v44, %v2438_v30  ;;  %3497 = vrcp.f32 %v4893_v15  ;;  %vm1317_vm15 = vmor %vm1315_vm14, %vm1316_vm12  ;;  %vm1330_vm3 = vweird.f32 %v4893_v15 }
 0x327   : > { %v1964_v61 = vsub.f32 1.5, %v1963_v59  ;;  %v1312_v17 = vsub.f32 1.0, %v1311_v55  ;;  %v4904_v59 = vld [vmem:[%s4152_s23 + $0x60] sm:$0xff]  ;;  %3499 = vpow2.f32 %v1089_v39  ;;  %v1319_v55 = vand.u32 2147483647, %v4862_v27 }
 0x328   : > { %2792 = vmatmul.f32.vlgmr.msrb.gmra.mxu1 %v2728_v41  ;;  %v1766_v13 = vsub.f32 %v4726_v33, %v4891_v56 }
 0x329   : > { %v3494_v12 = vpop.eup %3493  ;;  %v1965_v45 = vmul.f32 %v3488_v21, %v1964_v61  ;;  %v1313_v5 = vmul.f32 %v4884_v4, %v1312_v17  ;;  %vm1320_vm0 = vcmp.eq.f32.partialorder %v1319_v55, 8.507059e+37 }
 0x32a   : > { %v4899_v32 = vpop.eup %3495  ;;  %v1971_v30 = vmul.f32 %v3494_v12, %v4871_v20  ;;  %1836 = vadd.xlane.f32.xlu2 %v1797_v8  ;;  %1679 = vadd.xlane.f32.xlu0 %v4904_v59  ;;  %v1798_v39 = vmul.f32 %v1766_v13, %v1766_v13  ;;  %vm1977_vm13 = vweird.f32 %v3494_v12 }
 0x32b   : > { %1151 = vadd.xlane.f32.xlu1 %v4899_v32  ;;  %v1969_v61 = vsel %vm1968_vm10, %v3488_v21, %v1965_v45  ;;  %v1314_v8 = vadd.f32 %v4884_v4, %v1313_v5  ;;  %v1322_v5 = vor.u32 1.1754944e-38, %v1321_v0  ;;  %vm4934_vm1 = vmor %vm1976_vm11, %vm1977_vm13 }
 0x32c   : > { %v1972_v33 = vmul.f32 %v3494_v12, %v1971_v30  ;;  %v2303_v44 = vmul.f32 %v1969_v61, %v4686_v38  ;;  %v4912_v41 = vpop.eup %3497  ;;  %v2271_v21 = vmul.f32 %v1969_v61, %v4819_v62  ;;  %v4922_v38 = vpop.f32.mrf.mxu1 }
 0x32d   : > { %v1326_v17 = vmul.f32 %v4912_v41, %v4893_v15  ;;  %v4920_v30 = vpop.xlane.xlu1 %1133  ;;  %v4928_v23 = vpop.eup %3499  ;;  %v1318_v62 = vsel %vm1317_vm15, %v4884_v4, %v1314_v8  ;;  %vm1331_vm2 = vweird.f32 %v4912_v41 }
 0x32e   : > { %v1973_v37 = vmul.f32 0.5, %v1972_v33  ;;  %v2339_v45 = vmul.f32 %v4836_v29, %v2303_v44  ;;  %3501 = vrcp.f32 %v4920_v30  ;;  %v1323_v61 = vsel %vm1320_vm0, %v1322_v5, %v1318_v62  ;;  %vm1332_vm4 = vmor %vm1330_vm3, %vm1331_vm2 }
 0x32f   : > { %v1327_v46 = vsub.f32 1.0, %v1326_v17  ;;  %3503 = vpow2.f32 %v1091_v6  ;;  %v1324_v4 = vmul.f32 %v4711_v10, %v1323_v61  ;;  %v1000_v6 = vpop.xlane.xlu0 %999  ;;  %vm1345_vm7 = vweird.f32 %v4920_v30 }
 0x330   : > { %v1974_v13 = vsub.f32 1.5, %v1973_v37  ;;  %v2371_v33 = vsub.f32 %v2271_v21, %v2339_v45  ;;  %v3636_v37 = vld [vmem:[%s4362_s28 + $0xb8] sm:$0xff]  ;;  %v1334_v45 = vand.u32 2147483647, %v4893_v15 }
 0x331   : > { %v1328_v0 = vmul.f32 %v4912_v41, %v1327_v46  ;;  %v1038_v17 = vsub.f32 %v3636_v37, %v4851_v25  ;;  %v1336_v46 = vand.u32 2147483648, %v4893_v15  ;;  %v2522_v25 = vpop.f32.mrf.mxu3  ;;  %2545 = vmatmul.f32.gmra.mxu3 %v1324_v4  ;;  %2658 = vmatmul.f32.gmra.mxu0 %v1324_v4  ;;  %v1351_v37 = vand.u32 2147483648, %v4920_v30 }
 0x332   : > { %1838 = vadd.xlane.f32.xlu0 %v1798_v39  ;;  %1153 = vadd.xlane.f32.xlu2 %v4928_v23  ;;  %v1975_v44 = vmul.f32 %v3494_v12, %v1974_v13  ;;  %v2407_v20 = vadd.f32 %v4860_v50, %v2371_v33  ;;  %vm1335_vm5 = vcmp.eq.f32.partialorder %v1334_v45, 8.507059e+37 }
 0x333   : > { %1007 = vmax.xlane.f32.xlu1 %v4615_v2  ;;  %v1329_v8 = vadd.f32 %v4912_v41, %v1328_v0  ;;  %v1093_v33 = vmul.f32 1.442695, %v1038_v17  ;;  %v1337_v62 = vor.u32 1.1754944e-38, %v1336_v46  ;;  %v4974_v46 = vld [vmem:[%s4152_s23 + $0x68] sm:$0xff] }
 0x334   : > { %v1979_v55 = vsel %vm4934_vm1, %v3494_v12, %v1975_v44  ;;  %v3502_v39 = vpop.eup %3501  ;;  %v2439_v21 = vmax.f32 %v2407_v20, 0.0  ;;  %v4966_v0 = vpop.f32.mrf.mxu1 }
 0x335   : > { %v2272_v2 = vmul.f32 %v1979_v55, %v4838_v35  ;;  %v2304_v10 = vmul.f32 %v1979_v55, %v4704_v18  ;;  %v1341_v5 = vmul.f32 %v3502_v39, %v4920_v30  ;;  %v4955_v13 = vpop.xlane.xlu1 %1135  ;;  %v1333_v35 = vsel %vm1332_vm4, %v4912_v41, %v1329_v8  ;;  %v4964_v18 = vpop.eup %3503  ;;  %v3637_v41 = vld [vmem:[%s4362_s28 + $0xc0] sm:$0xff] }
 0x336   : > { %3505 = vrcp.f32 %v4955_v13  ;;  %v2729_v44 = vmul.f32 %v2522_v25, %v2439_v21  ;;  %v1338_v4 = vsel %vm1335_vm5, %v1337_v62, %v1333_v35  ;;  %vm1346_vm6 = vweird.f32 %v3502_v39 }
 0x337   : > { %v2340_v12 = vmul.f32 %v4836_v29, %v2304_v10  ;;  %v1342_v27 = vsub.f32 1.0, %v1341_v5  ;;  %v1039_v20 = vsub.f32 %v3637_v41, %v1000_v6  ;;  %v1339_v17 = vmul.f32 %v4723_v43, %v1338_v4  ;;  %vm1347_vm8 = vmor %vm1345_vm7, %vm1346_vm6  ;;  %v1674_v43 = vpop.xlane.xlu0 %1673  ;;  %v4999_v4 = vld [vmem:[%s4152_s23 + $0x70] sm:$0xff] }
 0x338   : > { %2795 = vmatmul.f32.gmra.mxu1 %v2729_v44  ;;  %v1349_v8 = vand.u32 2147483647, %v4920_v30  ;;  %3507 = vpow2.f32 %v1093_v33  ;;  %v1352_v6 = vor.u32 1.1754944e-38, %v1351_v37  ;;  %v4985_v30 = vmul.f32 %v4655_v49, %v1674_v43  ;;  %v4995_v37 = vld [vmem:[%s4362_s28 + $0xf0] sm:$0xff] }
 0x339   : > { %v2372_v61 = vsub.f32 %v2272_v2, %v2340_v12  ;;  %v1343_v15 = vmul.f32 %v3502_v39, %v1342_v27  ;;  %2548 = vmatmul.f32.gmra.mxu3 %v1339_v17  ;;  %2661 = vmatmul.f32.gmra.mxu0 %v1339_v17  ;;  %v2525_v5 = vpop.f32.mrf.mxu3  ;;  %v1095_v12 = vmul.f32 1.442695, %v1039_v20  ;;  %v4988_v27 = vpop.xlane.xlu2 %1141  ;;  %v1364_v41 = vand.u32 2147483647, %v4955_v13 }
 0x33a   : > { %1155 = vadd.xlane.f32.xlu0 %v4964_v18  ;;  %1009 = vmax.xlane.f32.xlu2 %v4623_v53  ;;  %vm1350_vm9 = vcmp.eq.f32.partialorder %v1349_v8, 8.507059e+37  ;;  %vm1360_vm11 = vweird.f32 %v4955_v13  ;;  %vm1405_vm7 = vweird.f32 %v4988_v27 }
 0x33b   : > { %1681 = vadd.xlane.f32.xlu1 %v4974_v46  ;;  %v2408_v55 = vadd.f32 %v4860_v50, %v2372_v61  ;;  %v1344_v25 = vadd.f32 %v3502_v39, %v1343_v15  ;;  %v1366_v61 = vand.u32 2147483648, %v4955_v13  ;;  %vm1365_vm13 = vcmp.eq.f32.partialorder %v1364_v41, 8.507059e+37 }
 0x33c   : > { %v3506_v2 = vpop.eup %3505  ;;  %v5003_v20 = vpop.f32.mrf.mxu1 }
 0x33d   : > { %v2440_v53 = vmax.f32 %v2408_v55, 0.0  ;;  %v1356_v10 = vmul.f32 %v3506_v2, %v4955_v13  ;;  %v4982_v21 = vpop.xlane.xlu1 %1137  ;;  %v1348_v45 = vsel %vm1347_vm8, %v3502_v39, %v1344_v25  ;;  %vm1361_vm10 = vweird.f32 %v3506_v2 }
 0x33e   : > { %3509 = vrcp.f32 %v4982_v21  ;;  %v1353_v62 = vsel %vm1350_vm9, %v1352_v6, %v1348_v45  ;;  %v4992_v15 = vpop.eup %3507  ;;  %v1367_v8 = vor.u32 1.1754944e-38, %v1366_v61  ;;  %vm1362_vm12 = vmor %vm1360_vm11, %vm1361_vm10  ;;  %v1381_v13 = vand.u32 2147483648, %v4982_v21 }
 0x33f   : > { %v1357_v35 = vsub.f32 1.0, %v1356_v10  ;;  %v2730_v33 = vmul.f32 %v2525_v5, %v2440_v53  ;;  %v1354_v44 = vmul.f32 %v4738_v63, %v1353_v62  ;;  %3511 = vpow2.f32 %v1095_v12  ;;  %v5013_v5 = vpop.xlane.xlu0 %1143  ;;  %v5018_v62 = vld [vmem:[%s4152_s23 + $0x78] sm:$0xff] }
 0x340   : > { %v1767_v63 = vsub.f32 %v4747_v42, %v4985_v30  ;;  %3513 = vrcp.f32 %v4988_v27  ;;  %vm1375_vm15 = vweird.f32 %v4982_v21  ;;  %v1382_v41 = vor.u32 1.1754944e-38, %v1381_v13 }
 0x341   : > { %v1358_v39 = vmul.f32 %v3506_v2, %v1357_v35  ;;  %2798 = vmatmul.f32.gmra.mxu1 %v2730_v33  ;;  %2551 = vmatmul.f32.gmra.mxu3 %v1354_v44  ;;  %vm1420_vm11 = vweird.f32 %v5013_v5 }
 0x342   : > { %1011 = vmax.xlane.f32.xlu0 %v4995_v37  ;;  %1683 = vadd.xlane.f32.xlu2 %v4999_v4  ;;  %v1799_v10 = vmul.f32 %v1767_v63, %v1767_v63 }
 0x343   : > { %1157 = vadd.xlane.f32.xlu1 %v4992_v15  ;;  %v1359_v17 = vadd.f32 %v3506_v2, %v1358_v39  ;;  %2664 = vmatmul.f32.gmra.mxu0 %v1354_v44 }
 0x344   : > { %v3510_v55 = vpop.eup %3509  ;;  %v5025_v44 = vpop.f32.mrf.mxu1 }
 0x345   : > { %v1371_v25 = vmul.f32 %v3510_v55, %v4982_v21  ;;  %v1140_v53 = vpop.xlane.xlu1 %1139  ;;  %v1363_v6 = vsel %vm1362_vm12, %v3506_v2, %v1359_v17  ;;  %v5011_v45 = vpop.eup %3511  ;;  %vm1376_vm14 = vweird.f32 %v3510_v55  ;;  %v1379_v2 = vand.u32 2147483647, %v4982_v21 }
 0x346   : > { %3515 = vrcp.f32 %v1140_v53  ;;  %v1368_v43 = vsel %vm1365_vm13, %v1367_v8, %v1363_v6  ;;  %v3514_v35 = vpop.eup %3513  ;;  %vm1377_vm0 = vmor %vm1375_vm15, %vm1376_vm14  ;;  %vm1390_vm3 = vweird.f32 %v1140_v53 }
 0x347   : > { %v1372_v42 = vsub.f32 1.0, %v1371_v25  ;;  %v1369_v12 = vmul.f32 %v4750_v3, %v1368_v43  ;;  %3517 = vrcp.f32 %v5013_v5  ;;  %v1401_v39 = vmul.f32 %v3514_v35, %v4988_v27 }
 0x348   : > { %vm1380_vm1 = vcmp.eq.f32.partialorder %v1379_v2, 8.507059e+37  ;;  %v1396_v43 = vand.u32 2147483648, %v1140_v53  ;;  %vm1406_vm6 = vweird.f32 %v3514_v35 }
 0x349   : > { %v1373_v33 = vmul.f32 %v3510_v55, %v1372_v42  ;;  %2554 = vmatmul.f32.gmra.mxu3 %v1369_v12  ;;  %v1402_v6 = vsub.f32 1.0, %v1401_v39  ;;  %vm1407_vm8 = vmor %vm1405_vm7, %vm1406_vm6 }
 0x34a   : > { %1685 = vadd.xlane.f32.xlu0 %v5018_v62  ;;  %1159 = vadd.xlane.f32.xlu2 %v5011_v45  ;;  %v1397_v2 = vor.u32 1.1754944e-38, %v1396_v43 }
 0x34b   : > { %1840 = vadd.xlane.f32.xlu1 %v1799_v10  ;;  %v1374_v61 = vadd.f32 %v3510_v55, %v1373_v33  ;;  %2667 = vmatmul.f32.gmra.mxu0 %v1369_v12  ;;  %v1394_v33 = vand.u32 2147483647, %v1140_v53  ;;  %v1403_v12 = vmul.f32 %v3514_v35, %v1402_v6 }
 0x34c   : > { %v3516_v3 = vpop.eup %3515 }
 0x34d   : > { %v1386_v63 = vmul.f32 %v3516_v3, %v1140_v53  ;;  %v1378_v17 = vsel %vm1377_vm0, %v3510_v55, %v1374_v61  ;;  %v3518_v10 = vpop.eup %3517  ;;  %vm1391_vm2 = vweird.f32 %v3516_v3  ;;  %vm1395_vm5 = vcmp.eq.f32.partialorder %v1394_v33, 8.507059e+37 }
 0x34e   : > { %v1383_v8 = vsel %vm1380_vm1, %v1382_v41, %v1378_v17  ;;  %v1416_v55 = vmul.f32 %v3518_v10, %v5013_v5  ;;  %vm1392_vm4 = vmor %vm1390_vm3, %vm1391_vm2  ;;  %v1404_v17 = vadd.f32 %v3514_v35, %v1403_v12  ;;  %v1411_v53 = vand.u32 2147483648, %v4988_v27 }
 0x34f   : > { %v1387_v25 = vsub.f32 1.0, %v1386_v63  ;;  %v1384_v21 = vmul.f32 %v4760_v57, %v1383_v8  ;;  %v5034_v57 = vpop.f32.mrf.mxu1  ;;  %v5040_v8 = vld [vmem:[%s4152_s23 + $0x80] sm:$0xff]  ;;  %vm1421_vm10 = vweird.f32 %v3518_v10  ;;  %v1426_v33 = vand.u32 2147483648, %v5013_v5 }
 0x350   : > { %v1417_v41 = vsub.f32 1.0, %v1416_v55  ;;  %v1408_v6 = vsel %vm1407_vm8, %v3514_v35, %v1404_v17  ;;  %v1412_v43 = vor.u32 1.1754944e-38, %v1411_v53  ;;  %v1424_v35 = vand.u32 2147483647, %v5013_v5  ;;  %vm1422_vm12 = vmor %vm1420_vm11, %vm1421_vm10  ;;  %v5062_v5 = vld [vmem:[%s4152_s23 + $0x98] sm:$0xff]  ;;  %v5069_v53 = vld [vmem:[%s4152_s23 + $0xa0] sm:$0xff] }
 0x351   : > { %v1388_v42 = vmul.f32 %v3516_v3, %v1387_v25  ;;  %2557 = vmatmul.f32.gmra.mxu3 %v1384_v21  ;;  %v1427_v55 = vor.u32 1.1754944e-38, %v1426_v33 }
 0x352   : > { %v1418_v25 = vmul.f32 %v3518_v10, %v1417_v41  ;;  %vm1425_vm13 = vcmp.eq.f32.partialorder %v1424_v35, 8.507059e+37 }
 0x353   : > { %1013 = vmax.xlane.f32.xlu1 %v5030_v11  ;;  %v1389_v13 = vadd.f32 %v3516_v3, %v1388_v42  ;;  %2670 = vmatmul.f32.gmra.mxu0 %v1384_v21 }
 0x354   : > { %v1419_v42 = vadd.f32 %v3518_v10, %v1418_v25  ;;  %v3648_v25 = vld [vmem:[%s4362_s28 + $0xc8] sm:$0xff] }
 0x355   : > { %v1393_v61 = vsel %vm1392_vm4, %v3516_v3, %v1389_v13  ;;  %v1409_v3 = vand.u32 2147483647, %v4988_v27  ;;  %v5050_v27 = vld [vmem:[%s4152_s23 + $0x88] sm:$0xff] }
 0x356   : > { %v1398_v39 = vsel %vm1395_vm5, %v1397_v2, %v1393_v61  ;;  %v1423_v12 = vsel %vm1422_vm12, %v3518_v10, %v1419_v42 }
 0x357   : > { %v1399_v63 = vmul.f32 %v4765_v7, %v1398_v39  ;;  %vm1410_vm9 = vcmp.eq.f32.partialorder %v1409_v3, 8.507059e+37  ;;  %v5044_v21 = vpop.f32.mrf.mxu1  ;;  %v1428_v2 = vsel %vm1425_vm13, %v1427_v55, %v1423_v12  ;;  %v5057_v39 = vld [vmem:[%s4152_s23 + $0x90] sm:$0xff]  ;;  %v5080_v55 = vld [vmem:[%s4152_s23 + $0xa8] sm:$0xff] }
 0x358   : > { %v1413_v7 = vsel %vm1410_vm9, %v1412_v43, %v1408_v6 }
 0x359   : > { %2560 = vmatmul.f32.gmra.mxu3 %v1399_v63  ;;  %v1414_v13 = vmul.f32 %v4740_v47, %v1413_v7  ;;  %v1429_v47 = vmul.f32 %v4754_v19, %v1428_v2 }
 0x35b   : > { %1687 = vadd.xlane.f32.xlu1 %v5040_v8  ;;  %2673 = vmatmul.f32.gmra.mxu0 %v1399_v63 }
 0x35f   : > { %v5054_v61 = vpop.f32.mrf.mxu1 }
 0x360   : > { %5893 = vst [vmem:[#allocation35_spill] sm:$0xff] %v5054_v61 }
 0x361   : > { %2563 = vmatmul.f32.gmra.mxu3 %v1414_v13 }
 0x363   : > { %1689 = vadd.xlane.f32.xlu1 %v5050_v27  ;;  %2676 = vmatmul.f32.gmra.mxu0 %v1414_v13 }
 0x367   : > { %v5065_v10 = vpop.f32.mrf.mxu1 }
 0x368   : > { %5894 = vst [vmem:[#allocation36_spill] sm:$0xff] %v5065_v10 }
 0x369   : > { %2566 = vmatmul.f32.gmra.mxu3 %v1429_v47 }
 0x36b   : > { %1691 = vadd.xlane.f32.xlu1 %v5057_v39  ;;  %2679 = vmatmul.f32.gmra.mxu0 %v1429_v47 }
 0x36f   : > { %v5074_v7 = vpop.f32.mrf.mxu1 }
 0x370   : > { %5895 = vst [vmem:[#allocation37_spill] sm:$0xff] %v5074_v7 }
 0x373   : > { %1693 = vadd.xlane.f32.xlu1 %v5062_v5 }
 0x375   : > { %v1829_v41 = vpop.xlane.xlu1 %1828 }
 0x376   : > { %v1889_v63 = vmul.f32 %v1829_v41, %v4655_v49 }
 0x377   : > { %v5092_v48 = vpop.f32.mrf.mxu1 }
 0x378   : > { %v1921_v17 = vadd.f32 1e-05, %v1889_v63  ;;  %v3650_v63 = vld [vmem:[%s4362_s28 + $0xd0] sm:$0xff]  ;;  %5897 = vst [vmem:[#allocation39_spill] sm:$0xff] %v5092_v48 }
 0x37a   : > { %3519 = vrsqrt.f32 %v1921_v17  ;;  %vm1986_vm15 = vweird.f32 %v1921_v17 }
 0x37b   : > { %1695 = vadd.xlane.f32.xlu1 %v5069_v53 }
 0x37d   : > { %v1002_v3 = vpop.xlane.xlu1 %1001  ;;  %v1831_v19 = vpop.xlane.xlu2 %1830 }
 0x37e   : > { %v1040_v6 = vsub.f32 %v3648_v25, %v1002_v3  ;;  %v1890_v43 = vmul.f32 %v1831_v19, %v4655_v49 }
 0x380   : > { %v3520_v42 = vpop.eup %3519  ;;  %v1097_v33 = vmul.f32 1.442695, %v1040_v6  ;;  %v5076_v13 = vadd.f32 1e-05, %v1890_v43 }
 0x381   : > { %v1981_v35 = vmul.f32 %v3520_v42, %v1921_v17  ;;  %vm1987_vm14 = vweird.f32 %v3520_v42 }
 0x382   : > { %3521 = vpow2.f32 %v1097_v33  ;;  %vm1988_vm0 = vmor %vm1986_vm15, %vm1987_vm14  ;;  %vm1996_vm1 = vweird.f32 %v5076_v13 }
 0x383   : > { %v1982_v12 = vmul.f32 %v3520_v42, %v1981_v35  ;;  %3523 = vrsqrt.f32 %v5076_v13  ;;  %1697 = vadd.xlane.f32.xlu1 %v5080_v55 }
 0x385   : > { %v1983_v2 = vmul.f32 0.5, %v1982_v12  ;;  %v1004_v47 = vpop.xlane.xlu2 %1003  ;;  %v1833_v41 = vpop.xlane.xlu0 %1832 }
 0x386   : > { %v1041_v3 = vsub.f32 %v3650_v63, %v1004_v47  ;;  %v5084_v19 = vpop.xlane.xlu1 %1145  ;;  %v1891_v25 = vmul.f32 %v1833_v41, %v4655_v49  ;;  %v5098_v41 = vld [vmem:[%s4152_s23 + $0xb0] sm:$0xff] }
 0x387   : > { %v1984_v6 = vsub.f32 1.5, %v1983_v2  ;;  %3525 = vrcp.f32 %v5084_v19  ;;  %v1441_v17 = vand.u32 2147483648, %v5084_v19  ;;  %v1439_v52 = vand.u32 2147483647, %v5084_v19 }
 0x388   : > { %v5088_v43 = vpop.eup %3521  ;;  %v1099_v33 = vmul.f32 1.442695, %v1041_v3  ;;  %v5090_v35 = vadd.f32 1e-05, %v1891_v25  ;;  %vm1435_vm3 = vweird.f32 %v5084_v19 }
 0x389   : > { %5896 = vst [vmem:[#allocation38_spill] sm:$0xff] %v5088_v43  ;;  %v3524_v12 = vpop.eup %3523  ;;  %v1985_v22 = vmul.f32 %v3520_v42, %v1984_v6  ;;  %1161 = vadd.xlane.f32.xlu0 %v5088_v43  ;;  %v1442_v61 = vor.u32 1.1754944e-38, %v1441_v17  ;;  %vm5132_vm6 = vcmp.eq.f32.partialorder %v1439_v52, 8.507059e+37 }
 0x38a   : > { %v1991_v47 = vmul.f32 %v3524_v12, %v5076_v13  ;;  %3527 = vpow2.f32 %v1099_v33  ;;  %vm1997_vm2 = vweird.f32 %v3524_v12  ;;  %vm2006_vm4 = vweird.f32 %v5090_v35 }
 0x38b   : > { %v1989_v2 = vsel %vm1988_vm0, %v3520_v42, %v1985_v22  ;;  %3529 = vrsqrt.f32 %v5090_v35  ;;  %1699 = vadd.xlane.f32.xlu1 %v5098_v41  ;;  %vm1998_vm5 = vmor %vm1996_vm1, %vm1997_vm2 }
 0x38c   : > { %v2305_v63 = vmul.f32 %v1989_v2, %v4781_v9  ;;  %v1992_v3 = vmul.f32 %v3524_v12, %v1991_v47  ;;  %v3652_v47 = vld [vmem:[%s4362_s28 + $0xd8] sm:$0xff]  ;;  %v2273_v54 = vmul.f32 %v1989_v2, %v4882_v1 }
 0x38d   : > { %v5102_v25 = vpop.eup %3525  ;;  %v5106_v6 = vpop.xlane.xlu2 %1147 }
 0x38e   : > { %v1006_v33 = vpop.xlane.xlu0 %1005  ;;  %v1993_v22 = vmul.f32 0.5, %v1992_v3  ;;  %v1431_v42 = vmul.f32 %v5102_v25, %v5084_v19  ;;  %v1676_v60 = vpop.xlane.xlu1 %1675  ;;  %3531 = vrcp.f32 %v5106_v6  ;;  %v2341_v58 = vmul.f32 %v4836_v29, %v2305_v63 }
 0x38f   : > { %v5113_v9 = vmul.f32 %v4655_v49, %v1676_v60  ;;  %v1042_v16 = vsub.f32 %v3652_v47, %v1006_v33  ;;  %v5127_v63 = vpop.f32.mrf.mxu1  ;;  %vm1436_vm7 = vweird.f32 %v5102_v25  ;;  %vm1450_vm11 = vweird.f32 %v5106_v6 }
 0x390   : > { %v5118_v48 = vpop.eup %3527  ;;  %v1994_v3 = vsub.f32 1.5, %v1993_v22  ;;  %v1432_v7 = vsub.f32 1.0, %v1431_v42  ;;  %v2373_v33 = vsub.f32 %v2273_v54, %v2341_v58  ;;  %5900 = vst [vmem:[#allocation42_spill] sm:$0xff] %v5127_v63  ;;  %v2528_v54 = vpop.f32.mrf.mxu3  ;;  %vm1437_vm9 = vmor %vm1435_vm3, %vm1436_vm7 }
 0x391   : > { %5898 = vst [vmem:[#allocation40_spill] sm:$0xff] %v5113_v9  ;;  %v3530_v10 = vpop.eup %3529  ;;  %v1101_v43 = vmul.f32 1.442695, %v1042_v16  ;;  %1163 = vadd.xlane.f32.xlu0 %v5118_v48  ;;  %v1768_v60 = vsub.f32 %v4843_v24, %v5113_v9 }
 0x392   : > { %5899 = vst [vmem:[#allocation41_spill] sm:$0xff] %v5118_v48  ;;  %v1995_v47 = vmul.f32 %v3524_v12, %v1994_v3  ;;  %v1433_v1 = vmul.f32 %v5102_v25, %v1432_v7  ;;  %v2001_v2 = vmul.f32 %v3530_v10, %v5090_v35  ;;  %v2409_v17 = vadd.f32 %v4860_v50, %v2373_v33 }
 0x393   : > { %3533 = vpow2.f32 %v1101_v43  ;;  %v1800_v16 = vmul.f32 %v1768_v60, %v1768_v60  ;;  %v1456_v3 = vand.u32 2147483648, %v5106_v6  ;;  %vm2007_vm8 = vweird.f32 %v3530_v10 }
 0x394   : > { %v5136_v58 = vpop.eup %3531  ;;  %v1999_v24 = vsel %vm1998_vm5, %v3524_v12, %v1995_v47  ;;  %v2002_v7 = vmul.f32 %v3530_v10, %v2001_v2  ;;  %v1434_v42 = vadd.f32 %v5102_v25, %v1433_v1  ;;  %v2441_v33 = vmax.f32 %v2409_v17, 0.0  ;;  %vm2008_vm10 = vmor %vm2006_vm4, %vm2007_vm8 }
 0x395   : > { %v2306_v13 = vmul.f32 %v1999_v24, %v4792_v28  ;;  %v1446_v43 = vmul.f32 %v5136_v58, %v5106_v6  ;;  %1842 = vadd.xlane.f32.xlu2 %v1800_v16  ;;  %v1678_v52 = vpop.xlane.xlu2 %1677  ;;  %v2274_v16 = vmul.f32 %v1999_v24, %v4922_v38  ;;  %v1454_v38 = vand.u32 2147483647, %v5106_v6 }
 0x396   : > { %v5144_v60 = vpop.xlane.xlu0 %1149  ;;  %v2003_v63 = vmul.f32 0.5, %v2002_v7  ;;  %v5147_v12 = vmul.f32 %v4655_v49, %v1678_v52  ;;  %v1835_v47 = vpop.xlane.xlu1 %1834  ;;  %v2731_v2 = vmul.f32 %v2528_v54, %v2441_v33  ;;  %v1438_v7 = vsel %vm1437_vm9, %v5102_v25, %v1434_v42 }
 0x397   : > { %3535 = vrcp.f32 %v5144_v60  ;;  %v1447_v1 = vsub.f32 1.0, %v1446_v43  ;;  %v1892_v28 = vmul.f32 %v1835_v47, %v4655_v49  ;;  %v2342_v9 = vmul.f32 %v4836_v29, %v2306_v13  ;;  %v5179_v13 = vpop.f32.mrf.mxu1 }
 0x398   : > { %v2004_v17 = vsub.f32 1.5, %v2003_v63  ;;  %v1769_v52 = vsub.f32 %v4875_v34, %v5147_v12  ;;  %2801 = vmatmul.f32.gmra.mxu1 %v2731_v2  ;;  %v1443_v19 = vsel %vm5132_vm6, %v1442_v61, %v1438_v7  ;;  %vm1451_vm12 = vweird.f32 %v5136_v58 }
 0x399   : > { %v5160_v48 = vpop.eup %3533  ;;  %v1448_v43 = vmul.f32 %v5136_v58, %v1447_v1  ;;  %v5163_v54 = vadd.f32 1e-05, %v1892_v28  ;;  %v1444_v25 = vmul.f32 %v4814_v31, %v1443_v19  ;;  %v2374_v24 = vsub.f32 %v2274_v16, %v2342_v9  ;;  %vm1452_vm13 = vmor %vm1450_vm11, %vm1451_vm12 }
 0x39a   : > { %v2005_v63 = vmul.f32 %v3530_v10, %v2004_v17  ;;  %1165 = vadd.xlane.f32.xlu0 %v5160_v48  ;;  %v1801_v34 = vmul.f32 %v1769_v52, %v1769_v52  ;;  %v1457_v31 = vor.u32 1.1754944e-38, %v1456_v3  ;;  %vm1455_vm14 = vcmp.eq.f32.partialorder %v1454_v38, 8.507059e+37  ;;  %v2531_v17 = vpop.f32.mrf.mxu3 }
 0x39b   : > { %3537 = vrsqrt.f32 %v5163_v54  ;;  %v1449_v22 = vadd.f32 %v5136_v58, %v1448_v43  ;;  %2569 = vmatmul.f32.gmra.mxu3 %v1444_v25  ;;  %2682 = vmatmul.f32.gmra.mxu0 %v1444_v25  ;;  %v2410_v9 = vadd.f32 %v4860_v50, %v2374_v24  ;;  %v1471_v7 = vand.u32 2147483648, %v5144_v60 }
 0x39c   : > { %v2009_v42 = vsel %vm2008_vm10, %v3530_v10, %v2005_v63  ;;  %vm1465_vm0 = vweird.f32 %v5144_v60  ;;  %vm2016_vm2 = vweird.f32 %v5163_v54 }
 0x39d   : > { %v5177_v61 = vpop.eup %3535  ;;  %v2307_v35 = vmul.f32 %v2009_v42, %v4806_v40  ;;  %1844 = vadd.xlane.f32.xlu2 %v1801_v34  ;;  %v1837_v33 = vpop.xlane.xlu2 %1836  ;;  %v1453_v1 = vsel %vm1452_vm13, %v5136_v58, %v1449_v22  ;;  %v2442_v2 = vmax.f32 %v2410_v9, 0.0  ;;  %v2275_v25 = vmul.f32 %v2009_v42, %v4966_v0 }
 0x39e   : > { %v1461_v6 = vmul.f32 %v5177_v61, %v5144_v60  ;;  %v1680_v47 = vpop.xlane.xlu0 %1679  ;;  %v1893_v10 = vmul.f32 %v1837_v33, %v4655_v49  ;;  %v5187_v3 = vpop.xlane.xlu1 %1151  ;;  %v1458_v16 = vsel %vm1455_vm14, %v1457_v31, %v1453_v1  ;;  %vm1466_vm15 = vweird.f32 %v5177_v61 }
 0x39f   : > { %v5190_v28 = vmul.f32 %v4655_v49, %v1680_v47  ;;  %3539 = vrcp.f32 %v5187_v3  ;;  %v2732_v43 = vmul.f32 %v2531_v17, %v2442_v2  ;;  %v1459_v58 = vmul.f32 %v4828_v51, %v1458_v16  ;;  %vm5208_vm1 = vmor %vm1465_vm0, %vm1466_vm15  ;;  %v3653_v17 = vld [vmem:[%s4362_s28 + $0xe0] sm:$0xff] }
 0x3a0   : > { %v1462_v40 = vsub.f32 1.0, %v1461_v6  ;;  %v5194_v52 = vadd.f32 1e-05, %v1893_v10  ;;  %v2343_v34 = vmul.f32 %v4836_v29, %v2307_v35  ;;  %v1469_v31 = vand.u32 2147483647, %v5144_v60 }
 0x3a1   : > { %v1770_v19 = vsub.f32 %v4904_v59, %v5190_v28  ;;  %v3538_v38 = vpop.eup %3537  ;;  %2804 = vmatmul.f32.gmra.mxu1 %v2732_v43  ;;  %v1472_v6 = vor.u32 1.1754944e-38, %v1471_v7  ;;  %v1486_v42 = vand.u32 2147483648, %v5187_v3  ;;  %v3654_v43 = vld [vmem:[%s4152_s23] sm:$0xff]  ;;  %vm1480_vm5 = vweird.f32 %v5187_v3 }
 0x3a2   : > { %v1463_v63 = vmul.f32 %v5177_v61, %v1462_v40  ;;  %v2011_v24 = vmul.f32 %v3538_v38, %v5163_v54  ;;  %3541 = vrsqrt.f32 %v5194_v52  ;;  %v2375_v22 = vsub.f32 %v2275_v25, %v2343_v34  ;;  %v2632_v34 = vpop.f32.mrf.mxu0 }
 0x3a3   : > { %v1802_v51 = vmul.f32 %v1770_v19, %v1770_v19  ;;  %2572 = vmatmul.f32.gmra.mxu3 %v1459_v58  ;;  %2685 = vmatmul.f32.gmra.mxu0 %v1459_v58  ;;  %vm2017_vm3 = vweird.f32 %v3538_v38  ;;  %vm1470_vm4 = vcmp.eq.f32.partialorder %v1469_v31, 8.507059e+37  ;;  %v1484_v54 = vand.u32 2147483647, %v5187_v3 }
 0x3a4   : > { %v1464_v59 = vadd.f32 %v5177_v61, %v1463_v63  ;;  %v2012_v9 = vmul.f32 %v3538_v38, %v2011_v24  ;;  %v2411_v33 = vadd.f32 %v4860_v50, %v2375_v22  ;;  %vm2018_vm6 = vmor %vm2016_vm2, %vm2017_vm3  ;;  %vm2026_vm7 = vweird.f32 %v5194_v52 }
 0x3a5   : > { %v5212_v0 = vpop.eup %3539  ;;  %1846 = vadd.xlane.f32.xlu2 %v1802_v51  ;;  %v5216_v35 = vpop.xlane.xlu2 %1153  ;;  %v1487_v51 = vor.u32 1.1754944e-38, %v1486_v42  ;;  %vm1485_vm11 = vcmp.eq.f32.partialorder %v1484_v54, 8.507059e+37 }
 0x3a6   : > { %v1839_v60 = vpop.xlane.xlu0 %1838  ;;  %v1468_v47 = vsel %vm5208_vm1, %v5177_v61, %v1464_v59  ;;  %v2013_v1 = vmul.f32 0.5, %v2012_v9  ;;  %v1476_v10 = vmul.f32 %v5212_v0, %v5187_v3  ;;  %3543 = vrcp.f32 %v5216_v35  ;;  %v1008_v2 = vpop.xlane.xlu1 %1007 }
 0x3a7   : > { %v2793_v16 = vpop.f32.mrf.mxu1  ;;  %v1043_v40 = vsub.f32 %v3653_v17, %v1008_v2  ;;  %v1894_v7 = vmul.f32 %v1839_v60, %v4655_v49  ;;  %v2443_v63 = vmax.f32 %v2411_v33, 0.0  ;;  %v1473_v25 = vsel %vm1470_vm4, %v1472_v6, %v1468_v47  ;;  %v2534_v59 = vpop.f32.mrf.mxu3 }
 0x3a8   : > { %v2889_v58 = vadd.f32 %v3654_v43, %v2793_v16  ;;  %v5228_v50 = vpop.eup %3541  ;;  %v2014_v19 = vsub.f32 1.5, %v2013_v1  ;;  %v1477_v61 = vsub.f32 1.0, %v1476_v10  ;;  %v1474_v47 = vmul.f32 %v4866_v26, %v1473_v25 }
 0x3a9   : > { %v2021_v24 = vmul.f32 %v5228_v50, %v5194_v52  ;;  %v1103_v22 = vmul.f32 1.442695, %v1043_v40  ;;  %v5234_v31 = vadd.f32 1e-05, %v1894_v7  ;;  %v2733_v33 = vmul.f32 %v2534_v59, %v2443_v63  ;;  %v3655_v40 = vld [vmem:[%s4362_s28 + $0xe8] sm:$0xff] }
 0x3aa   : > { %v2015_v9 = vmul.f32 %v3538_v38, %v2014_v19  ;;  %v1478_v29 = vmul.f32 %v5212_v0, %v1477_v61  ;;  %v2921_v60 = vadd.f32 %v2889_v58, %v2632_v34  ;;  %vm1481_vm8 = vweird.f32 %v5212_v0 }
 0x3ab   : > { %v2022_v6 = vmul.f32 %v5228_v50, %v2021_v24  ;;  %3545 = vpow2.f32 %v1103_v22  ;;  %2807 = vmatmul.f32.gmra.mxu1 %v2733_v33  ;;  %2575 = vmatmul.f32.gmra.mxu3 %v1474_v47  ;;  %vm2027_vm9 = vweird.f32 %v5228_v50  ;;  %vm1482_vm10 = vmor %vm1480_vm5, %vm1481_vm8  ;;  %vm1495_vm14 = vweird.f32 %v5216_v35 }
 0x3ac   : > { %v5241_v1 = vpop.eup %3543  ;;  %v2019_v42 = vsel %vm2018_vm6, %v3538_v38, %v2015_v9  ;;  %3547 = vrsqrt.f32 %v5234_v31  ;;  %2953 = vst [vmem:[%s5245_s27] sm:$0xff] %v2921_v60  ;;  %v1479_v10 = vadd.f32 %v5212_v0, %v1478_v29  ;;  %2688 = vmatmul.f32.gmra.mxu0 %v1474_v47  ;;  %vm2028_vm12 = vmor %vm2026_vm7, %vm2027_vm9  ;;  %vm2036_vm15 = vweird.f32 %v5234_v31 }
 0x3ad   : > { %v2023_v2 = vmul.f32 0.5, %v2022_v6  ;;  %v1491_v26 = vmul.f32 %v5241_v1, %v5216_v35  ;;  %v1010_v38 = vpop.xlane.xlu2 %1009  ;;  %v2308_v17 = vmul.f32 %v2019_v42, %v4824_v36  ;;  %v1501_v36 = vand.u32 2147483648, %v5216_v35 }
 0x3ae   : > { %v5253_v16 = vpop.xlane.xlu0 %1155  ;;  %v1044_v7 = vsub.f32 %v3655_v40, %v1010_v38  ;;  %v1682_v43 = vpop.xlane.xlu1 %1681  ;;  %v1483_v63 = vsel %vm1482_vm10, %v5212_v0, %v1479_v10  ;;  %v2276_v34 = vmul.f32 %v2019_v42, %v5003_v20  ;;  %v5285_v0 = vld [vmem:[%s5843_s2] ss:$0 sm:$0xff]  ;;  %vm1496_vm13 = vweird.f32 %v5241_v1 }
 0x3af   : > { %3549 = vrcp.f32 %v5253_v16  ;;  %v2024_v58 = vsub.f32 1.5, %v2023_v2  ;;  %v1492_v19 = vsub.f32 1.0, %v1491_v26  ;;  %v5263_v61 = vmul.f32 %v4655_v49, %v1682_v43  ;;  %vm5306_vm0 = vmor %vm1495_vm14, %vm1496_vm13  ;;  %v5317_v43 = vld [vmem:[%s5844_s3] ss:$0 sm:$0xff] }
 0x3b0   : > { %v1105_v25 = vmul.f32 1.442695, %v1044_v7  ;;  %v1488_v59 = vsel %vm1485_vm11, %v1487_v51, %v1483_v63  ;;  %v2344_v51 = vmul.f32 %v5285_v0, %v2308_v17  ;;  %v1499_v42 = vand.u32 2147483647, %v5216_v35 }
 0x3b1   : > { %v5268_v24 = vpop.eup %3545  ;;  %v2025_v22 = vmul.f32 %v5228_v50, %v2024_v58  ;;  %v1493_v3 = vmul.f32 %v5241_v1, %v1492_v19  ;;  %v1771_v9 = vsub.f32 %v4974_v46, %v5263_v61  ;;  %v1489_v20 = vmul.f32 %v4899_v32, %v1488_v59  ;;  %v2635_v19 = vpop.f32.mrf.mxu0 }
 0x3b2   : > { %v5274_v29 = vpop.eup %3547  ;;  %3551 = vpow2.f32 %v1105_v25  ;;  %1167 = vadd.xlane.f32.xlu0 %v5268_v24  ;;  %v1502_v32 = vor.u32 1.1754944e-38, %v1501_v36  ;;  %v2376_v33 = vsub.f32 %v2276_v34, %v2344_v51  ;;  %v1516_v54 = vand.u32 2147483648, %v5253_v16  ;;  %v2537_v25 = vpop.f32.mrf.mxu3 }
 0x3b3   : > { %v2029_v46 = vsel %vm2028_vm12, %v5228_v50, %v2025_v22  ;;  %v2031_v52 = vmul.f32 %v5274_v29, %v5234_v31  ;;  %v1803_v60 = vmul.f32 %v1771_v9, %v1771_v9  ;;  %v1494_v47 = vadd.f32 %v5241_v1, %v1493_v3  ;;  %2578 = vmatmul.f32.gmra.mxu3 %v1489_v20  ;;  %v3658_v9 = vld [vmem:[%s4152_s23 + $0x8] sm:$0xff] }
 0x3b4   : > { %v2309_v17 = vmul.f32 %v2029_v46, %v4854_v14  ;;  %2691 = vmatmul.f32.gmra.mxu0 %v1489_v20  ;;  %v2412_v58 = vadd.f32 %v5317_v43, %v2376_v33  ;;  %vm2037_vm1 = vweird.f32 %v5274_v29  ;;  %vm1500_vm2 = vcmp.eq.f32.partialorder %v1499_v42, 8.507059e+37 }
 0x3b5   : > { %v5293_v6 = vpop.eup %3549  ;;  %v2032_v10 = vmul.f32 %v5274_v29, %v2031_v52  ;;  %1848 = vadd.xlane.f32.xlu2 %v1803_v60  ;;  %v1684_v2 = vpop.xlane.xlu2 %1683  ;;  %v1498_v35 = vsel %vm5306_vm0, %v5241_v1, %v1494_v47  ;;  %v2277_v33 = vmul.f32 %v2029_v46, %v5025_v44  ;;  %vm2038_vm3 = vmor %vm2036_vm15, %vm2037_vm1  ;;  %vm1510_vm5 = vweird.f32 %v5253_v16 }
 0x3b6   : > { %v1506_v50 = vmul.f32 %v5293_v6, %v5253_v16  ;;  %v1012_v26 = vpop.xlane.xlu0 %1011  ;;  %v5311_v40 = vpop.xlane.xlu1 %1157  ;;  %v5324_v36 = vmul.f32 %v4655_v49, %v1684_v2  ;;  %v2444_v3 = vmax.f32 %v2412_v58, 0.0  ;;  %v1503_v51 = vsel %vm1500_vm2, %v1502_v32, %v1498_v35 }
 0x3b7   : > { %v1045_v7 = vsub.f32 %v4995_v37, %v1012_v26  ;;  %v2033_v63 = vmul.f32 0.5, %v2032_v10  ;;  %3553 = vrcp.f32 %v5311_v40  ;;  %v2796_v22 = vpop.f32.mrf.mxu1  ;;  %v1504_v60 = vmul.f32 %v4928_v23, %v1503_v51 }
 0x3b8   : > { %v1507_v14 = vsub.f32 1.0, %v1506_v50  ;;  %v5327_v37 = vpop.eup %3551  ;;  %v2890_v20 = vadd.f32 %v3658_v9, %v2796_v22  ;;  %v2734_v52 = vmul.f32 %v2537_v25, %v2444_v3  ;;  %v1772_v42 = vsub.f32 %v4999_v4, %v5324_v36  ;;  %v3659_v22 = vld [vmem:[%s4152_s23 + $0x10] sm:$0xff] }
 0x3b9   : > { %v1107_v34 = vmul.f32 1.442695, %v1045_v7  ;;  %v2034_v59 = vsub.f32 1.5, %v2033_v63  ;;  %v2345_v50 = vmul.f32 %v5285_v0, %v2309_v17  ;;  %vm1511_vm4 = vweird.f32 %v5293_v6  ;;  %v2638_v9 = vpop.f32.mrf.mxu0 }
 0x3ba   : > { %v1508_v1 = vmul.f32 %v5293_v6, %v1507_v14  ;;  %1169 = vadd.xlane.f32.xlu0 %v5327_v37  ;;  %v2922_v10 = vadd.f32 %v2890_v20, %v2635_v19  ;;  %2810 = vmatmul.f32.gmra.mxu1 %v2734_v52  ;;  %v1514_v23 = vand.u32 2147483647, %v5253_v16  ;;  %v1804_v4 = vmul.f32 %v1772_v42, %v1772_v42  ;;  %vm1512_vm7 = vmor %vm1510_vm5, %vm1511_vm4  ;;  %v2540_v20 = vpop.f32.mrf.mxu3 }
 0x3bb   : > { %3555 = vpow2.f32 %v1107_v34  ;;  %v2035_v47 = vmul.f32 %v5274_v29, %v2034_v59  ;;  %2581 = vmatmul.f32.gmra.mxu3 %v1504_v60  ;;  %v2377_v26 = vsub.f32 %v2277_v33, %v2345_v50  ;;  %v1517_v38 = vor.u32 1.1754944e-38, %v1516_v54 }
 0x3bc   : > { %v1509_v32 = vadd.f32 %v5293_v6, %v1508_v1  ;;  %2954 = vst [vmem:[%s5245_s27 + $0x8] sm:$0xff] %v2922_v10  ;;  %vm1525_vm6 = vweird.f32 %v5311_v40  ;;  %2694 = vmatmul.f32.gmra.mxu0 %v1504_v60  ;;  %v1531_v58 = vand.u32 2147483648, %v5311_v40  ;;  %vm1515_vm8 = vcmp.eq.f32.partialorder %v1514_v23, 8.507059e+37 }
 0x3bd   : > { %v5346_v44 = vpop.eup %3553  ;;  %v2039_v46 = vsel %vm2038_vm3, %v5274_v29, %v2035_v47  ;;  %v5351_v2 = vpop.xlane.xlu2 %1159  ;;  %1850 = vadd.xlane.f32.xlu2 %v1804_v4  ;;  %v2413_v25 = vadd.f32 %v5317_v43, %v2377_v26  ;;  %v1529_v1 = vand.u32 2147483647, %v5311_v40 }
 0x3be   : > { %v1686_v31 = vpop.xlane.xlu0 %1685  ;;  %v1521_v17 = vmul.f32 %v5346_v44, %v5311_v40  ;;  %3557 = vrcp.f32 %v5351_v2  ;;  %v1841_v29 = vpop.xlane.xlu1 %1840  ;;  %v2310_v7 = vmul.f32 %v2039_v46, %v4891_v56  ;;  %v1513_v56 = vsel %vm1512_vm7, %v5293_v6, %v1509_v32 }
 0x3bf   : > { %v1895_v35 = vmul.f32 %v1841_v29, %v4655_v49  ;;  %v5361_v19 = vmul.f32 %v4655_v49, %v1686_v31  ;;  %v2799_v14 = vpop.f32.mrf.mxu1  ;;  %v1518_v59 = vsel %vm1515_vm8, %v1517_v38, %v1513_v56  ;;  %v2445_v51 = vmax.f32 %v2413_v25, 0.0 }
 0x3c0   : > { %v1522_v63 = vsub.f32 1.0, %v1521_v17  ;;  %v2891_v3 = vadd.f32 %v3659_v22, %v2799_v14  ;;  %v1519_v52 = vmul.f32 %v4964_v18, %v1518_v59  ;;  %v2278_v60 = vmul.f32 %v2039_v46, %v5034_v57 }
 0x3c1   : > { %v5367_v54 = vpop.eup %3555  ;;  %v5371_v34 = vadd.f32 1e-05, %v1895_v35  ;;  %v1773_v6 = vsub.f32 %v5018_v62, %v5361_v19  ;;  %v2346_v47 = vmul.f32 %v5285_v0, %v2310_v7  ;;  %v2735_v42 = vmul.f32 %v2540_v20, %v2445_v51 }
 0x3c2   : > { %v1523_v16 = vmul.f32 %v5346_v44, %v1522_v63  ;;  %1171 = vadd.xlane.f32.xlu0 %v5367_v54  ;;  %v2923_v33 = vadd.f32 %v2891_v3, %v2638_v9  ;;  %vm1526_vm9 = vweird.f32 %v5346_v44  ;;  %v1532_v18 = vor.u32 1.1754944e-38, %v1531_v58 }
 0x3c3   : > { %3559 = vrsqrt.f32 %v5371_v34  ;;  %v1805_v50 = vmul.f32 %v1773_v6, %v1773_v6  ;;  %2584 = vmatmul.f32.gmra.mxu3 %v1519_v52  ;;  %v2378_v62 = vsub.f32 %v2278_v60, %v2346_v47  ;;  %vm1527_vm10 = vmor %vm1525_vm6, %vm1526_vm9  ;;  %2813 = vmatmul.f32.gmra.mxu1 %v2735_v42  ;;  %vm1530_vm11 = vcmp.eq.f32.partialorder %v1529_v1, 8.507059e+37 }
 0x3c4   : > { %v3558_v10 = vpop.eup %3557  ;;  %v1524_v32 = vadd.f32 %v5346_v44, %v1523_v16  ;;  %2955 = vst [vmem:[%s5245_s27 + $0x10] sm:$0xff] %v2923_v33  ;;  %2697 = vmatmul.f32.gmra.mxu0 %v1519_v52  ;;  %v1546_v17 = vand.u32 2147483648, %v5351_v2  ;;  %v1544_v29 = vand.u32 2147483647, %v5351_v2  ;;  %vm1540_vm13 = vweird.f32 %v5351_v2 }
 0x3c5   : > { %v1536_v23 = vmul.f32 %v3558_v10, %v5351_v2  ;;  %1852 = vadd.xlane.f32.xlu2 %v1805_v50  ;;  %v2414_v26 = vadd.f32 %v5317_v43, %v2378_v62  ;;  %vm1541_vm12 = vweird.f32 %v3558_v10  ;;  %vm2046_vm1 = vweird.f32 %v5371_v34  ;;  %v5417_v50 = vld [vmem:[%s4152_s23 + $0xb8] sm:$0xff] }
 0x3c6   : > { %v1014_v57 = vpop.xlane.xlu1 %1013  ;;  %v1528_v46 = vsel %vm1527_vm10, %v5346_v44, %v1524_v32  ;;  %v2543_v44 = vpop.f32.mrf.mxu3  ;;  %v1547_v56 = vor.u32 1.1754944e-38, %v1546_v17  ;;  %vm1542_vm14 = vmor %vm1540_vm13, %vm1541_vm12  ;;  %vm1545_vm15 = vcmp.eq.f32.partialorder %v1544_v29, 8.507059e+37  ;;  %v5436_v29 = vld [vmem:[%s4152_s23 + $0xc8] sm:$0xff] }
 0x3c7   : > { %v1537_v4 = vsub.f32 1.0, %v1536_v23  ;;  %v1046_v31 = vsub.f32 %v5030_v11, %v1014_v57  ;;  %v1533_v38 = vsel %vm1530_vm11, %v1532_v18, %v1528_v46  ;;  %v2446_v35 = vmax.f32 %v2414_v26, 0.0 }
 0x3c8   : > { %v1534_v63 = vmul.f32 %v4992_v15, %v1533_v38 }
 0x3c9   : > { %v3560_v40 = vpop.eup %3559  ;;  %v1538_v7 = vmul.f32 %v3558_v10, %v1537_v4  ;;  %v1109_v58 = vmul.f32 1.442695, %v1046_v31  ;;  %v2736_v11 = vmul.f32 %v2543_v44, %v2446_v35  ;;  %v5427_v4 = vld [vmem:[%s4152_s23 + $0xc0] sm:$0xff]  ;;  %v5445_v35 = vld [vmem:[%s4152_s23 + $0xd0] sm:$0xff] }
 0x3ca   : > { %v2041_v14 = vmul.f32 %v3560_v40, %v5371_v34  ;;  %vm2047_vm0 = vweird.f32 %v3560_v40 }
 0x3cb   : > { %3561 = vpow2.f32 %v1109_v58  ;;  %v1539_v25 = vadd.f32 %v3558_v10, %v1538_v7  ;;  %2587 = vmatmul.f32.gmra.mxu3 %v1534_v63  ;;  %2816 = vmatmul.f32.gmra.mxu1 %v2736_v11  ;;  %vm2048_vm2 = vmor %vm2046_vm1, %vm2047_vm0 }
 0x3cc   : > { %v2042_v22 = vmul.f32 %v3560_v40, %v2041_v14  ;;  %2700 = vmatmul.f32.gmra.mxu0 %v1534_v63 }
 0x3cd   : > { %v1543_v3 = vsel %vm1542_vm14, %v3558_v10, %v1539_v25  ;;  %v5454_v25 = vld [vmem:[%s4152_s23 + $0xd8] sm:$0xff] }
 0x3ce   : > { %v2043_v59 = vmul.f32 0.5, %v2042_v22  ;;  %v1688_v1 = vpop.xlane.xlu1 %1687  ;;  %v1548_v15 = vsel %vm1545_vm15, %v1547_v56, %v1543_v3  ;;  %v2546_v18 = vpop.f32.mrf.mxu3 }
 0x3cf   : > { %v5399_v9 = vmul.f32 %v4655_v49, %v1688_v1  ;;  %v1549_v16 = vmul.f32 %v5011_v45, %v1548_v15 }
 0x3d0   : > { %v2044_v20 = vsub.f32 1.5, %v2043_v59 }
 0x3d1   : > { %v5401_v2 = vpop.eup %3561  ;;  %v1774_v51 = vsub.f32 %v5040_v8, %v5399_v9 }
 0x3d2   : > { %v2045_v52 = vmul.f32 %v3560_v40, %v2044_v20  ;;  %1173 = vadd.xlane.f32.xlu0 %v5401_v2 }
 0x3d3   : > { %v1806_v6 = vmul.f32 %v1774_v51, %v1774_v51  ;;  %2590 = vmatmul.f32.gmra.mxu3 %v1549_v16 }
 0x3d4   : > { %v2049_v60 = vsel %vm2048_vm2, %v3560_v40, %v2045_v52  ;;  %2703 = vmatmul.f32.gmra.mxu0 %v1549_v16 }
 0x3d5   : > { %v2311_v33 = vmul.f32 %v2049_v60, %v4985_v30  ;;  %1854 = vadd.xlane.f32.xlu2 %v1806_v6  ;;  %v2279_v45 = vmul.f32 %v2049_v60, %v5044_v21 }
 0x3d6   : > { %v1690_v47 = vpop.xlane.xlu1 %1689 }
 0x3d7   : > { %v5411_v10 = vmul.f32 %v4655_v49, %v1690_v47  ;;  %v2347_v8 = vmul.f32 %v5285_v0, %v2311_v33 }
 0x3d9   : > { %v1775_v34 = vsub.f32 %v5050_v27, %v5411_v10  ;;  %v2379_v42 = vsub.f32 %v2279_v45, %v2347_v8 }
 0x3da   : > { %1701 = vadd.xlane.f32.xlu0 %v5417_v50 }
 0x3db   : > { %v1807_v30 = vmul.f32 %v1775_v34, %v1775_v34  ;;  %v2415_v32 = vadd.f32 %v5317_v43, %v2379_v42  ;;  %v5471_v42 = vld [vmem:[%s4152_s23 + $0xe8] sm:$0xff] }
 0x3dd   : > { %1856 = vadd.xlane.f32.xlu2 %v1807_v30  ;;  %v2447_v21 = vmax.f32 %v2415_v32, 0.0 }
 0x3de   : > { %v1692_v23 = vpop.xlane.xlu1 %1691 }
 0x3df   : > { %v5422_v62 = vmul.f32 %v4655_v49, %v1692_v23  ;;  %v2737_v57 = vmul.f32 %v2546_v18, %v2447_v21  ;;  %v5907_v23 = vld [vmem:[#allocation38_spill] sm:$0xff] }
 0x3e1   : > { %2819 = vmatmul.f32.gmra.mxu1 %v2737_v57  ;;  %v1776_v27 = vsub.f32 %v5057_v39, %v5422_v62 }
 0x3e3   : > { %v1808_v46 = vmul.f32 %v1776_v27, %v1776_v27 }
 0x3e5   : > { %1858 = vadd.xlane.f32.xlu1 %v1808_v46  ;;  %1703 = vadd.xlane.f32.xlu2 %v5427_v4 }
 0x3e6   : > { %v1694_v31 = vpop.xlane.xlu1 %1693 }
 0x3e7   : > { %v5431_v26 = vmul.f32 %v4655_v49, %v1694_v31 }
 0x3e9   : > { %v1777_v38 = vsub.f32 %v5062_v5, %v5431_v26 }
 0x3eb   : > { %v1809_v17 = vmul.f32 %v1777_v38, %v1777_v38 }
 0x3ed   : > { %1705 = vadd.xlane.f32.xlu1 %v5436_v29  ;;  %1860 = vadd.xlane.f32.xlu0 %v1809_v17 }
 0x3ee   : > { %v1696_v39 = vpop.xlane.xlu1 %1695 }
 0x3ef   : > { %v5440_v40 = vmul.f32 %v4655_v49, %v1696_v39 }
 0x3f1   : > { %v1778_v7 = vsub.f32 %v5069_v53, %v5440_v40 }
 0x3f3   : > { %v1810_v58 = vmul.f32 %v1778_v7, %v1778_v7 }
 0x3f5   : > { %1707 = vadd.xlane.f32.xlu0 %v5445_v35  ;;  %1862 = vadd.xlane.f32.xlu2 %v1810_v58 }
 0x3f6   : > { %v1698_v5 = vpop.xlane.xlu1 %1697 }
 0x3f7   : > { %v5449_v63 = vmul.f32 %v4655_v49, %v1698_v5 }
 0x3f9   : > { %v1779_v44 = vsub.f32 %v5080_v55, %v5449_v63  ;;  %v5463_v55 = vld [vmem:[%s4152_s23 + $0xe0] sm:$0xff] }
 0x3fb   : > { %v1811_v14 = vmul.f32 %v1779_v44, %v1779_v44 }
 0x3fc   : > { %v1162_v11 = vpop.xlane.xlu0 %1161 }
 0x3fd   : > { %1864 = vadd.xlane.f32.xlu1 %v1811_v14  ;;  %1709 = vadd.xlane.f32.xlu2 %v5454_v25  ;;  %3563 = vrcp.f32 %v1162_v11  ;;  %v1561_v16 = vand.u32 2147483648, %v1162_v11  ;;  %v1559_v6 = vand.u32 2147483647, %v1162_v11  ;;  %vm1555_vm4 = vweird.f32 %v1162_v11 }
 0x3fe   : > { %v1700_v53 = vpop.xlane.xlu1 %1699 }
 0x3ff   : > { %v5458_v56 = vmul.f32 %v4655_v49, %v1700_v53  ;;  %v1562_v47 = vor.u32 1.1754944e-38, %v1561_v16  ;;  %vm1560_vm6 = vcmp.eq.f32.partialorder %v1559_v6, 8.507059e+37  ;;  %v3667_v16 = vld [vmem:[%s4152_s23 + $0x18] sm:$0xff] }
 0x401   : > { %v1780_v22 = vsub.f32 %v5098_v41, %v5458_v56 }
 0x403   : > { %v3564_v3 = vpop.eup %3563  ;;  %v1812_v59 = vmul.f32 %v1780_v22, %v1780_v22 }
 0x404   : > { %v1551_v1 = vmul.f32 %v3564_v3, %v1162_v11  ;;  %v1164_v15 = vpop.xlane.xlu0 %1163  ;;  %vm1556_vm3 = vweird.f32 %v3564_v3 }
 0x405   : > { %1711 = vadd.xlane.f32.xlu1 %v5463_v55  ;;  %1866 = vadd.xlane.f32.xlu0 %v1812_v59  ;;  %3565 = vrcp.f32 %v1164_v15  ;;  %vm1557_vm5 = vmor %vm1555_vm4, %vm1556_vm3  ;;  %v1576_v18 = vand.u32 2147483648, %v1164_v15  ;;  %v1574_v31 = vand.u32 2147483647, %v1164_v15  ;;  %vm1570_vm8 = vweird.f32 %v1164_v15  ;;  %v5908_v59 = vld [vmem:[#allocation41_spill] sm:$0xff] }
 0x406   : > { %v1552_v20 = vsub.f32 1.0, %v1551_v1 }
 0x407   : > { %v1577_v7 = vor.u32 1.1754944e-38, %v1576_v18  ;;  %vm1575_vm10 = vcmp.eq.f32.partialorder %v1574_v31, 8.507059e+37 }
 0x408   : > { %v1553_v51 = vmul.f32 %v3564_v3, %v1552_v20  ;;  %v1843_v52 = vpop.xlane.xlu2 %1842 }
 0x409   : > { %v1896_v60 = vmul.f32 %v1843_v52, %v4655_v49 }
 0x40a   : > { %v1554_v41 = vadd.f32 %v3564_v3, %v1553_v51 }
 0x40b   : > { %v3566_v33 = vpop.eup %3565  ;;  %v5467_v45 = vadd.f32 1e-05, %v1896_v60 }
 0x40c   : > { %v1566_v8 = vmul.f32 %v3566_v33, %v1164_v15  ;;  %v1558_v34 = vsel %vm1557_vm5, %v3564_v3, %v1554_v41  ;;  %vm1571_vm7 = vweird.f32 %v3566_v33  ;;  %v2641_v15 = vpop.f32.mrf.mxu0 }
 0x40d   : > { %3567 = vrsqrt.f32 %v5467_v45  ;;  %1713 = vadd.xlane.f32.xlu0 %v5471_v42  ;;  %v1166_v30 = vpop.xlane.xlu0 %1165  ;;  %v1563_v32 = vsel %vm1560_vm6, %v1562_v47, %v1558_v34  ;;  %vm1572_vm9 = vmor %vm1570_vm8, %vm1571_vm7  ;;  %vm2056_vm14 = vweird.f32 %v5467_v45 }
 0x40e   : > { %v1567_v21 = vsub.f32 1.0, %v1566_v8  ;;  %3569 = vrcp.f32 %v1166_v30  ;;  %v1564_v57 = vmul.f32 %v5907_v23, %v1563_v32  ;;  %v1591_v6 = vand.u32 2147483648, %v1166_v30 }
 0x40f   : > { %v1589_v41 = vand.u32 2147483647, %v1166_v30  ;;  %vm1585_vm13 = vweird.f32 %v1166_v30 }
 0x410   : > { %v1568_v27 = vmul.f32 %v3566_v33, %v1567_v21  ;;  %v1845_v46 = vpop.xlane.xlu2 %1844  ;;  %2593 = vmatmul.f32.gmra.mxu3 %v1564_v57  ;;  %2706 = vmatmul.f32.gmra.mxu0 %v1564_v57  ;;  %v1592_v57 = vor.u32 1.1754944e-38, %v1591_v6 }
 0x411   : > { %v1897_v38 = vmul.f32 %v1845_v46, %v4655_v49  ;;  %vm1590_vm1 = vcmp.eq.f32.partialorder %v1589_v41, 8.507059e+37 }
 0x412   : > { %v1569_v17 = vadd.f32 %v3566_v33, %v1568_v27 }
 0x413   : > { %v3568_v39 = vpop.eup %3567  ;;  %v5476_v58 = vadd.f32 1e-05, %v1897_v38 }
 0x414   : > { %v3570_v5 = vpop.eup %3569  ;;  %v2051_v44 = vmul.f32 %v3568_v39, %v5467_v45  ;;  %v1573_v14 = vsel %vm1572_vm9, %v3566_v33, %v1569_v17  ;;  %vm2057_vm12 = vweird.f32 %v3568_v39 }
 0x415   : > { %v1581_v11 = vmul.f32 %v3570_v5, %v1166_v30  ;;  %3571 = vrsqrt.f32 %v5476_v58  ;;  %v1578_v53 = vsel %vm1575_vm10, %v1577_v7, %v1573_v14  ;;  %v2802_v3 = vpop.f32.mrf.mxu1  ;;  %vm1586_vm11 = vweird.f32 %v3570_v5  ;;  %vm2058_vm0 = vmor %vm2056_vm14, %vm2057_vm12  ;;  %v5909_v7 = vld [vmem:[#allocation40_spill] sm:$0xff] }
 0x416   : > { %v2052_v22 = vmul.f32 %v3568_v39, %v2051_v44  ;;  %v1579_v1 = vmul.f32 %v5908_v59, %v1578_v53  ;;  %v2892_v51 = vadd.f32 %v3667_v16, %v2802_v3  ;;  %vm1587_vm15 = vmor %vm1585_vm13, %vm1586_vm11  ;;  %v3668_v53 = vld [vmem:[%s4152_s23 + $0x20] sm:$0xff]  ;;  %v2549_v3 = vpop.f32.mrf.mxu3  ;;  %vm2066_vm2 = vweird.f32 %v5476_v58 }
 0x417   : > { %v1582_v20 = vsub.f32 1.0, %v1581_v11  ;;  %v5910_v59 = vld [vmem:[#allocation35_spill] sm:$0xff] }
 0x418   : > { %v2053_v52 = vmul.f32 0.5, %v2052_v22  ;;  %v1847_v60 = vpop.xlane.xlu2 %1846  ;;  %v2924_v33 = vadd.f32 %v2892_v51, %v2641_v15  ;;  %2596 = vmatmul.f32.gmra.mxu3 %v1579_v1  ;;  %2709 = vmatmul.f32.gmra.mxu0 %v1579_v1  ;;  %v2644_v22 = vpop.f32.mrf.mxu0 }
 0x419   : > { %v1583_v47 = vmul.f32 %v3570_v5, %v1582_v20  ;;  %v1898_v8 = vmul.f32 %v1847_v60, %v4655_v49 }
 0x41a   : > { %v2054_v34 = vsub.f32 1.5, %v2053_v52  ;;  %2956 = vst [vmem:[%s5245_s27 + $0x18] sm:$0xff] %v2924_v33 }
 0x41b   : > { %v3572_v32 = vpop.eup %3571  ;;  %v1930_v21 = vadd.f32 1e-05, %v1898_v8  ;;  %v1584_v18 = vadd.f32 %v3570_v5, %v1583_v47 }
 0x41c   : > { %v2055_v23 = vmul.f32 %v3568_v39, %v2054_v34  ;;  %v2061_v27 = vmul.f32 %v3572_v32, %v5476_v58  ;;  %vm2067_vm3 = vweird.f32 %v3572_v32  ;;  %v5911_v34 = vld [vmem:[#allocation36_spill] sm:$0xff] }
 0x41d   : > { %3573 = vrsqrt.f32 %v1930_v21  ;;  %v1588_v46 = vsel %vm1587_vm15, %v3570_v5, %v1584_v18  ;;  %vm2068_vm4 = vmor %vm2066_vm2, %vm2067_vm3  ;;  %vm2076_vm5 = vweird.f32 %v1930_v21 }
 0x41e   : > { %v2059_v31 = vsel %vm2058_vm0, %v3568_v39, %v2055_v23  ;;  %v2062_v38 = vmul.f32 %v3572_v32, %v2061_v27  ;;  %v1593_v17 = vsel %vm1590_vm1, %v1592_v57, %v1588_v46  ;;  %v2805_v44 = vpop.f32.mrf.mxu1 }
 0x41f   : > { %v2312_v30 = vmul.f32 %v2059_v31, %v5909_v7  ;;  %v1594_v14 = vmul.f32 %v5160_v48, %v1593_v17  ;;  %v2893_v45 = vadd.f32 %v3668_v53, %v2805_v44  ;;  %v2280_v1 = vmul.f32 %v2059_v31, %v5910_v59  ;;  %v2552_v31 = vpop.f32.mrf.mxu3 }
 0x420   : > { %v2063_v11 = vmul.f32 0.5, %v2062_v38  ;;  %v3669_v38 = vld [vmem:[%s4152_s23 + $0x28] sm:$0xff]  ;;  %v2647_v44 = vpop.f32.mrf.mxu0 }
 0x421   : > { %2599 = vmatmul.f32.gmra.mxu3 %v1594_v14  ;;  %2712 = vmatmul.f32.gmra.mxu0 %v1594_v14  ;;  %v2348_v5 = vmul.f32 %v5285_v0, %v2312_v30  ;;  %v2925_v15 = vadd.f32 %v2893_v45, %v2644_v22 }
 0x422   : > { %v2064_v39 = vsub.f32 1.5, %v2063_v11 }
 0x423   : > { %v3574_v20 = vpop.eup %3573  ;;  %v2380_v16 = vsub.f32 %v2280_v1, %v2348_v5  ;;  %2957 = vst [vmem:[%s5245_s27 + $0x20] sm:$0xff] %v2925_v15  ;;  %v5912_v1 = vld [vmem:[#allocation37_spill] sm:$0xff] }
 0x424   : > { %v2065_v48 = vmul.f32 %v3572_v32, %v2064_v39  ;;  %v2071_v51 = vmul.f32 %v3574_v20, %v1930_v21  ;;  %vm2077_vm6 = vweird.f32 %v3574_v20 }
 0x425   : > { %v5493_v52 = vpop.xlane.xlu0 %1167  ;;  %v2416_v6 = vadd.f32 %v5317_v43, %v2380_v16  ;;  %vm2078_vm7 = vmor %vm2076_vm5, %vm2077_vm6 }
 0x426   : > { %v2069_v60 = vsel %vm2068_vm4, %v3572_v32, %v2065_v48  ;;  %v2072_v41 = vmul.f32 %v3574_v20, %v2071_v51  ;;  %3575 = vrcp.f32 %v5493_v52  ;;  %v1606_v39 = vand.u32 2147483648, %v5493_v52 }
 0x427   : > { %v2313_v47 = vmul.f32 %v2069_v60, %v5147_v12  ;;  %v2448_v58 = vmax.f32 %v2416_v6, 0.0  ;;  %v2281_v18 = vmul.f32 %v2069_v60, %v5911_v34  ;;  %vm1600_vm9 = vweird.f32 %v5493_v52  ;;  %v2555_v34 = vpop.f32.mrf.mxu3 }
 0x428   : > { %v2073_v33 = vmul.f32 0.5, %v2072_v41  ;;  %v1849_v8 = vpop.xlane.xlu2 %1848  ;;  %v2808_v32 = vpop.f32.mrf.mxu1  ;;  %v1604_v51 = vand.u32 2147483647, %v5493_v52 }
 0x429   : > { %v1899_v23 = vmul.f32 %v1849_v8, %v4655_v49  ;;  %v2738_v57 = vmul.f32 %v2549_v3, %v2448_v58  ;;  %v2349_v27 = vmul.f32 %v5285_v0, %v2313_v47  ;;  %v2894_v17 = vadd.f32 %v3669_v38, %v2808_v32 }
 0x42a   : > { %v2074_v46 = vsub.f32 1.5, %v2073_v33  ;;  %v1607_v33 = vor.u32 1.1754944e-38, %v1606_v39  ;;  %vm1605_vm11 = vcmp.eq.f32.partialorder %v1604_v51, 8.507059e+37 }
 0x42b   : > { %v5502_v7 = vadd.f32 1e-05, %v1899_v23  ;;  %2822 = vmatmul.f32.gmra.mxu1 %v2738_v57  ;;  %v2381_v12 = vsub.f32 %v2281_v18, %v2349_v27  ;;  %v2926_v53 = vadd.f32 %v2894_v17, %v2647_v44 }
 0x42c   : > { %v3576_v30 = vpop.eup %3575  ;;  %v2075_v14 = vmul.f32 %v3574_v20, %v2074_v46 }
 0x42d   : > { %v1596_v11 = vmul.f32 %v3576_v30, %v5493_v52  ;;  %3577 = vrsqrt.f32 %v5502_v7  ;;  %v5506_v21 = vpop.xlane.xlu0 %1169  ;;  %2958 = vst [vmem:[%s5245_s27 + $0x28] sm:$0xff] %v2926_v53  ;;  %v2417_v59 = vadd.f32 %v5317_v43, %v2381_v12  ;;  %vm1601_vm8 = vweird.f32 %v3576_v30 }
 0x42e   : > { %v2079_v45 = vsel %vm2078_vm7, %v3574_v20, %v2075_v14  ;;  %3579 = vrcp.f32 %v5506_v21  ;;  %vm1602_vm10 = vmor %vm1600_vm9, %vm1601_vm8  ;;  %v1621_v17 = vand.u32 2147483648, %v5506_v21  ;;  %vm1615_vm14 = vweird.f32 %v5506_v21 }
 0x42f   : > { %v2314_v22 = vmul.f32 %v2079_v45, %v5190_v28  ;;  %v1597_v3 = vsub.f32 1.0, %v1596_v11  ;;  %v2282_v5 = vmul.f32 %v2079_v45, %v5912_v1  ;;  %v2449_v16 = vmax.f32 %v2417_v59, 0.0  ;;  %v3670_v45 = vld [vmem:[%s4152_s23 + $0x30] sm:$0xff]  ;;  %v2650_v1 = vpop.f32.mrf.mxu0 }
 0x430   : > { %v1851_v20 = vpop.xlane.xlu2 %1850  ;;  %vm2086_vm15 = vweird.f32 %v5502_v7 }
 0x431   : > { %v1598_v15 = vmul.f32 %v3576_v30, %v1597_v3  ;;  %v2350_v48 = vmul.f32 %v5285_v0, %v2314_v22  ;;  %v1900_v28 = vmul.f32 %v1851_v20, %v4655_v49  ;;  %v2739_v60 = vmul.f32 %v2552_v31, %v2449_v16 }
 0x432   : > { %v1622_v16 = vor.u32 1.1754944e-38, %v1621_v17 }
 0x433   : > { %v3578_v6 = vpop.eup %3577  ;;  %v1599_v41 = vadd.f32 %v3576_v30, %v1598_v15  ;;  %v2382_v47 = vsub.f32 %v2282_v5, %v2350_v48  ;;  %v5520_v23 = vadd.f32 1e-05, %v1900_v28  ;;  %2825 = vmatmul.f32.gmra.mxu1 %v2739_v60 }
 0x434   : > { %v3580_v58 = vpop.eup %3579  ;;  %v2081_v8 = vmul.f32 %v3578_v6, %v5502_v7  ;;  %vm2087_vm13 = vweird.f32 %v3578_v6  ;;  %v2558_v7 = vpop.f32.mrf.mxu3 }
 0x435   : > { %v1611_v18 = vmul.f32 %v3580_v58, %v5506_v21  ;;  %v5522_v57 = vpop.xlane.xlu0 %1171  ;;  %v1603_v52 = vsel %vm1602_vm10, %v3576_v30, %v1599_v41  ;;  %v2418_v27 = vadd.f32 %v5317_v43, %v2382_v47  ;;  %vm1616_vm12 = vweird.f32 %v3580_v58  ;;  %vm2088_vm1 = vmor %vm2086_vm15, %vm2087_vm13 }
 0x436   : > { %v2082_v46 = vmul.f32 %v3578_v6, %v2081_v8  ;;  %3581 = vrcp.f32 %v5522_v57  ;;  %v1608_v31 = vsel %vm1605_vm11, %v1607_v33, %v1603_v52  ;;  %v1619_v30 = vand.u32 2147483647, %v5506_v21  ;;  %vm1617_vm0 = vmor %vm1615_vm14, %vm1616_vm12 }
 0x437   : > { %v1612_v32 = vsub.f32 1.0, %v1611_v18  ;;  %3583 = vrsqrt.f32 %v5520_v23  ;;  %v1609_v12 = vmul.f32 %v5268_v24, %v1608_v31  ;;  %v2450_v44 = vmax.f32 %v2418_v27, 0.0  ;;  %v2811_v11 = vpop.f32.mrf.mxu1  ;;  %v5913_v27 = vld [vmem:[#allocation39_spill] sm:$0xff] }
 0x438   : > { %v2083_v38 = vmul.f32 0.5, %v2082_v46  ;;  %v2895_v22 = vadd.f32 %v3670_v45, %v2811_v11  ;;  %v1853_v3 = vpop.xlane.xlu2 %1852  ;;  %vm1620_vm2 = vcmp.eq.f32.partialorder %v1619_v30, 8.507059e+37  ;;  %v1636_v18 = vand.u32 2147483648, %v5522_v57  ;;  %v2653_v11 = vpop.f32.mrf.mxu0 }
 0x439   : > { %v1613_v14 = vmul.f32 %v3580_v58, %v1612_v32  ;;  %2602 = vmatmul.f32.gmra.mxu3 %v1609_v12  ;;  %2715 = vmatmul.f32.gmra.mxu0 %v1609_v12  ;;  %v2740_v59 = vmul.f32 %v2555_v34, %v2450_v44  ;;  %v1901_v5 = vmul.f32 %v1853_v3, %v4655_v49  ;;  %vm1630_vm4 = vweird.f32 %v5522_v57 }
 0x43a   : > { %v2084_v53 = vsub.f32 1.5, %v2083_v38  ;;  %v2927_v48 = vadd.f32 %v2895_v22, %v2650_v1  ;;  %vm2096_vm5 = vweird.f32 %v5520_v23  ;;  %v1637_v30 = vor.u32 1.1754944e-38, %v1636_v18 }
 0x43b   : > { %v1614_v24 = vadd.f32 %v3580_v58, %v1613_v14  ;;  %v5537_v28 = vadd.f32 1e-05, %v1901_v5  ;;  %2828 = vmatmul.f32.gmra.mxu1 %v2740_v59 }
 0x43c   : > { %v3582_v39 = vpop.eup %3581  ;;  %v2085_v15 = vmul.f32 %v3578_v6, %v2084_v53  ;;  %2959 = vst [vmem:[%s5245_s27 + $0x30] sm:$0xff] %v2927_v48  ;;  %v2561_v48 = vpop.f32.mrf.mxu3 }
 0x43d   : > { %v3584_v20 = vpop.eup %3583  ;;  %v1626_v51 = vmul.f32 %v3582_v39, %v5522_v57  ;;  %v1618_v21 = vsel %vm1617_vm0, %v3580_v58, %v1614_v24  ;;  %3585 = vrsqrt.f32 %v5537_v28  ;;  %vm1631_vm3 = vweird.f32 %v3582_v39 }
 0x43e   : > { %v2089_v60 = vsel %vm2088_vm1, %v3578_v6, %v2085_v15  ;;  %v2091_v41 = vmul.f32 %v3584_v20, %v5520_v23  ;;  %v1623_v47 = vsel %vm1620_vm2, %v1622_v16, %v1618_v21  ;;  %vm2097_vm6 = vweird.f32 %v3584_v20  ;;  %vm1632_vm7 = vmor %vm1630_vm4, %vm1631_vm3 }
 0x43f   : > { %v2315_v33 = vmul.f32 %v2089_v60, %v5263_v61  ;;  %v1627_v8 = vsub.f32 1.0, %v1626_v51  ;;  %v1624_v52 = vmul.f32 %v5327_v37, %v1623_v47  ;;  %v2283_v58 = vmul.f32 %v2089_v60, %v5913_v27  ;;  %v3671_v37 = vld [vmem:[%s4152_s23 + $0x38] sm:$0xff]  ;;  %vm2098_vm9 = vmor %vm2096_vm5, %vm2097_vm6 }
 0x440   : > { %v2092_v34 = vmul.f32 %v3584_v20, %v2091_v41  ;;  %v1634_v61 = vand.u32 2147483647, %v5522_v57  ;;  %v2814_v31 = vpop.f32.mrf.mxu1  ;;  %v5914_v41 = vld [vmem:[#allocation42_spill] sm:$0xff]  ;;  %vm2106_vm10 = vweird.f32 %v5537_v28 }
 0x441   : > { %v1628_v46 = vmul.f32 %v3582_v39, %v1627_v8  ;;  %v2351_v6 = vmul.f32 %v5285_v0, %v2315_v33  ;;  %2605 = vmatmul.f32.gmra.mxu3 %v1624_v52  ;;  %2718 = vmatmul.f32.gmra.mxu0 %v1624_v52  ;;  %v2896_v44 = vadd.f32 %v3671_v37, %v2814_v31  ;;  %v2656_v52 = vpop.f32.mrf.mxu0 }
 0x442   : > { %v2093_v32 = vmul.f32 0.5, %v2092_v34  ;;  %vm1635_vm8 = vcmp.eq.f32.partialorder %v1634_v61, 8.507059e+37 }
 0x443   : > { %v1629_v38 = vadd.f32 %v3582_v39, %v1628_v46  ;;  %v2383_v17 = vsub.f32 %v2283_v58, %v2351_v6  ;;  %v3586_v14 = vpop.eup %3585  ;;  %v2928_v59 = vadd.f32 %v2896_v44, %v2653_v11 }
 0x444   : > { %v2094_v12 = vsub.f32 1.5, %v2093_v32  ;;  %v2101_v3 = vmul.f32 %v3586_v14, %v5537_v28  ;;  %vm2107_vm11 = vweird.f32 %v3586_v14 }
 0x445   : > { %v5552_v53 = vpop.xlane.xlu0 %1173  ;;  %v1633_v45 = vsel %vm1632_vm7, %v3582_v39, %v1629_v38  ;;  %v2419_v57 = vadd.f32 %v5317_v43, %v2383_v17  ;;  %2960 = vst [vmem:[%s5245_s27 + $0x38] sm:$0xff] %v2928_v59  ;;  %vm2108_vm12 = vmor %vm2106_vm10, %vm2107_vm11 }
 0x446   : > { %v2095_v22 = vmul.f32 %v3584_v20, %v2094_v12  ;;  %3587 = vrcp.f32 %v5552_v53  ;;  %v1638_v1 = vsel %vm1635_vm8, %v1637_v30, %v1633_v45  ;;  %v2102_v24 = vmul.f32 %v3586_v14, %v2101_v3 }
 0x447   : > { %v1639_v16 = vmul.f32 %v5367_v54, %v1638_v1  ;;  %v2451_v39 = vmax.f32 %v2419_v57, 0.0  ;;  %v3672_v54 = vld [vmem:[%s4152_s23 + $0x40] sm:$0xff]  ;;  %v1651_v37 = vand.u32 2147483648, %v5552_v53  ;;  %v1649_v57 = vand.u32 2147483647, %v5552_v53 }
 0x448   : > { %v2099_v5 = vsel %vm2098_vm9, %v3584_v20, %v2095_v22  ;;  %v1855_v15 = vpop.xlane.xlu2 %1854  ;;  %v2103_v60 = vmul.f32 0.5, %v2102_v24  ;;  %v2817_v33 = vpop.f32.mrf.mxu1  ;;  %vm1645_vm14 = vweird.f32 %v5552_v53 }
 0x449   : > { %v2316_v51 = vmul.f32 %v2099_v5, %v5324_v36  ;;  %v1902_v21 = vmul.f32 %v1855_v15, %v4655_v49  ;;  %2608 = vmatmul.f32.gmra.mxu3 %v1639_v16  ;;  %2721 = vmatmul.f32.gmra.mxu0 %v1639_v16  ;;  %v2741_v23 = vmul.f32 %v2558_v7, %v2451_v39  ;;  %v1652_v24 = vor.u32 1.1754944e-38, %v1651_v37 }
 0x44a   : > { %v2284_v47 = vmul.f32 %v2099_v5, %v5914_v41  ;;  %v2104_v34 = vsub.f32 1.5, %v2103_v60  ;;  %v2897_v36 = vadd.f32 %v3672_v54, %v2817_v33  ;;  %vm1650_vm0 = vcmp.eq.f32.partialorder %v1649_v57, 8.507059e+37  ;;  %v5601_v54 = vld [vmem:[%s4152_s23 + $0xf0] sm:$0xff] }
 0x44b   : > { %v5564_v20 = vadd.f32 1e-05, %v1902_v21  ;;  %v2352_v8 = vmul.f32 %v5285_v0, %v2316_v51  ;;  %2831 = vmatmul.f32.gmra.mxu1 %v2741_v23 }
 0x44c   : > { %v3588_v18 = vpop.eup %3587  ;;  %v2105_v58 = vmul.f32 %v3586_v14, %v2104_v34  ;;  %v2929_v6 = vadd.f32 %v2897_v36, %v2656_v52 }
 0x44d   : > { %3589 = vrsqrt.f32 %v5564_v20  ;;  %v1702_v7 = vpop.xlane.xlu0 %1701  ;;  %v2384_v27 = vsub.f32 %v2284_v47, %v2352_v8  ;;  %v1641_v46 = vmul.f32 %v3588_v18, %v5552_v53  ;;  %vm1646_vm13 = vweird.f32 %v3588_v18 }
 0x44e   : > { %v5572_v32 = vmul.f32 %v4655_v49, %v1702_v7  ;;  %v2109_v61 = vsel %vm2108_vm12, %v3586_v14, %v2105_v58  ;;  %2961 = vst [vmem:[%s5245_s27 + $0x40] sm:$0xff] %v2929_v6  ;;  %v2564_v14 = vpop.f32.mrf.mxu3  ;;  %vm1647_vm15 = vmor %vm1645_vm14, %vm1646_vm13  ;;  %vm2116_vm2 = vweird.f32 %v5564_v20  ;;  %v3674_v6 = vld [vmem:[%s4152_s23 + $0x48] sm:$0xff] }
 0x44f   : > { %v2420_v28 = vadd.f32 %v5317_v43, %v2384_v27  ;;  %v1642_v31 = vsub.f32 1.0, %v1641_v46  ;;  %v2317_v12 = vmul.f32 %v2109_v61, %v5361_v19  ;;  %v2285_v3 = vmul.f32 %v2109_v61, %v5179_v13  ;;  %v2659_v46 = vpop.f32.mrf.mxu0  ;;  %v5915_v61 = vld [vmem:[#allocation19_spill] sm:$0xff] }
 0x450   : > { %v1857_v38 = vpop.xlane.xlu2 %1856  ;;  %v1781_v17 = vsub.f32 %v5417_v50, %v5572_v32 }
 0x451   : > { %v1903_v44 = vmul.f32 %v1857_v38, %v4655_v49  ;;  %v2452_v11 = vmax.f32 %v2420_v28, 0.0  ;;  %v1643_v30 = vmul.f32 %v3588_v18, %v1642_v31  ;;  %v2353_v50 = vmul.f32 %v5285_v0, %v2317_v12 }
 0x452   : > { %v1813_v45 = vmul.f32 %v1781_v17, %v1781_v17 }
 0x453   : > { %v3590_v22 = vpop.eup %3589  ;;  %v5583_v59 = vadd.f32 1e-05, %v1903_v44  ;;  %v2742_v1 = vmul.f32 %v2561_v48, %v2452_v11  ;;  %v1644_v5 = vadd.f32 %v3588_v18, %v1643_v30  ;;  %v2385_v15 = vsub.f32 %v2285_v3, %v2353_v50  ;;  %v5617_v11 = vld [vmem:[%s5843_s2] ss:$0 sm:$0xff] }
 0x454   : > { %v2111_v19 = vmul.f32 %v3590_v22, %v5564_v20  ;;  %1868 = vadd.xlane.f32.xlu2 %v1813_v45  ;;  %vm2117_vm1 = vweird.f32 %v3590_v22 }
 0x455   : > { %3591 = vrsqrt.f32 %v5583_v59  ;;  %2834 = vmatmul.f32.gmra.mxu1 %v2742_v1  ;;  %v1648_v13 = vsel %vm1647_vm15, %v3588_v18, %v1644_v5  ;;  %v2421_v48 = vadd.f32 %v5317_v43, %v2385_v15  ;;  %vm2118_vm3 = vmor %vm2116_vm2, %vm2117_vm1  ;;  %vm2126_vm5 = vweird.f32 %v5583_v59  ;;  %v5628_v5 = vld [vmem:[%s5844_s3] ss:$0 sm:$0xff] }
 0x456   : > { %v2112_v16 = vmul.f32 %v3590_v22, %v2111_v19  ;;  %v1653_v39 = vsel %vm1650_vm0, %v1652_v24, %v1648_v13  ;;  %v2567_v18 = vpop.f32.mrf.mxu3  ;;  %v5916_v13 = vld [vmem:[#allocation20_spill] sm:$0xff] }
 0x457   : > { %v1654_v53 = vmul.f32 %v5401_v2, %v1653_v39  ;;  %v2453_v23 = vmax.f32 %v2421_v48, 0.0 }
 0x458   : > { %v2113_v0 = vmul.f32 0.5, %v2112_v16  ;;  %v1859_v51 = vpop.xlane.xlu1 %1858  ;;  %v1704_v60 = vpop.xlane.xlu2 %1703 }
 0x459   : > { %v1904_v21 = vmul.f32 %v1859_v51, %v4655_v49  ;;  %v5594_v47 = vmul.f32 %v4655_v49, %v1704_v60  ;;  %2611 = vmatmul.f32.gmra.mxu3 %v1654_v53  ;;  %2724 = vmatmul.f32.gmra.mxu0 %v1654_v53  ;;  %v2743_v43 = vmul.f32 %v2564_v14, %v2453_v23 }
 0x45a   : > { %v2114_v41 = vsub.f32 1.5, %v2113_v0  ;;  %v5635_v0 = vld [vmem:[%s4152_s23 + $0xf8] sm:$0xff] }
 0x45b   : > { %v3592_v33 = vpop.eup %3591  ;;  %v5596_v8 = vadd.f32 1e-05, %v1904_v21  ;;  %v1782_v36 = vsub.f32 %v5427_v4, %v5594_v47 }
 0x45c   : > { %v2115_v34 = vmul.f32 %v3590_v22, %v2114_v41  ;;  %v2121_v2 = vmul.f32 %v3592_v33, %v5583_v59  ;;  %1715 = vadd.xlane.f32.xlu2 %v5601_v54  ;;  %vm2127_vm4 = vweird.f32 %v3592_v33 }
 0x45d   : > { %3593 = vrsqrt.f32 %v5596_v8  ;;  %2837 = vmatmul.f32.gmra.mxu1 %v2743_v43  ;;  %v1814_v58 = vmul.f32 %v1782_v36, %v1782_v36  ;;  %vm2128_vm6 = vmor %vm2126_vm5, %vm2127_vm4  ;;  %vm2136_vm7 = vweird.f32 %v5596_v8 }
 0x45e   : > { %v2119_v52 = vsel %vm2118_vm3, %v3590_v22, %v2115_v34  ;;  %v2122_v7 = vmul.f32 %v3592_v33, %v2121_v2  ;;  %v2820_v27 = vpop.f32.mrf.mxu1  ;;  %v2570_v50 = vpop.f32.mrf.mxu3 }
 0x45f   : > { %v2318_v20 = vmul.f32 %v2119_v52, %v5399_v9  ;;  %v2898_v28 = vadd.f32 %v3674_v6, %v2820_v27  ;;  %v2286_v31 = vmul.f32 %v2119_v52, %v5915_v61  ;;  %1870 = vadd.xlane.f32.xlu1 %v1814_v58  ;;  %v5917_v6 = vld [vmem:[#allocation21_spill] sm:$0xff] }
 0x460   : > { %v2123_v38 = vmul.f32 0.5, %v2122_v7  ;;  %v1706_v4 = vpop.xlane.xlu1 %1705  ;;  %v1861_v17 = vpop.xlane.xlu0 %1860 }
 0x461   : > { %v2930_v12 = vadd.f32 %v2898_v28, %v2659_v46  ;;  %v5611_v37 = vmul.f32 %v4655_v49, %v1706_v4  ;;  %v1905_v44 = vmul.f32 %v1861_v17, %v4655_v49  ;;  %v2354_v9 = vmul.f32 %v5617_v11, %v2318_v20 }
 0x462   : > { %v2124_v30 = vsub.f32 1.5, %v2123_v38 }
 0x463   : > { %v3594_v45 = vpop.eup %3593  ;;  %2962 = vst [vmem:[%s5245_s27 + $0x48] sm:$0xff] %v2930_v12  ;;  %v1937_v57 = vadd.f32 1e-05, %v1905_v44  ;;  %v1783_v22 = vsub.f32 %v5436_v29, %v5611_v37  ;;  %v2386_v14 = vsub.f32 %v2286_v31, %v2354_v9 }
 0x464   : > { %v2125_v3 = vmul.f32 %v3592_v33, %v2124_v30  ;;  %v2131_v1 = vmul.f32 %v3594_v45, %v5596_v8  ;;  %vm2137_vm8 = vweird.f32 %v3594_v45 }
 0x465   : > { %3595 = vrsqrt.f32 %v1937_v57  ;;  %v1815_v19 = vmul.f32 %v1783_v22, %v1783_v22  ;;  %v2422_v24 = vadd.f32 %v5628_v5, %v2386_v14  ;;  %vm2138_vm9 = vmor %vm2136_vm7, %vm2137_vm8  ;;  %vm2146_vm10 = vweird.f32 %v1937_v57 }
 0x466   : > { %v2129_v15 = vsel %vm2128_vm6, %v3592_v33, %v2125_v3  ;;  %v2132_v29 = vmul.f32 %v3594_v45, %v2131_v1 }
 0x467   : > { %v2319_v16 = vmul.f32 %v2129_v15, %v5411_v10  ;;  %1872 = vadd.xlane.f32.xlu0 %v1815_v19  ;;  %v2454_v59 = vmax.f32 %v2422_v24, 0.0  ;;  %v2287_v39 = vmul.f32 %v2129_v15, %v5916_v13  ;;  %1717 = vadd.xlane.f32.xlu1 %v5635_v0  ;;  %v5918_v15 = vld [vmem:[#allocation22_spill] sm:$0xff] }
 0x468   : > { %v2133_v48 = vmul.f32 0.5, %v2132_v29  ;;  %v1863_v51 = vpop.xlane.xlu2 %1862  ;;  %v1708_v53 = vpop.xlane.xlu0 %1707 }
 0x469   : > { %v1906_v21 = vmul.f32 %v1863_v51, %v4655_v49  ;;  %v5640_v60 = vmul.f32 %v4655_v49, %v1708_v53  ;;  %v2744_v10 = vmul.f32 %v2567_v18, %v2454_v59  ;;  %v2355_v23 = vmul.f32 %v5617_v11, %v2319_v16  ;;  %v2573_v18 = vpop.f32.mrf.mxu3 }
 0x46a   : > { %v2134_v41 = vsub.f32 1.5, %v2133_v48 }
 0x46b   : > { %v3596_v33 = vpop.eup %3595  ;;  %v1938_v43 = vadd.f32 1e-05, %v1906_v21  ;;  %2840 = vmatmul.f32.gmra.mxu1 %v2744_v10  ;;  %v1784_v8 = vsub.f32 %v5445_v35, %v5640_v60  ;;  %v2387_v34 = vsub.f32 %v2287_v39, %v2355_v23 }
 0x46c   : > { %v2135_v2 = vmul.f32 %v3594_v45, %v2134_v41  ;;  %v2141_v36 = vmul.f32 %v3596_v33, %v1937_v57  ;;  %vm2147_vm11 = vweird.f32 %v3596_v33 }
 0x46d   : > { %3597 = vrsqrt.f32 %v1938_v43  ;;  %v1816_v52 = vmul.f32 %v1784_v8, %v1784_v8  ;;  %v2423_v7 = vadd.f32 %v5628_v5, %v2387_v34  ;;  %vm2148_vm12 = vmor %vm2146_vm10, %vm2147_vm11  ;;  %vm2156_vm13 = vweird.f32 %v1938_v43 }
 0x46e   : > { %v2139_v27 = vsel %vm2138_vm9, %v3594_v45, %v2135_v2  ;;  %v2142_v58 = vmul.f32 %v3596_v33, %v2141_v36 }
 0x46f   : > { %v2320_v46 = vmul.f32 %v2139_v27, %v5422_v62  ;;  %1874 = vadd.xlane.f32.xlu2 %v1816_v52  ;;  %v2455_v20 = vmax.f32 %v2423_v7, 0.0  ;;  %v2288_v28 = vmul.f32 %v2139_v27, %v5917_v6 }
 0x470   : > { %v2143_v61 = vmul.f32 0.5, %v2142_v58  ;;  %v1865_v35 = vpop.xlane.xlu1 %1864  ;;  %v1710_v31 = vpop.xlane.xlu2 %1709 }
 0x471   : > { %v1907_v38 = vmul.f32 %v1865_v35, %v4655_v49  ;;  %v5650_v4 = vmul.f32 %v4655_v49, %v1710_v31  ;;  %v2745_v17 = vmul.f32 %v2570_v50, %v2455_v20  ;;  %v2356_v12 = vmul.f32 %v5617_v11, %v2320_v46  ;;  %v2576_v53 = vpop.f32.mrf.mxu3 }
 0x472   : > { %v2144_v44 = vsub.f32 1.5, %v2143_v61 }
 0x473   : > { %v3598_v9 = vpop.eup %3597  ;;  %v1939_v62 = vadd.f32 1e-05, %v1907_v38  ;;  %2843 = vmatmul.f32.gmra.mxu1 %v2745_v17  ;;  %v1785_v30 = vsub.f32 %v5454_v25, %v5650_v4  ;;  %v2388_v45 = vsub.f32 %v2288_v28, %v2356_v12 }
 0x474   : > { %v2145_v57 = vmul.f32 %v3596_v33, %v2144_v44  ;;  %v2151_v22 = vmul.f32 %v3598_v9, %v1938_v43  ;;  %vm2157_vm14 = vweird.f32 %v3598_v9 }
 0x475   : > { %3599 = vrsqrt.f32 %v1939_v62  ;;  %v1817_v14 = vmul.f32 %v1785_v30, %v1785_v30  ;;  %v2424_v3 = vadd.f32 %v5628_v5, %v2388_v45  ;;  %vm2158_vm15 = vmor %vm2156_vm13, %vm2157_vm14  ;;  %vm2166_vm0 = vweird.f32 %v1939_v62 }
 0x476   : > { %v2149_v1 = vsel %vm2148_vm12, %v3596_v33, %v2145_v57  ;;  %v2152_v19 = vmul.f32 %v3598_v9, %v2151_v22  ;;  %v5920_v22 = vld [vmem:[#allocation24_spill] sm:$0xff] }
 0x477   : > { %v2321_v50 = vmul.f32 %v2149_v1, %v5431_v26  ;;  %1876 = vadd.xlane.f32.xlu0 %v1817_v14  ;;  %v2456_v24 = vmax.f32 %v2424_v3, 0.0  ;;  %v2289_v29 = vmul.f32 %v2149_v1, %v5918_v15 }
 0x478   : > { %v2153_v16 = vmul.f32 0.5, %v2152_v19  ;;  %v1712_v59 = vpop.xlane.xlu1 %1711  ;;  %v1867_v25 = vpop.xlane.xlu0 %1866 }
 0x479   : > { %v5659_v13 = vmul.f32 %v4655_v49, %v1712_v59  ;;  %v1908_v39 = vmul.f32 %v1867_v25, %v4655_v49  ;;  %v2746_v48 = vmul.f32 %v2573_v18, %v2456_v24  ;;  %v2357_v51 = vmul.f32 %v5617_v11, %v2321_v50  ;;  %v5919_v18 = vld [vmem:[#allocation23_spill] sm:$0xff]  ;;  %v2579_v31 = vpop.f32.mrf.mxu3  ;;  %v5921_v59 = vld [vmem:[#allocation25_spill] sm:$0xff] }
 0x47a   : > { %v2154_v21 = vsub.f32 1.5, %v2153_v16 }
 0x47b   : > { %v3600_v26 = vpop.eup %3599  ;;  %v1940_v10 = vadd.f32 1e-05, %v1908_v39  ;;  %2846 = vmatmul.f32.gmra.mxu1 %v2746_v48  ;;  %v1786_v23 = vsub.f32 %v5463_v55, %v5659_v13  ;;  %v2389_v41 = vsub.f32 %v2289_v29, %v2357_v51 }
 0x47c   : > { %v2155_v33 = vmul.f32 %v3598_v9, %v2154_v21  ;;  %v2161_v43 = vmul.f32 %v3600_v26, %v1939_v62  ;;  %vm2167_vm1 = vweird.f32 %v3600_v26 }
 0x47d   : > { %3601 = vrsqrt.f32 %v1940_v10  ;;  %v1818_v8 = vmul.f32 %v1786_v23, %v1786_v23  ;;  %v2425_v34 = vadd.f32 %v5628_v5, %v2389_v41  ;;  %vm2168_vm2 = vmor %vm2166_vm0, %vm2167_vm1  ;;  %vm2176_vm3 = vweird.f32 %v1940_v10  ;;  %v2662_v23 = vpop.f32.mrf.mxu0  ;;  %v3678_v41 = vld [vmem:[%s4152_s23 + $0x50] sm:$0xff] }
 0x47e   : > { %v2159_v2 = vsel %vm2158_vm15, %v3598_v9, %v2155_v33  ;;  %v2162_v36 = vmul.f32 %v3600_v26, %v2161_v43 }
 0x47f   : > { %v2322_v52 = vmul.f32 %v2159_v2, %v5440_v40  ;;  %1878 = vadd.xlane.f32.xlu1 %v1818_v8  ;;  %v2457_v7 = vmax.f32 %v2425_v34, 0.0  ;;  %v2290_v46 = vmul.f32 %v2159_v2, %v5919_v18  ;;  %v3679_v2 = vld [vmem:[%s4152_s23 + $0x58] sm:$0xff] }
 0x480   : > { %v2163_v27 = vmul.f32 0.5, %v2162_v36  ;;  %v1714_v58 = vpop.xlane.xlu0 %1713 }
 0x481   : > { %v5669_v55 = vmul.f32 %v4655_v49, %v1714_v58  ;;  %v2747_v20 = vmul.f32 %v2576_v53, %v2457_v7  ;;  %v2358_v6 = vmul.f32 %v5617_v11, %v2322_v52  ;;  %v2582_v15 = vpop.f32.mrf.mxu3  ;;  %v3680_v58 = vld [vmem:[%s4152_s23 + $0x60] sm:$0xff] }
 0x482   : > { %v2164_v28 = vsub.f32 1.5, %v2163_v27 }
 0x483   : > { %v3602_v61 = vpop.eup %3601  ;;  %2849 = vmatmul.f32.gmra.mxu1 %v2747_v20  ;;  %v1787_v40 = vsub.f32 %v5471_v42, %v5669_v55  ;;  %v2390_v35 = vsub.f32 %v2290_v46, %v2358_v6 }
 0x484   : > { %v2165_v38 = vmul.f32 %v3600_v26, %v2164_v28  ;;  %v2171_v17 = vmul.f32 %v3602_v61, %v1940_v10  ;;  %vm2177_vm4 = vweird.f32 %v3602_v61 }
 0x485   : > { %v1819_v12 = vmul.f32 %v1787_v40, %v1787_v40  ;;  %v2426_v44 = vadd.f32 %v5628_v5, %v2390_v35  ;;  %vm2178_vm5 = vmor %vm2176_vm3, %vm2177_vm4  ;;  %v2665_v8 = vpop.f32.mrf.mxu0  ;;  %v3681_v35 = vld [vmem:[%s4152_s23 + $0x68] sm:$0xff] }
 0x486   : > { %v2169_v9 = vsel %vm2168_vm2, %v3600_v26, %v2165_v38  ;;  %v2172_v62 = vmul.f32 %v3602_v61, %v2171_v17 }
 0x487   : > { %v2323_v30 = vmul.f32 %v2169_v9, %v5449_v63  ;;  %1880 = vadd.xlane.f32.xlu2 %v1819_v12  ;;  %v2458_v45 = vmax.f32 %v2426_v44, 0.0  ;;  %v2291_v14 = vmul.f32 %v2169_v9, %v5920_v22 }
 0x488   : > { %v2173_v57 = vmul.f32 0.5, %v2172_v62 }
 0x489   : > { %v2748_v3 = vmul.f32 %v2579_v31, %v2458_v45  ;;  %v2359_v42 = vmul.f32 %v5617_v11, %v2323_v30  ;;  %v2585_v26 = vpop.f32.mrf.mxu3 }
 0x48a   : > { %v2174_v1 = vsub.f32 1.5, %v2173_v57  ;;  %v3682_v57 = vld [vmem:[%s4152_s23 + $0x70] sm:$0xff] }
 0x48b   : > { %2852 = vmatmul.f32.gmra.mxu1 %v2748_v3  ;;  %v2391_v19 = vsub.f32 %v2291_v14, %v2359_v42 }
 0x48c   : > { %v2175_v50 = vmul.f32 %v3602_v61, %v2174_v1 }
 0x48d   : > { %v2427_v24 = vadd.f32 %v5628_v5, %v2391_v19  ;;  %v2668_v7 = vpop.f32.mrf.mxu0 }
 0x48e   : > { %v2179_v63 = vsel %vm2178_vm5, %v3602_v61, %v2175_v50 }
 0x48f   : > { %v2324_v29 = vmul.f32 %v2179_v63, %v5458_v56  ;;  %v2459_v16 = vmax.f32 %v2427_v24, 0.0  ;;  %v2292_v25 = vmul.f32 %v2179_v63, %v5921_v59 }
 0x491   : > { %v2749_v39 = vmul.f32 %v2582_v15, %v2459_v16  ;;  %v2360_v48 = vmul.f32 %v5617_v11, %v2324_v29 }
 0x493   : > { %2855 = vmatmul.f32.gmra.mxu1 %v2749_v39  ;;  %v2392_v51 = vsub.f32 %v2292_v25, %v2360_v48  ;;  %v3683_v25 = vld [vmem:[%s4152_s23 + $0x78] sm:$0xff] }
 0x495   : > { %v2428_v53 = vadd.f32 %v5628_v5, %v2392_v51  ;;  %v2671_v20 = vpop.f32.mrf.mxu0 }
 0x497   : > { %v2460_v21 = vmax.f32 %v2428_v53, 0.0 }
 0x499   : > { %v2750_v10 = vmul.f32 %v2585_v26, %v2460_v21 }
 0x49b   : > { %2858 = vmatmul.f32.gmra.mxu1 %v2750_v10 }
 0x49d   : > { %v2674_v38 = vpop.f32.mrf.mxu0 }
 0x4a5   : > { %v2677_v1 = vpop.f32.mrf.mxu0 }
 0x4a8   : > { %v2823_v56 = vpop.f32.mrf.mxu1 }
 0x4a9   : > { %v2899_v33 = vadd.f32 %v3678_v41, %v2823_v56 }
 0x4ab   : > { %v2931_v43 = vadd.f32 %v2899_v33, %v2662_v23 }
 0x4ad   : > { %2963 = vst [vmem:[%s5245_s27 + $0x50] sm:$0xff] %v2931_v43  ;;  %v2680_v33 = vpop.f32.mrf.mxu0 }
 0x4b0   : > { %v2826_v34 = vpop.f32.mrf.mxu1 }
 0x4b1   : > { %v2900_v36 = vadd.f32 %v3679_v2, %v2826_v34 }
 0x4b3   : > { %v2932_v52 = vadd.f32 %v2900_v36, %v2665_v8  ;;  %v5922_v8 = vld [vmem:[#allocation26_spill] sm:$0xff] }
 0x4b5   : > { %2964 = vst [vmem:[%s5245_s27 + $0x58] sm:$0xff] %v2932_v52 }
 0x4b8   : > { %v2829_v27 = vpop.f32.mrf.mxu1 }
 0x4b9   : > { %v2901_v18 = vadd.f32 %v3680_v58, %v2829_v27 }
 0x4bb   : > { %v2933_v46 = vadd.f32 %v2901_v18, %v2668_v7  ;;  %v2588_v7 = vpop.f32.mrf.mxu3 }
 0x4bd   : > { %2965 = vst [vmem:[%s5245_s27 + $0x60] sm:$0xff] %v2933_v46 }
 0x4c7   : > { %v1869_v6 = vpop.xlane.xlu2 %1868 }
 0x4c8   : > { %v1909_v28 = vmul.f32 %v1869_v6, %v4655_v49  ;;  %v2832_v61 = vpop.f32.mrf.mxu1 }
 0x4c9   : > { %v2902_v31 = vadd.f32 %v3681_v35, %v2832_v61  ;;  %v2683_v35 = vpop.f32.mrf.mxu0 }
 0x4ca   : > { %v1941_v40 = vadd.f32 1e-05, %v1909_v28 }
 0x4cb   : > { %v2934_v17 = vadd.f32 %v2902_v31, %v2671_v20 }
 0x4cc   : > { %3603 = vrsqrt.f32 %v1941_v40  ;;  %vm2186_vm7 = vweird.f32 %v1941_v40 }
 0x4cd   : > { %2966 = vst [vmem:[%s5245_s27 + $0x68] sm:$0xff] %v2934_v17 }
 0x4cf   : > { %v1716_v12 = vpop.xlane.xlu2 %1715 }
 0x4d0   : > { %v5693_v44 = vmul.f32 %v4655_v49, %v1716_v12 }
 0x4d2   : > { %v3604_v9 = vpop.eup %3603  ;;  %v2835_v62 = vpop.f32.mrf.mxu1  ;;  %v1788_v30 = vsub.f32 %v5601_v54, %v5693_v44 }
 0x4d3   : > { %v2181_v45 = vmul.f32 %v3604_v9, %v1941_v40  ;;  %v2903_v22 = vadd.f32 %v3682_v57, %v2835_v62  ;;  %v1871_v14 = vpop.xlane.xlu1 %1870  ;;  %vm2187_vm6 = vweird.f32 %v3604_v9  ;;  %v3684_v62 = vld [vmem:[%s4152_s23 + $0x80] sm:$0xff] }
 0x4d4   : > { %v1910_v3 = vmul.f32 %v1871_v14, %v4655_v49  ;;  %v1820_v42 = vmul.f32 %v1788_v30, %v1788_v30  ;;  %vm2188_vm8 = vmor %vm2186_vm7, %vm2187_vm6 }
 0x4d5   : > { %v2182_v19 = vmul.f32 %v3604_v9, %v2181_v45  ;;  %v2935_v50 = vadd.f32 %v2903_v22, %v2674_v38 }
 0x4d6   : > { %v1942_v24 = vadd.f32 1e-05, %v1910_v3  ;;  %1882 = vadd.xlane.f32.xlu0 %v1820_v42  ;;  %v2591_v42 = vpop.f32.mrf.mxu3 }
 0x4d7   : > { %v2183_v15 = vmul.f32 0.5, %v2182_v19  ;;  %2967 = vst [vmem:[%s5245_s27 + $0x70] sm:$0xff] %v2935_v50 }
 0x4d8   : > { %3605 = vrsqrt.f32 %v1942_v24  ;;  %vm2196_vm10 = vweird.f32 %v1942_v24 }
 0x4d9   : > { %v2184_v63 = vsub.f32 1.5, %v2183_v15 }
 0x4da   : > { %v2838_v29 = vpop.f32.mrf.mxu1  ;;  %v1873_v16 = vpop.xlane.xlu0 %1872 }
 0x4db   : > { %v2185_v59 = vmul.f32 %v3604_v9, %v2184_v63  ;;  %v2904_v39 = vadd.f32 %v3683_v25, %v2838_v29  ;;  %v1718_v48 = vpop.xlane.xlu1 %1717  ;;  %v1911_v51 = vmul.f32 %v1873_v16, %v4655_v49 }
 0x4dc   : > { %v5703_v53 = vmul.f32 %v4655_v49, %v1718_v48 }
 0x4dd   : > { %v2189_v21 = vsel %vm2188_vm8, %v3604_v9, %v2185_v59  ;;  %v2936_v26 = vadd.f32 %v2904_v39, %v2677_v1  ;;  %v1943_v10 = vadd.f32 1e-05, %v1911_v51  ;;  %v5923_v1 = vld [vmem:[#allocation27_spill] sm:$0xff]  ;;  %v2686_v51 = vpop.f32.mrf.mxu0 }
 0x4de   : > { %v3606_v23 = vpop.eup %3605  ;;  %v2325_v56 = vmul.f32 %v2189_v21, %v5572_v32  ;;  %v1789_v41 = vsub.f32 %v5635_v0, %v5703_v53  ;;  %v2293_v34 = vmul.f32 %v2189_v21, %v5922_v8 }
 0x4df   : > { %v2191_v43 = vmul.f32 %v3606_v23, %v1942_v24  ;;  %2968 = vst [vmem:[%s5245_s27 + $0x78] sm:$0xff] %v2936_v26  ;;  %3607 = vrsqrt.f32 %v1943_v10  ;;  %vm2197_vm9 = vweird.f32 %v3606_v23  ;;  %vm2206_vm12 = vweird.f32 %v1943_v10  ;;  %v3685_v26 = vld [vmem:[%s4152_s23 + $0x88] sm:$0xff] }
 0x4e0   : > { %v1821_v2 = vmul.f32 %v1789_v41, %v1789_v41  ;;  %v2361_v36 = vmul.f32 %v5617_v11, %v2325_v56  ;;  %vm2198_vm11 = vmor %vm2196_vm10, %vm2197_vm9 }
 0x4e1   : > { %v2192_v52 = vmul.f32 %v3606_v23, %v2191_v43 }
 0x4e2   : > { %1884 = vadd.xlane.f32.xlu1 %v1821_v2  ;;  %v1875_v27 = vpop.xlane.xlu2 %1874  ;;  %v2393_v58 = vsub.f32 %v2293_v34, %v2361_v36  ;;  %v2594_v36 = vpop.f32.mrf.mxu3 }
 0x4e3   : > { %v2193_v18 = vmul.f32 0.5, %v2192_v52  ;;  %v1912_v32 = vmul.f32 %v1875_v27, %v4655_v49 }
 0x4e4   : > { %v2429_v46 = vadd.f32 %v5628_v5, %v2393_v58 }
 0x4e5   : > { %v3608_v20 = vpop.eup %3607  ;;  %v2194_v6 = vsub.f32 1.5, %v2193_v18  ;;  %v1944_v28 = vadd.f32 1e-05, %v1912_v32 }
 0x4e6   : > { %v2201_v61 = vmul.f32 %v3608_v20, %v1943_v10  ;;  %v2461_v40 = vmax.f32 %v2429_v46, 0.0  ;;  %vm2207_vm13 = vweird.f32 %v3608_v20 }
 0x4e7   : > { %v2195_v31 = vmul.f32 %v3606_v23, %v2194_v6  ;;  %3609 = vrsqrt.f32 %v1944_v28  ;;  %vm2208_vm14 = vmor %vm2206_vm12, %vm2207_vm13  ;;  %vm2216_vm15 = vweird.f32 %v1944_v28 }
 0x4e8   : > { %v2202_v38 = vmul.f32 %v3608_v20, %v2201_v61  ;;  %v2841_v17 = vpop.f32.mrf.mxu1  ;;  %v2751_v12 = vmul.f32 %v2588_v7, %v2461_v40  ;;  %v3686_v40 = vld [vmem:[%s4152_s23 + $0x90] sm:$0xff] }
 0x4e9   : > { %v2199_v9 = vsel %vm2198_vm11, %v3606_v23, %v2195_v31  ;;  %v2905_v30 = vadd.f32 %v3684_v62, %v2841_v17  ;;  %v2689_v62 = vpop.f32.mrf.mxu0 }
 0x4ea   : > { %v2326_v45 = vmul.f32 %v2199_v9, %v5594_v47  ;;  %v2203_v57 = vmul.f32 0.5, %v2202_v38  ;;  %2861 = vmatmul.f32.gmra.mxu1 %v2751_v12  ;;  %v1877_v22 = vpop.xlane.xlu0 %1876  ;;  %v2294_v19 = vmul.f32 %v2199_v9, %v5923_v1  ;;  %v5925_v38 = vld [vmem:[#allocation29_spill] sm:$0xff]  ;;  %v2597_v1 = vpop.f32.mrf.mxu3 }
 0x4eb   : > { %v2937_v14 = vadd.f32 %v2905_v30, %v2680_v33  ;;  %v1913_v3 = vmul.f32 %v1877_v22, %v4655_v49  ;;  %v5924_v33 = vld [vmem:[#allocation28_spill] sm:$0xff] }
 0x4ec   : > { %v2204_v50 = vsub.f32 1.5, %v2203_v57  ;;  %v2362_v24 = vmul.f32 %v5617_v11, %v2326_v45 }
 0x4ed   : > { %v3610_v15 = vpop.eup %3609  ;;  %2969 = vst [vmem:[%s5245_s27 + $0x80] sm:$0xff] %v2937_v14  ;;  %v1945_v63 = vadd.f32 1e-05, %v1913_v3 }
 0x4ee   : > { %v2205_v47 = vmul.f32 %v3608_v20, %v2204_v50  ;;  %v2211_v29 = vmul.f32 %v3610_v15, %v1944_v28  ;;  %v2394_v16 = vsub.f32 %v2294_v19, %v2362_v24  ;;  %vm2217_vm0 = vweird.f32 %v3610_v15 }
 0x4ef   : > { %3611 = vrsqrt.f32 %v1945_v63  ;;  %vm2218_vm1 = vmor %vm2216_vm15, %vm2217_vm0  ;;  %vm2226_vm2 = vweird.f32 %v1945_v63 }
 0x4f0   : > { %v2209_v59 = vsel %vm2208_vm14, %v3608_v20, %v2205_v47  ;;  %v2212_v25 = vmul.f32 %v3610_v15, %v2211_v29  ;;  %v2844_v39 = vpop.f32.mrf.mxu1  ;;  %v2430_v48 = vadd.f32 %v5628_v5, %v2394_v16  ;;  %v3687_v16 = vld [vmem:[%s4152_s23 + $0x98] sm:$0xff] }
 0x4f1   : > { %v2327_v21 = vmul.f32 %v2209_v59, %v5611_v37  ;;  %v2906_v10 = vadd.f32 %v3685_v26, %v2844_v39  ;;  %v2295_v43 = vmul.f32 %v2209_v59, %v5924_v33 }
 0x4f2   : > { %v2213_v23 = vmul.f32 0.5, %v2212_v25  ;;  %v1879_v56 = vpop.xlane.xlu1 %1878  ;;  %v2462_v41 = vmax.f32 %v2430_v48, 0.0  ;;  %v5926_v48 = vld [vmem:[#allocation30_spill] sm:$0xff] }
 0x4f3   : > { %v2938_v8 = vadd.f32 %v2906_v10, %v2683_v35  ;;  %v1914_v34 = vmul.f32 %v1879_v56, %v4655_v49  ;;  %v2363_v2 = vmul.f32 %v5617_v11, %v2327_v21 }
 0x4f4   : > { %v2214_v52 = vsub.f32 1.5, %v2213_v23  ;;  %v2752_v7 = vmul.f32 %v2591_v42, %v2462_v41  ;;  %v2692_v41 = vpop.f32.mrf.mxu0 }
 0x4f5   : > { %v3612_v37 = vpop.eup %3611  ;;  %2970 = vst [vmem:[%s5245_s27 + $0x88] sm:$0xff] %v2938_v8  ;;  %v1946_v27 = vadd.f32 1e-05, %v1914_v34  ;;  %v2395_v58 = vsub.f32 %v2295_v43, %v2363_v2  ;;  %v2600_v34 = vpop.f32.mrf.mxu3 }
 0x4f6   : > { %v2215_v18 = vmul.f32 %v3610_v15, %v2214_v52  ;;  %v2221_v32 = vmul.f32 %v3612_v37, %v1945_v63  ;;  %2864 = vmatmul.f32.gmra.mxu1 %v2752_v7  ;;  %vm2227_vm3 = vweird.f32 %v3612_v37 }
 0x4f7   : > { %3613 = vrsqrt.f32 %v1946_v27  ;;  %v2431_v46 = vadd.f32 %v5628_v5, %v2395_v58  ;;  %vm2228_vm4 = vmor %vm2226_vm2, %vm2227_vm3  ;;  %vm2236_vm5 = vweird.f32 %v1946_v27 }
 0x4f8   : > { %v2219_v20 = vsel %vm2218_vm1, %v3610_v15, %v2215_v18  ;;  %v2222_v6 = vmul.f32 %v3612_v37, %v2221_v32  ;;  %v2847_v28 = vpop.f32.mrf.mxu1  ;;  %v5927_v32 = vld [vmem:[#allocation31_spill] sm:$0xff] }
 0x4f9   : > { %v2328_v61 = vmul.f32 %v2219_v20, %v5640_v60  ;;  %v2907_v35 = vadd.f32 %v3686_v40, %v2847_v28  ;;  %v2463_v31 = vmax.f32 %v2431_v46, 0.0  ;;  %v2296_v17 = vmul.f32 %v2219_v20, %v5925_v38 }
 0x4fa   : > { %v2223_v12 = vmul.f32 0.5, %v2222_v6  ;;  %v1881_v9 = vpop.xlane.xlu2 %1880 }
 0x4fb   : > { %v2939_v30 = vadd.f32 %v2907_v35, %v2686_v51  ;;  %v1915_v45 = vmul.f32 %v1881_v9, %v4655_v49  ;;  %v2753_v57 = vmul.f32 %v2594_v36, %v2463_v31  ;;  %v2364_v22 = vmul.f32 %v5617_v11, %v2328_v61 }
 0x4fc   : > { %v2224_v14 = vsub.f32 1.5, %v2223_v12 }
 0x4fd   : > { %v3614_v60 = vpop.eup %3613  ;;  %2971 = vst [vmem:[%s5245_s27 + $0x90] sm:$0xff] %v2939_v30  ;;  %v1947_v3 = vadd.f32 1e-05, %v1915_v45  ;;  %v2396_v42 = vsub.f32 %v2296_v17, %v2364_v22  ;;  %v2603_v38 = vpop.f32.mrf.mxu3 }
 0x4fe   : > { %v2225_v19 = vmul.f32 %v3612_v37, %v2224_v14  ;;  %v2231_v50 = vmul.f32 %v3614_v60, %v1946_v27  ;;  %2867 = vmatmul.f32.gmra.mxu1 %v2753_v57  ;;  %vm2237_vm6 = vweird.f32 %v3614_v60  ;;  %v5928_v57 = vld [vmem:[#allocation32_spill] sm:$0xff] }
 0x4ff   : > { %3615 = vrsqrt.f32 %v1947_v3  ;;  %v2432_v24 = vadd.f32 %v5628_v5, %v2396_v42  ;;  %vm2238_vm7 = vmor %vm2236_vm5, %vm2237_vm6  ;;  %vm2246_vm8 = vweird.f32 %v1947_v3 }
 0x500   : > { %v2229_v15 = vsel %vm2228_vm4, %v3612_v37, %v2225_v19  ;;  %v2232_v63 = vmul.f32 %v3614_v60, %v2231_v50  ;;  %v2850_v47 = vpop.f32.mrf.mxu1  ;;  %v3688_v37 = vld [vmem:[%s4152_s23 + $0xa0] sm:$0xff]  ;;  %v3690_v50 = vld [vmem:[%s4152_s23 + $0xb0] sm:$0xff] }
 0x501   : > { %v2329_v29 = vmul.f32 %v2229_v15, %v5650_v4  ;;  %v2908_v59 = vadd.f32 %v3687_v16, %v2850_v47  ;;  %v2464_v25 = vmax.f32 %v2432_v24, 0.0  ;;  %v2297_v51 = vmul.f32 %v2229_v15, %v5926_v48 }
 0x502   : > { %v2233_v39 = vmul.f32 0.5, %v2232_v63 }
 0x503   : > { %v2940_v21 = vadd.f32 %v2908_v59, %v2689_v62  ;;  %v2754_v26 = vmul.f32 %v2597_v1, %v2464_v25  ;;  %v2365_v10 = vmul.f32 %v5617_v11, %v2329_v29  ;;  %v3689_v62 = vld [vmem:[%s4152_s23 + $0xa8] sm:$0xff] }
 0x504   : > { %v2234_v23 = vsub.f32 1.5, %v2233_v39 }
 0x505   : > { %v3616_v56 = vpop.eup %3615  ;;  %2972 = vst [vmem:[%s5245_s27 + $0x98] sm:$0xff] %v2940_v21  ;;  %v2397_v33 = vsub.f32 %v2297_v51, %v2365_v10  ;;  %v2606_v63 = vpop.f32.mrf.mxu3 }
 0x506   : > { %v2235_v4 = vmul.f32 %v3614_v60, %v2234_v23  ;;  %v2241_v43 = vmul.f32 %v3616_v56, %v1947_v3  ;;  %2870 = vmatmul.f32.gmra.mxu1 %v2754_v26  ;;  %vm2247_vm9 = vweird.f32 %v3616_v56 }
 0x507   : > { %v2433_v8 = vadd.f32 %v5628_v5, %v2397_v33  ;;  %vm2248_vm10 = vmor %vm2246_vm8, %vm2247_vm9 }
 0x508   : > { %v2239_v2 = vsel %vm2238_vm7, %v3614_v60, %v2235_v4  ;;  %v2242_v36 = vmul.f32 %v3616_v56, %v2241_v43  ;;  %v2853_v52 = vpop.f32.mrf.mxu1 }
 0x509   : > { %v2330_v7 = vmul.f32 %v2239_v2, %v5659_v13  ;;  %v2909_v27 = vadd.f32 %v3688_v37, %v2853_v52  ;;  %v2465_v58 = vmax.f32 %v2433_v8, 0.0  ;;  %v2298_v46 = vmul.f32 %v2239_v2, %v5927_v32  ;;  %v2695_v13 = vpop.f32.mrf.mxu0  ;;  %v3691_v32 = vld [vmem:[%s4152_s23 + $0xb8] sm:$0xff] }
 0x50a   : > { %v2243_v18 = vmul.f32 0.5, %v2242_v36 }
 0x50b   : > { %v2941_v20 = vadd.f32 %v2909_v27, %v2692_v41  ;;  %v2755_v6 = vmul.f32 %v2600_v34, %v2465_v58  ;;  %v2366_v28 = vmul.f32 %v5617_v11, %v2330_v7  ;;  %v5929_v34 = vld [vmem:[#allocation33_spill] sm:$0xff] }
 0x50c   : > { %v2244_v61 = vsub.f32 1.5, %v2243_v18 }
 0x50d   : > { %2973 = vst [vmem:[%s5245_s27 + $0xa0] sm:$0xff] %v2941_v20  ;;  %v2398_v40 = vsub.f32 %v2298_v46, %v2366_v28 }
 0x50e   : > { %v2245_v35 = vmul.f32 %v3616_v56, %v2244_v61  ;;  %2873 = vmatmul.f32.gmra.mxu1 %v2755_v6  ;;  %v2609_v6 = vpop.f32.mrf.mxu3 }
 0x50f   : > { %v2434_v31 = vadd.f32 %v5628_v5, %v2398_v40 }
 0x510   : > { %v2249_v17 = vsel %vm2248_vm10, %v3616_v56, %v2245_v35  ;;  %v2856_v12 = vpop.f32.mrf.mxu1 }
 0x511   : > { %v2331_v9 = vmul.f32 %v2249_v17, %v5669_v55  ;;  %v2910_v30 = vadd.f32 %v3689_v62, %v2856_v12  ;;  %v2466_v45 = vmax.f32 %v2434_v31, 0.0  ;;  %v2299_v22 = vmul.f32 %v2249_v17, %v5928_v57  ;;  %v2698_v55 = vpop.f32.mrf.mxu0 }
 0x513   : > { %v2942_v14 = vadd.f32 %v2910_v30, %v2695_v13  ;;  %v2756_v60 = vmul.f32 %v2603_v38, %v2466_v45  ;;  %v2367_v3 = vmul.f32 %v5617_v11, %v2331_v9  ;;  %v5930_v13 = vld [vmem:[#allocation34_spill] sm:$0xff]  ;;  %v3692_v30 = vld [vmem:[%s4152_s23 + $0xc0] sm:$0xff] }
 0x515   : > { %2974 = vst [vmem:[%s5245_s27 + $0xa8] sm:$0xff] %v2942_v14  ;;  %v2399_v42 = vsub.f32 %v2299_v22, %v2367_v3  ;;  %v3693_v3 = vld [vmem:[%s4152_s23 + $0xc8] sm:$0xff] }
 0x516   : > { %2876 = vmatmul.f32.gmra.mxu1 %v2756_v60  ;;  %v2612_v57 = vpop.f32.mrf.mxu3 }
 0x517   : > { %v2435_v1 = vadd.f32 %v5628_v5, %v2399_v42 }
 0x518   : > { %v2859_v19 = vpop.f32.mrf.mxu1 }
 0x519   : > { %v2911_v24 = vadd.f32 %v3690_v50, %v2859_v19  ;;  %v2467_v15 = vmax.f32 %v2435_v1, 0.0  ;;  %v2701_v7 = vpop.f32.mrf.mxu0 }
 0x51b   : > { %v2943_v47 = vadd.f32 %v2911_v24, %v2698_v55  ;;  %v2757_v29 = vmul.f32 %v2606_v63, %v2467_v15 }
 0x51d   : > { %2975 = vst [vmem:[%s5245_s27 + $0xb0] sm:$0xff] %v2943_v47 }
 0x51e   : > { %2879 = vmatmul.f32.gmra.mxu1 %v2757_v29 }
 0x521   : > { %v2704_v17 = vpop.f32.mrf.mxu0 }
 0x529   : > { %v2707_v60 = vpop.f32.mrf.mxu0 }
 0x531   : > { %v2710_v1 = vpop.f32.mrf.mxu0 }
 0x549   : > { %v1883_v16 = vpop.xlane.xlu0 %1882 }
 0x54a   : > { %v1916_v59 = vmul.f32 %v1883_v16, %v4655_v49 }
 0x54c   : > { %v1948_v25 = vadd.f32 1e-05, %v1916_v59 }
 0x54e   : > { %3617 = vrsqrt.f32 %v1948_v25  ;;  %vm2256_vm12 = vweird.f32 %v1948_v25 }
 0x554   : > { %v3618_v39 = vpop.eup %3617 }
 0x555   : > { %v2251_v48 = vmul.f32 %v3618_v39, %v1948_v25  ;;  %v1885_v51 = vpop.xlane.xlu1 %1884  ;;  %vm2257_vm11 = vweird.f32 %v3618_v39 }
 0x556   : > { %v1917_v21 = vmul.f32 %v1885_v51, %v4655_v49  ;;  %vm2258_vm13 = vmor %vm2256_vm12, %vm2257_vm11 }
 0x557   : > { %v2252_v26 = vmul.f32 %v3618_v39, %v2251_v48 }
 0x558   : > { %v1949_v10 = vadd.f32 1e-05, %v1917_v21 }
 0x559   : > { %v2253_v23 = vmul.f32 0.5, %v2252_v26 }
 0x55a   : > { %3619 = vrsqrt.f32 %v1949_v10  ;;  %vm2266_vm15 = vweird.f32 %v1949_v10 }
 0x55b   : > { %v2254_v56 = vsub.f32 1.5, %v2253_v23 }
 0x55d   : > { %v2255_v41 = vmul.f32 %v3618_v39, %v2254_v56 }
 0x55f   : > { %v2259_v33 = vsel %vm2258_vm13, %v3618_v39, %v2255_v41 }
 0x560   : > { %v3620_v4 = vpop.eup %3619  ;;  %v2332_v43 = vmul.f32 %v2259_v33, %v5693_v44  ;;  %v2300_v2 = vmul.f32 %v2259_v33, %v5929_v34 }
 0x561   : > { %v2261_v8 = vmul.f32 %v3620_v4, %v1949_v10  ;;  %vm2267_vm14 = vweird.f32 %v3620_v4 }
 0x562   : > { %v2368_v36 = vmul.f32 %v5617_v11, %v2332_v43  ;;  %vm2268_vm0 = vmor %vm2266_vm15, %vm2267_vm14 }
 0x563   : > { %v2262_v49 = vmul.f32 %v3620_v4, %v2261_v8 }
 0x564   : > { %v2400_v52 = vsub.f32 %v2300_v2, %v2368_v36 }
 0x565   : > { %v2263_v37 = vmul.f32 0.5, %v2262_v49 }
 0x566   : > { %v2436_v27 = vadd.f32 %v5628_v5, %v2400_v52 }
 0x567   : > { %v2264_v58 = vsub.f32 1.5, %v2263_v37  ;;  %v2862_v18 = vpop.f32.mrf.mxu1 }
 0x568   : > { %v2912_v46 = vadd.f32 %v3691_v32, %v2862_v18  ;;  %v2468_v20 = vmax.f32 %v2436_v27, 0.0 }
 0x569   : > { %v2265_v44 = vmul.f32 %v3620_v4, %v2264_v58 }
 0x56a   : > { %v2944_v28 = vadd.f32 %v2912_v46, %v2701_v7  ;;  %v2758_v61 = vmul.f32 %v2609_v6, %v2468_v20 }
 0x56b   : > { %v2269_v40 = vsel %vm2268_vm0, %v3620_v4, %v2265_v44 }
 0x56c   : > { %v2333_v35 = vmul.f32 %v2269_v40, %v5703_v53  ;;  %2976 = vst [vmem:[%s5245_s27 + $0xb8] sm:$0xff] %v2944_v28  ;;  %2882 = vmatmul.f32.gmra.mxu1 %v2758_v61  ;;  %v2301_v31 = vmul.f32 %v2269_v40, %v5930_v13 }
 0x56e   : > { %v2369_v38 = vmul.f32 %v5617_v11, %v2333_v35 }
 0x570   : > { %v2401_v12 = vsub.f32 %v2301_v31, %v2369_v38 }
 0x572   : > { %v2437_v9 = vadd.f32 %v5628_v5, %v2401_v12 }
 0x573   : > { %v2865_v62 = vpop.f32.mrf.mxu1 }
 0x574   : > { %v2913_v45 = vadd.f32 %v3692_v30, %v2865_v62  ;;  %v2469_v53 = vmax.f32 %v2437_v9, 0.0 }
 0x576   : > { %v2945_v22 = vadd.f32 %v2913_v45, %v2704_v17  ;;  %v2759_v14 = vmul.f32 %v2612_v57, %v2469_v53 }
 0x578   : > { %2977 = vst [vmem:[%s5245_s27 + $0xc0] sm:$0xff] %v2945_v22  ;;  %2885 = vmatmul.f32.gmra.mxu1 %v2759_v14 }
 0x57b   : > { %v2868_v11 = vpop.f32.mrf.mxu1 }
 0x57c   : > { %v2914_v42 = vadd.f32 %v3693_v3, %v2868_v11 }
 0x57e   : > { %v2946_v5 = vadd.f32 %v2914_v42, %v2707_v60 }
 0x580   : > { %2978 = vst [vmem:[%s5245_s27 + $0xc8] sm:$0xff] %v2946_v5 }
 0x581   : > { %3875 = shalt.err (!%p3872_p10)
}
 0x582   : > { %s3965_s28 = smov 128   ;;  %s3966_s11 = smov 8   ;;  %v3694_v50 = vld [vmem:[%s4152_s23 + $0xd0] sm:$0xff]  ;;  %v2713_v55 = vpop.f32.mrf.mxu0  ;;  %v3695_v47 = vld [vmem:[%s4152_s23 + $0xd8] sm:$0xff]  ;;  %v3696_v39 = vld [vmem:[%s4152_s23 + $0xe0] sm:$0xff] }
 0x583   : > { %3279 = dma.vmem_to_hbm [thread:$0]  (%p4112_p3), %s3053_s6, 4096, %s3055_s7, %s3023_s5, %s3965_s28, %s3965_s28, %s3966_s11   ;;  %v2871_v19 = vpop.f32.mrf.mxu1 }
 0x584   : > { %v2915_v24 = vadd.f32 %v3694_v50, %v2871_v19  ;;  %v3697_v26 = vld [vmem:[%s4152_s23 + $0xe8] sm:$0xff]  ;;  %s3034_s7 = scalar_lea.hbm %s5850_s9, %s3226_s22  ;;  %s3035_s23 = sshll.u32 %s5245_s27, 4  ;;  %s3036_s23 = int_to_ptr.vmem [resolvable:$true] %s3035_s23 }
 0x585   : > { %s3037_s5 = sshll.u32 %s3034_s7, 4  ;;  %s3018_s19 = scalar_lea.sflag [#allocation4], %s4145_s26  ;;  %s3038_s5 = int_to_ptr.hbm [resolvable:$true] %s3037_s5 }
 0x586   : > { %v2947_v15 = vadd.f32 %v2915_v24, %v2710_v1  ;;  %s3890_s24 = sshra.s32 %s3038_s5, 4  ;;  %s3896_s21 = scalar_lea.hbm %s5850_s9, 512  ;;  %s3891_s24 = int_to_ptr.hbm [resolvable:$true] %s3890_s24 }
 0x587   : > { %s3892_s25 = scalar_lea.hbm %s3891_s24, 256  ;;  %p3897_p5 = scmp.lt.s32.totalorder %s3891_s24, %s5850_s9 }
 0x588   : > { %2979 = vst [vmem:[%s5245_s27 + $0xd0] sm:$0xff] %v2947_v15  ;;  %p3893_p12 = scmp.ne.s32.totalorder %s3891_s24, %s3892_s25  ;;  %p3898_p7 = scmp.lt.s32.totalorder %s3896_s21, %s3892_s25 }
 0x58a   : > { %v2716_v59 = vpop.f32.mrf.mxu0  ;;  %p3894_p13 = pnand %p3893_p12, %p4112_p3  ;;  %p3899_p1 = por %p3898_p7, %p3897_p5 }
 0x58b   : > { %v2874_v63 = vpop.f32.mrf.mxu1 }
 0x58c   : > { %v2916_v29 = vadd.f32 %v3695_v47, %v2874_v63  ;;  %p3895_p0 = pneg %p3894_p13 }
 0x58e   : > { %v2948_v16 = vadd.f32 %v2916_v29, %v2713_v55  ;;  %p3900_p4 = pnand %p3899_p1, %p3895_p0 }
 0x590   : > { %2980 = vst [vmem:[%s5245_s27 + $0xd8] sm:$0xff] %v2948_v16 }
 0x592   : > { %v2719_v23 = vpop.f32.mrf.mxu0 }
 0x593   : > { %v2877_v25 = vpop.f32.mrf.mxu1 }
 0x594   : > { %v2917_v48 = vadd.f32 %v3696_v39, %v2877_v25 }
 0x596   : > { %v2949_v51 = vadd.f32 %v2917_v48, %v2716_v59 }
 0x598   : > { %2981 = vst [vmem:[%s5245_s27 + $0xe0] sm:$0xff] %v2949_v51 }
 0x59a   : > { %v2722_v4 = vpop.f32.mrf.mxu0 }
 0x59b   : > { %v2880_v21 = vpop.f32.mrf.mxu1 }
 0x59c   : > { %v2918_v10 = vadd.f32 %v3697_v26, %v2880_v21 }
 0x59e   : > { %v2950_v56 = vadd.f32 %v2918_v10, %v2719_v23 }
 0x5a0   : > { %2982 = vst [vmem:[%s5245_s27 + $0xe8] sm:$0xff] %v2950_v56 }
 0x5a2   : > { %v2725_v2 = vpop.f32.mrf.mxu0 }
 0x5e9   : > { %v2883_v41 = vpop.f32.mrf.mxu1 }
 0x5ea   : > { %v2919_v33 = vadd.f32 %v5601_v54, %v2883_v41 }
 0x5ec   : > { %v2951_v43 = vadd.f32 %v2919_v33, %v2722_v4 }
 0x5ee   : > { %2983 = vst [vmem:[%s5245_s27 + $0xf0] sm:$0xff] %v2951_v43 }
 0x5f5   : > { %v2886_v8 = vpop.f32.mrf.mxu1 }
 0x5f6   : > { %v2920_v34 = vadd.f32 %v5635_v0, %v2886_v8 }
 0x5f8   : > { %v2952_v36 = vadd.f32 %v2920_v34, %v2725_v2 }
 0x5fa   : > { %2984 = vst [vmem:[%s5245_s27 + $0xf8] sm:$0xff] %v2952_v36 }
 0x5fb   : > { %3903 = shalt.err (!%p3900_p4)
}
 0x5fc   : > { %3278 = dma.vmem_to_hbm [thread:$0]  (%p4112_p3), %s3036_s23, 4096, %s3038_s5, %s3018_s19, %s3965_s28, %s3965_s28, %s3966_s11  }
 0x5fd PF: > { %s3069_s26 = sand.u32 1, %s3942_s13   ;;  %p5931_p8 = scmp.ge.s32.totalorder %s3954_s16, 2 }
 0x5fe   : > { %s3070_s27 = scalar_lea.sflag [#allocation4], %s3069_s26 }
 0x5ff   : > { %p3300_p11 = pnand %p5931_p8, %p4057_p6 }
 0x601   : > { %p3301_p2 = pneg %p3300_p11 }
 0x603   : > { %3933 = dma.done.wait (%p3301_p2), %s3070_s27, 4096  }
 0x604   : > { %3935 = vsyncadd (%p3301_p2), %s3070_s27, 4294963200  ;;  %s3080_s0 = scalar_lea.sflag [#allocation13], %s3069_s26 }
 0x605   : > { %3937 = dma.done.wait (%p3301_p2), %s3080_s0, 4096  }
 0x606   : > { %3939 = vsyncadd (%p3301_p2), %s3080_s0, 4294963200  ;;  %p29_p3 = scmp.ge.s32.totalorder %s4102_s12, 4   ;;  %s5932_s13 = smov %s3946_s14 }
 0x607   : > { %s5933_s14 = smov %s3950_s15  ;;  %s5934_s15 = smov %s4118_s29 }
 0x608   : > { %s5935_s16 = smov %s4102_s12  ;;  %31 = sbr.rel (!%p29_p3) target bundleno = 15 (0xf), region = 134 }
 0x60d   :  { %3086 = vsyncpa [#allocation3], 1 }
 0x60e   :  { %3088 = vsyncpa [#allocation3 + $0x1], 1 }
 0x60f   :  { %3089 = vsyncpa [#allocation6], 1 }
 0x610   :  { %3090 = vsyncpa [#allocation9], 1 }
 0x611   :  { %3091 = vsyncpa [#allocation4], 1 }
 0x612   :  { %3093 = vsyncpa [#allocation4 + $0x1], 1 }
 0x613   :  { %3094 = vsyncpa [#allocation13], 1 }
 0x614   :  { %3096 = vsyncpa [#allocation13 + $0x1], 1 }

</bundles_post_ra>
